<compile_context>
chip_gen: v7x
topology: tpu7x:2x2x1
jax: 0.10.0
libtpu: 0.0.40
codegen_flags: <defaults>
</compile_context>

<pallas_src>
import functools

import jax
import jax.numpy as jnp
from jax.experimental import pallas as pl
from jax.experimental.pallas import tpu as pltpu

LANE = 128          # lane width: channels padded to this -> lane-dense tiles
TM = 1024           # default row tile (rows = flattened N*H*W pixels)
EPS = 1e-5


def _vmem_limit_bytes():
    """Scoped-VMEM request sized per chip generation: half of the physical
    per-core capacity, capped at 64 MiB (v5e/v6e: 128 MiB physical, v7x:
    64 MiB).  Fallback (no device context / AOT) assumes the smallest
    generation so we never over-request, and nothing is cached globally."""
    try:
        cap = int(pltpu.get_tpu_info().vmem_capacity_bytes)
    except Exception:
        cap = 64 * 1024 * 1024
    return int(min(64 * 1024 * 1024, max(cap // 2, 16 * 1024 * 1024)))


def _cp(sem):
    return pltpu.CompilerParams(dimension_semantics=sem,
                                vmem_limit_bytes=_vmem_limit_bytes())


def _round_up(x, m):
    return ((x + m - 1) // m) * m


def _row_tiling(m):
    """Pick a large row tile and the padded row count."""
    if m >= TM:
        return TM, _round_up(m, TM)
    t = _round_up(m, 8)
    return t, t


def _pad_rows(x, target):
    if x.shape[0] == target:
        return x
    return jnp.pad(x, ((0, target - x.shape[0]),) + ((0, 0),) * (x.ndim - 1))


def _pad_last(x, target):
    if x.shape[-1] == target:
        return x
    return jnp.pad(x, ((0, 0),) * (x.ndim - 1) + ((0, target - x.shape[-1]),))


# ----------------------------- Pallas kernels --------------------------------

def _mm_stats_kernel(x_ref, w_ref, o_ref, st_ref):
    """(TM,K)bf16 @ (K,N)bf16 -> (TM,N)bf16 plus fused per-tile sum/sumsq
    (stats taken from the f32 accumulator before the bf16 cast).
    Callers guarantee padded rows of x are zero, so stats stay exact."""
    y = jnp.dot(x_ref[...], w_ref[...], preferred_element_type=jnp.float32)
    o_ref[...] = y.astype(o_ref.dtype)
    st_ref[0] = jnp.concatenate(
        [jnp.sum(y, axis=0, keepdims=True),
         jnp.sum(y * y, axis=0, keepdims=True)], axis=0)


def matmul_with_stats(x, w, tm):
    Mp, K = x.shape
    _, Nc = w.shape
    nt = Mp // tm
    return pl.pallas_call(
        _mm_stats_kernel,
        out_shape=(jax.ShapeDtypeStruct((Mp, Nc), jnp.bfloat16),
                   jax.ShapeDtypeStruct((nt, 2, Nc), jnp.float32)),
        grid=(nt,),
        in_specs=[pl.BlockSpec((tm, K), lambda i: (i, 0)),
                  pl.BlockSpec((K, Nc), lambda i: (0, 0))],
        out_specs=(pl.BlockSpec((tm, Nc), lambda i: (i, 0)),
                   pl.BlockSpec((1, 2, Nc), lambda i: (i, 0, 0))),
        compiler_params=_cp(("parallel",)),   # per-tile partial stats
    )(x, w)


def _bn_relu_kernel(y_ref, s_ref, b_ref, o_ref):
    z = jnp.maximum(y_ref[...].astype(jnp.float32) * s_ref[...] + b_ref[...], 0.0)
    o_ref[...] = z.astype(o_ref.dtype)


def bn_relu(y, scale, shift, tm):
    Mp, C = y.shape
    return pl.pallas_call(
        _bn_relu_kernel,
        out_shape=jax.ShapeDtypeStruct((Mp, C), jnp.bfloat16),
        grid=(Mp // tm,),
        in_specs=[pl.BlockSpec((tm, C), lambda i: (i, 0)),
                  pl.BlockSpec((1, C), lambda i: (0, 0)),
                  pl.BlockSpec((1, C), lambda i: (0, 0))],
        out_specs=pl.BlockSpec((tm, C), lambda i: (i, 0)),
        compiler_params=_cp(("parallel",)),
    )(y, scale, shift)


def _grouped_conv3x3_kernel(xc_ref, w_ref, o_ref, st_ref, *, Ho, Wo, stride,
                            nblk, compact):
    """One image per grid step.  xc_ref is the halo-padded image with its W
    axis space-to-depth'd by `stride`: (1, HPad, stride, Wp, C); column phase
    p = dj % stride, column offset k0 = dj // stride.  9 shifted-tap matmuls
    accumulated in f32; per-channel stats fused (from f32, before bf16 cast)."""
    C = o_ref.shape[-1]
    HW = Ho * Wo
    if compact:
        accs = [jnp.zeros((HW, 128), jnp.float32) for _ in range(nblk)]
    else:
        accs = [jnp.zeros((HW, C), jnp.float32)]
    for dj in range(3):                               # column tap
        p, k0 = dj % stride, dj // stride
        col = xc_ref[0, :, p, k0:k0 + Wo, :]          # (HPad, Wo, C) bf16
        for di in range(3):                           # row tap
            win = col[di:di + Ho * stride]            # (Ho*stride, Wo, C)
            if stride > 1:
                win = win.reshape(Ho, stride, Wo, C)[:, 0]
            patch = win.reshape(HW, C)
            t = di * 3 + dj
            if compact:
                # only the diagonal 128x128 lane blocks of each tap are nonzero
                for cb in range(nblk):
                    accs[cb] = accs[cb] + jnp.dot(
                        patch[:, cb * 128:(cb + 1) * 128], w_ref[t, cb],
                        preferred_element_type=jnp.float32)
            else:
                accs[0] = accs[0] + jnp.dot(patch, w_ref[t],
                                            preferred_element_type=jnp.float32)
    acc = accs[0] if len(accs) == 1 else jnp.concatenate(accs, axis=-1)
    o_ref[...] = acc.astype(o_ref.dtype)
    st_ref[0] = jnp.concatenate(
        [jnp.sum(acc, axis=0, keepdims=True),
         jnp.sum(acc * acc, axis=0, keepdims=True)], axis=0)


def grouped_conv3x3(xcol, w_taps, Ho, Wo, stride, compact):
    # TODO(synk): for very large feature maps, additionally tile over output
    # rows (halo'd row blocks) to restore DMA/compute overlap when N is small.
    N, HPad, S, Wp, C = xcol.shape
    nblk = (C // 128) if compact else 1
    kern = functools.partial(_grouped_conv3x3_kernel, Ho=Ho, Wo=Wo,
                             stride=stride, nblk=nblk, compact=compact)
    if compact:
        w_spec = pl.BlockSpec((9, nblk, 128, 128), lambda n: (0, 0, 0, 0))
    else:
        w_spec = pl.BlockSpec((9, C, C), lambda n: (0, 0, 0))
    return pl.pallas_call(
        kern,
        out_shape=(jax.ShapeDtypeStruct((N * Ho * Wo, C), jnp.bfloat16),
                   jax.ShapeDtypeStruct((N, 2, C), jnp.float32)),
        grid=(N,),
        in_specs=[pl.BlockSpec((1, HPad, S, Wp, C), lambda n: (n, 0, 0, 0, 0)),
                  w_spec],
        out_specs=(pl.BlockSpec((Ho * Wo, C), lambda n: (n, 0)),
                   pl.BlockSpec((1, 2, C), lambda n: (n, 0, 0))),
        compiler_params=_cp(("parallel",)),   # per-image partial stats
    )(xcol, w_taps)


def _tail_kernel(y2_ref, s2_ref, b2_ref, xs_ref, w3_ref, wsc_ref,
                 y3_ref, sc_ref, st3_ref, stsc_ref, *, true_rows, tm):
    rows = pl.program_id(0) * tm + jax.lax.broadcasted_iota(jnp.int32, (tm, 1), 0)
    mask = rows < true_rows
    # BN+ReLU of the grouped-conv output applied in-kernel (saves an HBM trip);
    # padded rows are zeroed so the fused statistics stay exact.
    y2a = jnp.maximum(y2_ref[...].astype(jnp.float32) * s2_ref[...] + b2_ref[...], 0.0)
    y2a = jnp.where(mask, y2a, 0.0).astype(jnp.bfloat16)
    y3 = jnp.dot(y2a, w3_ref[...], preferred_element_type=jnp.float32)
    sc = jnp.dot(xs_ref[...], wsc_ref[...], preferred_element_type=jnp.float32)
    y3_ref[...] = y3.astype(y3_ref.dtype)
    sc_ref[...] = sc.astype(sc_ref.dtype)
    st3_ref[0] = jnp.concatenate(
        [jnp.sum(y3, axis=0, keepdims=True),
         jnp.sum(y3 * y3, axis=0, keepdims=True)], axis=0)
    stsc_ref[0] = jnp.concatenate(
        [jnp.sum(sc, axis=0, keepdims=True),
         jnp.sum(sc * sc, axis=0, keepdims=True)], axis=0)


def conv3_shortcut_fused(y2, s2, b2, xs, w3, wsc, true_rows, tm):
    Mp, Cg_ = y2.shape
    _, Ci_ = xs.shape
    _, C2_ = w3.shape
    nt = Mp // tm
    kern = functools.partial(_tail_kernel, true_rows=true_rows, tm=tm)
    return pl.pallas_call(
        kern,
        out_shape=(jax.ShapeDtypeStruct((Mp, C2_), jnp.bfloat16),
                   jax.ShapeDtypeStruct((Mp, C2_), jnp.bfloat16),
                   jax.ShapeDtypeStruct((nt, 2, C2_), jnp.float32),
                   jax.ShapeDtypeStruct((nt, 2, C2_), jnp.float32)),
        grid=(nt,),
        in_specs=[pl.BlockSpec((tm, Cg_), lambda i: (i, 0)),
                  pl.BlockSpec((1, Cg_), lambda i: (0, 0)),
                  pl.BlockSpec((1, Cg_), lambda i: (0, 0)),
                  pl.BlockSpec((tm, Ci_), lambda i: (i, 0)),
                  pl.BlockSpec((Cg_, C2_), lambda i: (0, 0)),
                  pl.BlockSpec((Ci_, C2_), lambda i: (0, 0))],
        out_specs=(pl.BlockSpec((tm, C2_), lambda i: (i, 0)),
                   pl.BlockSpec((tm, C2_), lambda i: (i, 0)),
                   pl.BlockSpec((1, 2, C2_), lambda i: (i, 0, 0)),
                   pl.BlockSpec((1, 2, C2_), lambda i: (i, 0, 0))),
        compiler_params=_cp(("parallel",)),
    )(y2, s2, b2, xs, w3, wsc)


def _residual_bn_relu_kernel(y_ref, s1_ref, b1_ref, r_ref, s2_ref, b2_ref, o_ref):
    z = (y_ref[...].astype(jnp.float32) * s1_ref[...] + b1_ref[...]
         + r_ref[...].astype(jnp.float32) * s2_ref[...] + b2_ref[...])
    o_ref[...] = jnp.maximum(z, 0.0).astype(o_ref.dtype)


def residual_bn_relu(y, s1, b1, r, s2, b2, tm):
    Mp, C = y.shape
    return pl.pallas_call(
        _residual_bn_relu_kernel,
        out_shape=jax.ShapeDtypeStruct((Mp, C), jnp.float32),
        grid=(Mp // tm,),
        in_specs=[pl.BlockSpec((tm, C), lambda i: (i, 0)),
                  pl.BlockSpec((1, C), lambda i: (0, 0)),
                  pl.BlockSpec((1, C), lambda i: (0, 0)),
                  pl.BlockSpec((tm, C), lambda i: (i, 0)),
                  pl.BlockSpec((1, C), lambda i: (0, 0)),
                  pl.BlockSpec((1, C), lambda i: (0, 0))],
        out_specs=pl.BlockSpec((tm, C), lambda i: (i, 0)),
        compiler_params=_cp(("parallel",)),
    )(y, s1, b1, r, s2, b2)


# ------------------------------ glue (JAX) ------------------------------------

def _bn_scale_shift(gamma, beta, st, true_rows, cpad):
    tot = jnp.sum(st, axis=0)                     # reduce per-tile partials
    mean = tot[0] / true_rows
    # TODO(synk): E[x^2]-E[x]^2 can cancel for activations with very large
    # means; fine at these scales (use a shifted/two-pass estimator otherwise).
    var = jnp.maximum(tot[1] / true_rows - mean * mean, 0.0)
    g = _pad_last(gamma.astype(jnp.float32), cpad)
    b = _pad_last(beta.astype(jnp.float32), cpad)
    scale = g / jnp.sqrt(var + EPS)
    shift = b - mean * scale
    return scale.reshape(1, cpad), shift.reshape(1, cpad)


def _compact_w2_taps(w2, cardinality, Cg, Cgp):
    """(Cg, gd, 3, 3) grouped OIHW -> (9, Cgp//128, 128, 128): only the
    diagonal 128x128 lane blocks of each tap (valid when gd divides 128)."""
    gd = Cg // cardinality
    nblk = Cgp // 128
    taps = jnp.zeros((9, nblk, 128, 128), jnp.float32)
    for g in range(cardinality):                                # weight prep only
        blk = w2[g * gd:(g + 1) * gd]                           # (gd, gd, 3, 3)
        blk = jnp.transpose(blk, (2, 3, 1, 0)).reshape(9, gd, gd)  # (tap, in, out)
        cb = (g * gd) // 128
        off = (g * gd) % 128
        taps = taps.at[:, cb, off:off + gd, off:off + gd].set(blk)
    return taps.astype(jnp.bfloat16)


def _block_diag_w2_taps(w2, cardinality, Cg, Cgp):
    """Dense fallback: (9, Cgp, Cgp) block-diagonal (tap, in, out) weight."""
    gd = Cg // cardinality
    taps = jnp.zeros((9, Cgp, Cgp), jnp.float32)
    for g in range(cardinality):
        blk = w2[g * gd:(g + 1) * gd]
        blk = jnp.transpose(blk, (2, 3, 1, 0)).reshape(9, gd, gd)
        taps = taps.at[:, g * gd:(g + 1) * gd, g * gd:(g + 1) * gd].set(blk)
    return taps.astype(jnp.bfloat16)


def resnext_block_forward(x_nchw, p, cardinality, stride):
    N, Cin, H, W = x_nchw.shape
    Cg = p["w1"].shape[0]
    C2 = 2 * Cg
    Cinp = _round_up(Cin, LANE)
    Cgp = _round_up(Cg, LANE)
    C2p = _round_up(C2, LANE)

    Ho = (H + 2 - 3) // stride + 1
    Wo = (W + 2 - 3) // stride + 1
    M1, M2 = N * H * W, N * Ho * Wo
    assert (Ho * Wo) % 8 == 0, "per-image output rows must be a multiple of 8"

    # NCHW -> NHWC bf16, channels padded ONCE to lane width for the whole block.
    x_nhwc = _pad_last(jnp.transpose(x_nchw, (0, 2, 3, 1)).astype(jnp.bfloat16),
                       Cinp)

    # ---- conv1: 1x1 matmul (+fused per-tile stats), then BN+ReLU -> bf16 ----
    tm1, M1p = _row_tiling(M1)
    x_flat = _pad_rows(x_nhwc.reshape(M1, Cinp), M1p)
    w1 = jnp.transpose(p["w1"][:, :, 0, 0], (1, 0))
    w1 = jnp.pad(w1, ((0, Cinp - Cin), (0, Cgp - Cg))).astype(jnp.bfloat16)
    y1, st1 = matmul_with_stats(x_flat, w1, tm1)
    s1, b1 = _bn_scale_shift(p["g1"], p["b1"], st1, M1, Cgp)
    y1a = bn_relu(y1, s1, b1, tm1)                               # bf16

    # ---- conv2: grouped 3x3 (stride, pad 1) as ONE pallas_call ----
    # One halo-padded copy, W axis space-to-depth'd by `stride` so the kernel
    # selects column phases with plain (cheap) slices -- no 3x xcols stack.
    # TODO(synk): fold the halo pad into bn_relu's output layout to also save
    # this single XLA pad pass.
    HPad = max(H + 2, Ho * stride + 2)
    WPad = max(W + 2, Wo * stride + 2)
    WPs = _round_up(WPad, stride)
    y1a_sp = y1a[:M1].reshape(N, H, W, Cgp)
    y1a_pad = jnp.pad(y1a_sp, ((0, 0), (1, HPad - H - 1), (1, WPs - W - 1), (0, 0)))
    if stride == 1:
        xcol = y1a_pad[:, :, None, :, :]                         # (N,HPad,1,WPad,C)
    else:
        xcol = y1a_pad.reshape(N, HPad, WPs // stride, stride, Cgp)
        xcol = jnp.transpose(xcol, (0, 1, 3, 2, 4))              # (N,HPad,s,WPs/s,C)
    gd = Cg // cardinality
    compact = (128 % gd == 0)                 # groups never straddle a lane block
    if compact:
        w2 = _compact_w2_taps(p["w2"], cardinality, Cg, Cgp)     # (9,nblk,128,128)
    else:
        w2 = _block_diag_w2_taps(p["w2"], cardinality, Cg, Cgp)  # (9,Cgp,Cgp)
    y2, st2 = grouped_conv3x3(xcol, w2, Ho, Wo, stride, compact)  # (M2,Cgp) bf16
    s2, b2 = _bn_scale_shift(p["g2"], p["b2"], st2, M2, Cgp)

    # ---- conv3 (1x1) + shortcut (1x1 stride) fused; BN+ReLU of y2 in-kernel --
    # conv3's bias cancels exactly under the batch-statistics BN that follows.
    tm2, M2p = _row_tiling(M2)
    y2 = _pad_rows(y2, M2p)
    xs = _pad_rows(x_nhwc[:, ::stride, ::stride, :].reshape(M2, Cinp), M2p)
    w3 = jnp.transpose(p["w3"][:, :, 0, 0], (1, 0))
    w3 = jnp.pad(w3, ((0, Cgp - Cg), (0, C2p - C2))).astype(jnp.bfloat16)
    wsc = jnp.transpose(p["wsc"][:, :, 0, 0], (1, 0))
    wsc = jnp.pad(wsc, ((0, Cinp - Cin), (0, C2p - C2))).astype(jnp.bfloat16)
    y3, sc, st3, stsc = conv3_shortcut_fused(y2, s2, b2, xs, w3, wsc, M2, tm2)
    s3, b3 = _bn_scale_shift(p["g3"], p["bt3"], st3, M2, C2p)
    ssc, bsc = _bn_scale_shift(p["gsc"], p["btsc"], stsc, M2, C2p)

    # ---- fused residual: ReLU(BN(conv3) + BN(shortcut)) ----
    out = residual_bn_relu(y3, s3, b3, sc, ssc, bsc, tm2)
    out = out[:M2, :C2].reshape(N, Ho, Wo, C2)
    # TODO(synk): skip this transpose (keep NHWC) if the consumer allows it.
    return jnp.transpose(out, (0, 3, 1, 2))                      # back to NCHW


# ----------------------- deterministic parameter init -------------------------

def init_params(key, in_chnls, cardinality, group_depth):
    Cg = cardinality * group_depth
    ks = jax.random.split(key, 14)
    nrm = lambda k, shp, s=0.2: (s * jax.random.normal(k, shp)).astype(jnp.float32)
    return {
        "w1": nrm(ks[0], (Cg, in_chnls, 1, 1)),
        "g1": 1.0 + nrm(ks[1], (Cg,), 0.1), "b1": nrm(ks[2], (Cg,), 0.1),
        "w2": nrm(ks[3], (Cg, Cg // cardinality, 3, 3)),
        "g2": 1.0 + nrm(ks[4], (Cg,), 0.1), "b2": nrm(ks[5], (Cg,), 0.1),
        "w3": nrm(ks[6], (2 * Cg, Cg, 1, 1)), "b3": nrm(ks[7], (2 * Cg,), 0.1),
        "g3": 1.0 + nrm(ks[8], (2 * Cg,), 0.1), "bt3": nrm(ks[9], (2 * Cg,), 0.1),
        "wsc": nrm(ks[10], (2 * Cg, in_chnls, 1, 1)),
        "gsc": 1.0 + nrm(ks[11], (2 * Cg,), 0.1), "btsc": nrm(ks[12], (2 * Cg,), 0.1),
    }


# -------------------------- pure-JAX reference check --------------------------

def reference_forward(x, p, cardinality, stride):
    def conv(x, w, s=1, pad=0, groups=1, bias=None):
        o = jax.lax.conv_general_dilated(
            x, w, (s, s), [(pad, pad), (pad, pad)],
            dimension_numbers=("NCHW", "OIHW", "NCHW"),
            feature_group_count=groups)
        if bias is not None:
            o = o + bias[None, :, None, None]
        return o

    def bn(x, g, b):
        m = x.mean(axis=(0, 2, 3), keepdims=True)
        v = x.var(axis=(0, 2, 3), keepdims=True)
        return (x - m) / jnp.sqrt(v + EPS) * g[None, :, None, None] + b[None, :, None, None]

    relu = lambda t: jnp.maximum(t, 0.0)
    y = relu(bn(conv(x, p["w1"]), p["g1"], p["b1"]))
    y = relu(bn(conv(y, p["w2"], s=stride, pad=1, groups=cardinality),
                p["g2"], p["b2"]))
    y = bn(conv(y, p["w3"], bias=p["b3"]), p["g3"], p["bt3"])
    sc = bn(conv(x, p["wsc"], s=stride), p["gsc"], p["btsc"])
    return relu(y + sc)


# ---------------------------------- main ---------------------------------------

if __name__ == "__main__":
    key = jax.random.PRNGKey(0)
    N, Cin, H, W = 2, 4, 16, 16
    cardinality, group_depth, stride = 2, 4, 2

    params = init_params(key, Cin, cardinality, group_depth)
    x = jax.random.normal(jax.random.fold_in(key, 123),
                          (N, Cin, H, W), dtype=jnp.float32)

    fwd = jax.jit(resnext_block_forward, static_argnames=("cardinality", "stride"))
    out = jax.block_until_ready(fwd(x, params, cardinality=cardinality, stride=stride))

    ref = reference_forward(x, params, cardinality, stride)
    assert out.shape == ref.shape, (out.shape, ref.shape)
    # bf16 matmul operands and bf16 intermediates (f32 accumulation / f32 BN)
    # -> looser tolerance than pure f32
    max_err = float(jnp.max(jnp.abs(out - ref)))
    assert jnp.allclose(out, ref, atol=4e-2, rtol=4e-2), max_err
    print("KERNEL_OK")
</pallas_src>

<mosaic_0001>
module attributes {stable_mosaic.version = 11 : i64} {
  func.func @_mm_stats_kernel(%arg0: i32, %arg1: memref<512x128xbf16, #tpu.memory_space<vmem>>, %arg2: memref<128x128xbf16, #tpu.memory_space<vmem>>, %arg3: memref<512x128xbf16, #tpu.memory_space<vmem>>, %arg4: memref<1x2x128xf32, #tpu.memory_space<vmem>>) attributes {dimension_semantics = [#tpu.dimension_semantics<parallel>], iteration_bounds = array<i64: 1>, scalar_prefetch = 0 : i64, scratch_operands = 0 : i64, tpu.core_type = #tpu.core_type<tc>, window_params = [{transform_indices = @transform_0, window_bounds = array<i64: 512, 128>}, {pipeline_mode = #tpu.pipeline_mode<synchronous>, transform_indices = @transform_1, window_bounds = array<i64: 128, 128>}, {transform_indices = @transform_2, window_bounds = array<i64: 512, 128>}, {transform_indices = @transform_3, window_bounds = array<i64: 1, 2, 128>}]} {
    %c0 = arith.constant 0 : index
    %c0_0 = arith.constant 0 : index
    %0 = vector.load %arg1[%c0, %c0_0] : memref<512x128xbf16, #tpu.memory_space<vmem>>, vector<512x128xbf16>
    %c0_1 = arith.constant 0 : index
    %c0_2 = arith.constant 0 : index
    %1 = vector.load %arg2[%c0_1, %c0_2] : memref<128x128xbf16, #tpu.memory_space<vmem>>, vector<128x128xbf16>
    %cst = arith.constant dense<0.000000e+00> : vector<512x128xf32>
    %2 = tpu.matmul %0, %1, %cst {dimension_numbers = #tpu.dot_dimension_numbers<[1], [0], [0], [1], [0, 0, 1, 1], [], []>} : vector<512x128xbf16>, vector<128x128xbf16>, vector<512x128xf32> -> vector<512x128xf32>
    %3 = arith.truncf %2 : vector<512x128xf32> to vector<512x128xbf16>
    %c0_3 = arith.constant 0 : index
    %c0_4 = arith.constant 0 : index
    %4 = vector.load %arg3[%c0_3, %c0_4] : memref<512x128xbf16, #tpu.memory_space<vmem>>, vector<512x128xbf16>
    tpu.vector_store %arg3[%c0_3, %c0_4], %3 {strides = array<i32>} : memref<512x128xbf16, #tpu.memory_space<vmem>>, vector<512x128xbf16>,
    %cst_5 = arith.constant dense<0.000000e+00> : vector<128xf32>
    %5 = vector.multi_reduction <add>, %2, %cst_5 [0] : vector<512x128xf32> to vector<128xf32>
    %6 = vector.shape_cast %5 : vector<128xf32> to vector<1x128xf32>
    %7 = arith.mulf %2, %2 : vector<512x128xf32>
    %cst_6 = arith.constant dense<0.000000e+00> : vector<128xf32>
    %8 = vector.multi_reduction <add>, %7, %cst_6 [0] : vector<512x128xf32> to vector<128xf32>
    %9 = vector.shape_cast %8 : vector<128xf32> to vector<1x128xf32>
    %10 = tpu.concatenate %6, %9 in 0 : vector<1x128xf32>, vector<1x128xf32> -> vector<2x128xf32>
    %c0_7 = arith.constant 0 : index
    %c0_8 = arith.constant 0 : index
    %c0_9 = arith.constant 0 : index
    %11 = vector.load %arg4[%c0_7, %c0_8, %c0_9] : memref<1x2x128xf32, #tpu.memory_space<vmem>>, vector<1x2x128xf32>
    %12 = vector.shape_cast %11 : vector<1x2x128xf32> to vector<2x128xf32>
    %13 = vector.shape_cast %10 : vector<2x128xf32> to vector<1x2x128xf32>
    tpu.vector_store %arg4[%c0_7, %c0_8, %c0_9], %13 {strides = array<i32>} : memref<1x2x128xf32, #tpu.memory_space<vmem>>, vector<1x2x128xf32>,
    return
  }
  func.func @transform_0(%arg0: i32) -> (i32, i32) {
    %c0_i32 = arith.constant 0 : i32
    %c0_i32_0 = arith.constant 0 : i32
    return %arg0, %c0_i32 : i32, i32
  }
  func.func @transform_1(%arg0: i32) -> (i32, i32) {
    %c0_i32 = arith.constant 0 : i32
    %c0_i32_0 = arith.constant 0 : i32
    %c0_i32_1 = arith.constant 0 : i32
    return %c0_i32, %c0_i32_0 : i32, i32
  }
  func.func @transform_2(%arg0: i32) -> (i32, i32) {
    %c0_i32 = arith.constant 0 : i32
    %c0_i32_0 = arith.constant 0 : i32
    return %arg0, %c0_i32 : i32, i32
  }
  func.func @transform_3(%arg0: i32) -> (i32, i32, i32) {
    %c0_i32 = arith.constant 0 : i32
    %c0_i32_0 = arith.constant 0 : i32
    %c0_i32_1 = arith.constant 0 : i32
    return %arg0, %c0_i32, %c0_i32_0 : i32, i32, i32
  }
}

module attributes {stable_mosaic.version = 11 : i64} {
  func.func @_bn_relu_kernel(%arg0: i32, %arg1: memref<512x128xbf16, #tpu.memory_space<vmem>>, %arg2: memref<1x128xf32, #tpu.memory_space<vmem>>, %arg3: memref<1x128xf32, #tpu.memory_space<vmem>>, %arg4: memref<512x128xbf16, #tpu.memory_space<vmem>>) attributes {dimension_semantics = [#tpu.dimension_semantics<parallel>], iteration_bounds = array<i64: 1>, scalar_prefetch = 0 : i64, scratch_operands = 0 : i64, tpu.core_type = #tpu.core_type<tc>, window_params = [{transform_indices = @transform_0, window_bounds = array<i64: 512, 128>}, {pipeline_mode = #tpu.pipeline_mode<synchronous>, transform_indices = @transform_1, window_bounds = array<i64: 1, 128>}, {pipeline_mode = #tpu.pipeline_mode<synchronous>, transform_indices = @transform_2, window_bounds = array<i64: 1, 128>}, {transform_indices = @transform_3, window_bounds = array<i64: 512, 128>}]} {
    %c0 = arith.constant 0 : index
    %c0_0 = arith.constant 0 : index
    %0 = vector.load %arg1[%c0, %c0_0] : memref<512x128xbf16, #tpu.memory_space<vmem>>, vector<512x128xbf16>
    %1 = arith.extf %0 : vector<512x128xbf16> to vector<512x128xf32>
    %c0_1 = arith.constant 0 : index
    %c0_2 = arith.constant 0 : index
    %2 = vector.load %arg2[%c0_1, %c0_2] : memref<1x128xf32, #tpu.memory_space<vmem>>, vector<1x128xf32>
    %3 = vector.broadcast %2 : vector<1x128xf32> to vector<512x128xf32>
    %4 = arith.mulf %1, %3 : vector<512x128xf32>
    %c0_3 = arith.constant 0 : index
    %c0_4 = arith.constant 0 : index
    %5 = vector.load %arg3[%c0_3, %c0_4] : memref<1x128xf32, #tpu.memory_space<vmem>>, vector<1x128xf32>
    %6 = vector.broadcast %5 : vector<1x128xf32> to vector<512x128xf32>
    %7 = arith.addf %4, %6 : vector<512x128xf32>
    %cst = arith.constant 0.000000e+00 : f32
    %8 = vector.broadcast %cst : f32 to vector<512x128xf32>
    %9 = arith.maximumf %7, %8 : vector<512x128xf32>
    %10 = arith.truncf %9 : vector<512x128xf32> to vector<512x128xbf16>
    %c0_5 = arith.constant 0 : index
    %c0_6 = arith.constant 0 : index
    %11 = vector.load %arg4[%c0_5, %c0_6] : memref<512x128xbf16, #tpu.memory_space<vmem>>, vector<512x128xbf16>
    tpu.vector_store %arg4[%c0_5, %c0_6], %10 {strides = array<i32>} : memref<512x128xbf16, #tpu.memory_space<vmem>>, vector<512x128xbf16>,
    return
  }
  func.func @transform_0(%arg0: i32) -> (i32, i32) {
    %c0_i32 = arith.constant 0 : i32
    %c0_i32_0 = arith.constant 0 : i32
    return %arg0, %c0_i32 : i32, i32
  }
  func.func @transform_1(%arg0: i32) -> (i32, i32) {
    %c0_i32 = arith.constant 0 : i32
    %c0_i32_0 = arith.constant 0 : i32
    %c0_i32_1 = arith.constant 0 : i32
    return %c0_i32, %c0_i32_0 : i32, i32
  }
  func.func @transform_2(%arg0: i32) -> (i32, i32) {
    %c0_i32 = arith.constant 0 : i32
    %c0_i32_0 = arith.constant 0 : i32
    %c0_i32_1 = arith.constant 0 : i32
    return %c0_i32, %c0_i32_0 : i32, i32
  }
  func.func @transform_3(%arg0: i32) -> (i32, i32) {
    %c0_i32 = arith.constant 0 : i32
    %c0_i32_0 = arith.constant 0 : i32
    return %arg0, %c0_i32 : i32, i32
  }
}

module attributes {stable_mosaic.version = 11 : i64} {
  func.func @_grouped_conv3x3_kernel(%arg0: i32, %arg1: memref<1x18x2x9x128xbf16, #tpu.memory_space<vmem>>, %arg2: memref<9x1x128x128xbf16, #tpu.memory_space<vmem>>, %arg3: memref<64x128xbf16, #tpu.memory_space<vmem>>, %arg4: memref<1x2x128xf32, #tpu.memory_space<vmem>>) attributes {dimension_semantics = [#tpu.dimension_semantics<parallel>], iteration_bounds = array<i64: 2>, scalar_prefetch = 0 : i64, scratch_operands = 0 : i64, tpu.core_type = #tpu.core_type<tc>, window_params = [{transform_indices = @transform_0, window_bounds = array<i64: 1, 18, 2, 9, 128>}, {pipeline_mode = #tpu.pipeline_mode<synchronous>, transform_indices = @transform_1, window_bounds = array<i64: 9, 1, 128, 128>}, {transform_indices = @transform_2, window_bounds = array<i64: 64, 128>}, {transform_indices = @transform_3, window_bounds = array<i64: 1, 2, 128>}]} {
    %cst = arith.constant 0.000000e+00 : f32
    %0 = vector.broadcast %cst : f32 to vector<64x128xf32>
    %c0 = arith.constant 0 : index
    %c0_0 = arith.constant 0 : index
    %c0_1 = arith.constant 0 : index
    %c0_2 = arith.constant 0 : index
    %c0_3 = arith.constant 0 : index
    %1 = vector.load %arg1[%c0, %c0_0, %c0_1, %c0_2, %c0_3] : memref<1x18x2x9x128xbf16, #tpu.memory_space<vmem>>, vector<1x18x1x8x128xbf16>
    %2 = vector.shape_cast %1 : vector<1x18x1x8x128xbf16> to vector<18x8x128xbf16>
    %3 = vector.extract_strided_slice %2 {offsets = [0, 0, 0], sizes = [16, 8, 128], strides = [1, 1, 1]} : vector<18x8x128xbf16> to vector<16x8x128xbf16>
    %4 = vector.shape_cast %3 : vector<16x8x128xbf16> to vector<8x2x8x128xbf16>
    %5 = vector.extract_strided_slice %4 {offsets = [0, 0, 0, 0], sizes = [8, 1, 8, 128], strides = [1, 1, 1, 1]} : vector<8x2x8x128xbf16> to vector<8x1x8x128xbf16>
    %6 = vector.shape_cast %5 : vector<8x1x8x128xbf16> to vector<8x8x128xbf16>
    %7 = vector.shape_cast %6 : vector<8x8x128xbf16> to vector<64x128xbf16>
    %c0_4 = arith.constant 0 : index
    %c0_5 = arith.constant 0 : index
    %c0_6 = arith.constant 0 : index
    %c0_7 = arith.constant 0 : index
    %8 = vector.load %arg2[%c0_4, %c0_5, %c0_6, %c0_7] : memref<9x1x128x128xbf16, #tpu.memory_space<vmem>>, vector<1x1x128x128xbf16>
    %9 = vector.shape_cast %8 : vector<1x1x128x128xbf16> to vector<128x128xbf16>
    %cst_8 = arith.constant dense<0.000000e+00> : vector<64x128xf32>
    %10 = tpu.matmul %7, %9, %cst_8 {dimension_numbers = #tpu.dot_dimension_numbers<[1], [0], [0], [1], [0, 0, 1, 1], [], []>} : vector<64x128xbf16>, vector<128x128xbf16>, vector<64x128xf32> -> vector<64x128xf32>
    %11 = arith.addf %0, %10 : vector<64x128xf32>
    %12 = vector.extract_strided_slice %2 {offsets = [1, 0, 0], sizes = [16, 8, 128], strides = [1, 1, 1]} : vector<18x8x128xbf16> to vector<16x8x128xbf16>
    %13 = vector.shape_cast %12 : vector<16x8x128xbf16> to vector<8x2x8x128xbf16>
    %14 = vector.extract_strided_slice %13 {offsets = [0, 0, 0, 0], sizes = [8, 1, 8, 128], strides = [1, 1, 1, 1]} : vector<8x2x8x128xbf16> to vector<8x1x8x128xbf16>
    %15 = vector.shape_cast %14 : vector<8x1x8x128xbf16> to vector<8x8x128xbf16>
    %16 = vector.shape_cast %15 : vector<8x8x128xbf16> to vector<64x128xbf16>
    %c3 = arith.constant 3 : index
    %c0_9 = arith.constant 0 : index
    %c0_10 = arith.constant 0 : index
    %c0_11 = arith.constant 0 : index
    %17 = vector.load %arg2[%c3, %c0_9, %c0_10, %c0_11] : memref<9x1x128x128xbf16, #tpu.memory_space<vmem>>, vector<1x1x128x128xbf16>
    %18 = vector.shape_cast %17 : vector<1x1x128x128xbf16> to vector<128x128xbf16>
    %cst_12 = arith.constant dense<0.000000e+00> : vector<64x128xf32>
    %19 = tpu.matmul %16, %18, %cst_12 {dimension_numbers = #tpu.dot_dimension_numbers<[1], [0], [0], [1], [0, 0, 1, 1], [], []>} : vector<64x128xbf16>, vector<128x128xbf16>, vector<64x128xf32> -> vector<64x128xf32>
    %20 = arith.addf %11, %19 : vector<64x128xf32>
    %21 = vector.extract_strided_slice %2 {offsets = [2, 0, 0], sizes = [16, 8, 128], strides = [1, 1, 1]} : vector<18x8x128xbf16> to vector<16x8x128xbf16>
    %22 = vector.shape_cast %21 : vector<16x8x128xbf16> to vector<8x2x8x128xbf16>
    %23 = vector.extract_strided_slice %22 {offsets = [0, 0, 0, 0], sizes = [8, 1, 8, 128], strides = [1, 1, 1, 1]} : vector<8x2x8x128xbf16> to vector<8x1x8x128xbf16>
    %24 = vector.shape_cast %23 : vector<8x1x8x128xbf16> to vector<8x8x128xbf16>
    %25 = vector.shape_cast %24 : vector<8x8x128xbf16> to vector<64x128xbf16>
    %c6 = arith.constant 6 : index
    %c0_13 = arith.constant 0 : index
    %c0_14 = arith.constant 0 : index
    %c0_15 = arith.constant 0 : index
    %26 = vector.load %arg2[%c6, %c0_13, %c0_14, %c0_15] : memref<9x1x128x128xbf16, #tpu.memory_space<vmem>>, vector<1x1x128x128xbf16>
    %27 = vector.shape_cast %26 : vector<1x1x128x128xbf16> to vector<128x128xbf16>
    %cst_16 = arith.constant dense<0.000000e+00> : vector<64x128xf32>
    %28 = tpu.matmul %25, %27, %cst_16 {dimension_numbers = #tpu.dot_dimension_numbers<[1], [0], [0], [1], [0, 0, 1, 1], [], []>} : vector<64x128xbf16>, vector<128x128xbf16>, vector<64x128xf32> -> vector<64x128xf32>
    %29 = arith.addf %20, %28 : vector<64x128xf32>
    %c0_17 = arith.constant 0 : index
    %c0_18 = arith.constant 0 : index
    %c1 = arith.constant 1 : index
    %c0_19 = arith.constant 0 : index
    %c0_20 = arith.constant 0 : index
    %30 = vector.load %arg1[%c0_17, %c0_18, %c1, %c0_19, %c0_20] : memref<1x18x2x9x128xbf16, #tpu.memory_space<vmem>>, vector<1x18x1x8x128xbf16>
    %31 = vector.shape_cast %30 : vector<1x18x1x8x128xbf16> to vector<18x8x128xbf16>
    %32 = vector.extract_strided_slice %31 {offsets = [0, 0, 0], sizes = [16, 8, 128], strides = [1, 1, 1]} : vector<18x8x128xbf16> to vector<16x8x128xbf16>
    %33 = vector.shape_cast %32 : vector<16x8x128xbf16> to vector<8x2x8x128xbf16>
    %34 = vector.extract_strided_slice %33 {offsets = [0, 0, 0, 0], sizes = [8, 1, 8, 128], strides = [1, 1, 1, 1]} : vector<8x2x8x128xbf16> to vector<8x1x8x128xbf16>
    %35 = vector.shape_cast %34 : vector<8x1x8x128xbf16> to vector<8x8x128xbf16>
    %36 = vector.shape_cast %35 : vector<8x8x128xbf16> to vector<64x128xbf16>
    %c1_21 = arith.constant 1 : index
    %c0_22 = arith.constant 0 : index
    %c0_23 = arith.constant 0 : index
    %c0_24 = arith.constant 0 : index
    %37 = vector.load %arg2[%c1_21, %c0_22, %c0_23, %c0_24] : memref<9x1x128x128xbf16, #tpu.memory_space<vmem>>, vector<1x1x128x128xbf16>
    %38 = vector.shape_cast %37 : vector<1x1x128x128xbf16> to vector<128x128xbf16>
    %cst_25 = arith.constant dense<0.000000e+00> : vector<64x128xf32>
    %39 = tpu.matmul %36, %38, %cst_25 {dimension_numbers = #tpu.dot_dimension_numbers<[1], [0], [0], [1], [0, 0, 1, 1], [], []>} : vector<64x128xbf16>, vector<128x128xbf16>, vector<64x128xf32> -> vector<64x128xf32>
    %40 = arith.addf %29, %39 : vector<64x128xf32>
    %41 = vector.extract_strided_slice %31 {offsets = [1, 0, 0], sizes = [16, 8, 128], strides = [1, 1, 1]} : vector<18x8x128xbf16> to vector<16x8x128xbf16>
    %42 = vector.shape_cast %41 : vector<16x8x128xbf16> to vector<8x2x8x128xbf16>
    %43 = vector.extract_strided_slice %42 {offsets = [0, 0, 0, 0], sizes = [8, 1, 8, 128], strides = [1, 1, 1, 1]} : vector<8x2x8x128xbf16> to vector<8x1x8x128xbf16>
    %44 = vector.shape_cast %43 : vector<8x1x8x128xbf16> to vector<8x8x128xbf16>
    %45 = vector.shape_cast %44 : vector<8x8x128xbf16> to vector<64x128xbf16>
    %c4 = arith.constant 4 : index
    %c0_26 = arith.constant 0 : index
    %c0_27 = arith.constant 0 : index
    %c0_28 = arith.constant 0 : index
    %46 = vector.load %arg2[%c4, %c0_26, %c0_27, %c0_28] : memref<9x1x128x128xbf16, #tpu.memory_space<vmem>>, vector<1x1x128x128xbf16>
    %47 = vector.shape_cast %46 : vector<1x1x128x128xbf16> to vector<128x128xbf16>
    %cst_29 = arith.constant dense<0.000000e+00> : vector<64x128xf32>
    %48 = tpu.matmul %45, %47, %cst_29 {dimension_numbers = #tpu.dot_dimension_numbers<[1], [0], [0], [1], [0, 0, 1, 1], [], []>} : vector<64x128xbf16>, vector<128x128xbf16>, vector<64x128xf32> -> vector<64x128xf32>
    %49 = arith.addf %40, %48 : vector<64x128xf32>
    %50 = vector.extract_strided_slice %31 {offsets = [2, 0, 0], sizes = [16, 8, 128], strides = [1, 1, 1]} : vector<18x8x128xbf16> to vector<16x8x128xbf16>
    %51 = vector.shape_cast %50 : vector<16x8x128xbf16> to vector<8x2x8x128xbf16>
    %52 = vector.extract_strided_slice %51 {offsets = [0, 0, 0, 0], sizes = [8, 1, 8, 128], strides = [1, 1, 1, 1]} : vector<8x2x8x128xbf16> to vector<8x1x8x128xbf16>
    %53 = vector.shape_cast %52 : vector<8x1x8x128xbf16> to vector<8x8x128xbf16>
    %54 = vector.shape_cast %53 : vector<8x8x128xbf16> to vector<64x128xbf16>
    %c7 = arith.constant 7 : index
    %c0_30 = arith.constant 0 : index
    %c0_31 = arith.constant 0 : index
    %c0_32 = arith.constant 0 : index
    %55 = vector.load %arg2[%c7, %c0_30, %c0_31, %c0_32] : memref<9x1x128x128xbf16, #tpu.memory_space<vmem>>, vector<1x1x128x128xbf16>
    %56 = vector.shape_cast %55 : vector<1x1x128x128xbf16> to vector<128x128xbf16>
    %cst_33 = arith.constant dense<0.000000e+00> : vector<64x128xf32>
    %57 = tpu.matmul %54, %56, %cst_33 {dimension_numbers = #tpu.dot_dimension_numbers<[1], [0], [0], [1], [0, 0, 1, 1], [], []>} : vector<64x128xbf16>, vector<128x128xbf16>, vector<64x128xf32> -> vector<64x128xf32>
    %58 = arith.addf %49, %57 : vector<64x128xf32>
    %c0_34 = arith.constant 0 : index
    %c0_35 = arith.constant 0 : index
    %c0_36 = arith.constant 0 : index
    %c1_37 = arith.constant 1 : index
    %c0_38 = arith.constant 0 : index
    %59 = vector.load %arg1[%c0_34, %c0_35, %c0_36, %c1_37, %c0_38] : memref<1x18x2x9x128xbf16, #tpu.memory_space<vmem>>, vector<1x18x1x8x128xbf16>
    %60 = vector.shape_cast %59 : vector<1x18x1x8x128xbf16> to vector<18x8x128xbf16>
    %61 = vector.extract_strided_slice %60 {offsets = [0, 0, 0], sizes = [16, 8, 128], strides = [1, 1, 1]} : vector<18x8x128xbf16> to vector<16x8x128xbf16>
    %62 = vector.shape_cast %61 : vector<16x8x128xbf16> to vector<8x2x8x128xbf16>
    %63 = vector.extract_strided_slice %62 {offsets = [0, 0, 0, 0], sizes = [8, 1, 8, 128], strides = [1, 1, 1, 1]} : vector<8x2x8x128xbf16> to vector<8x1x8x128xbf16>
    %64 = vector.shape_cast %63 : vector<8x1x8x128xbf16> to vector<8x8x128xbf16>
    %65 = vector.shape_cast %64 : vector<8x8x128xbf16> to vector<64x128xbf16>
    %c2 = arith.constant 2 : index
    %c0_39 = arith.constant 0 : index
    %c0_40 = arith.constant 0 : index
    %c0_41 = arith.constant 0 : index
    %66 = vector.load %arg2[%c2, %c0_39, %c0_40, %c0_41] : memref<9x1x128x128xbf16, #tpu.memory_space<vmem>>, vector<1x1x128x128xbf16>
    %67 = vector.shape_cast %66 : vector<1x1x128x128xbf16> to vector<128x128xbf16>
    %cst_42 = arith.constant dense<0.000000e+00> : vector<64x128xf32>
    %68 = tpu.matmul %65, %67, %cst_42 {dimension_numbers = #tpu.dot_dimension_numbers<[1], [0], [0], [1], [0, 0, 1, 1], [], []>} : vector<64x128xbf16>, vector<128x128xbf16>, vector<64x128xf32> -> vector<64x128xf32>
    %69 = arith.addf %58, %68 : vector<64x128xf32>
    %70 = vector.extract_strided_slice %60 {offsets = [1, 0, 0], sizes = [16, 8, 128], strides = [1, 1, 1]} : vector<18x8x128xbf16> to vector<16x8x128xbf16>
    %71 = vector.shape_cast %70 : vector<16x8x128xbf16> to vector<8x2x8x128xbf16>
    %72 = vector.extract_strided_slice %71 {offsets = [0, 0, 0, 0], sizes = [8, 1, 8, 128], strides = [1, 1, 1, 1]} : vector<8x2x8x128xbf16> to vector<8x1x8x128xbf16>
    %73 = vector.shape_cast %72 : vector<8x1x8x128xbf16> to vector<8x8x128xbf16>
    %74 = vector.shape_cast %73 : vector<8x8x128xbf16> to vector<64x128xbf16>
    %c5 = arith.constant 5 : index
    %c0_43 = arith.constant 0 : index
    %c0_44 = arith.constant 0 : index
    %c0_45 = arith.constant 0 : index
    %75 = vector.load %arg2[%c5, %c0_43, %c0_44, %c0_45] : memref<9x1x128x128xbf16, #tpu.memory_space<vmem>>, vector<1x1x128x128xbf16>
    %76 = vector.shape_cast %75 : vector<1x1x128x128xbf16> to vector<128x128xbf16>
    %cst_46 = arith.constant dense<0.000000e+00> : vector<64x128xf32>
    %77 = tpu.matmul %74, %76, %cst_46 {dimension_numbers = #tpu.dot_dimension_numbers<[1], [0], [0], [1], [0, 0, 1, 1], [], []>} : vector<64x128xbf16>, vector<128x128xbf16>, vector<64x128xf32> -> vector<64x128xf32>
    %78 = arith.addf %69, %77 : vector<64x128xf32>
    %79 = vector.extract_strided_slice %60 {offsets = [2, 0, 0], sizes = [16, 8, 128], strides = [1, 1, 1]} : vector<18x8x128xbf16> to vector<16x8x128xbf16>
    %80 = vector.shape_cast %79 : vector<16x8x128xbf16> to vector<8x2x8x128xbf16>
    %81 = vector.extract_strided_slice %80 {offsets = [0, 0, 0, 0], sizes = [8, 1, 8, 128], strides = [1, 1, 1, 1]} : vector<8x2x8x128xbf16> to vector<8x1x8x128xbf16>
    %82 = vector.shape_cast %81 : vector<8x1x8x128xbf16> to vector<8x8x128xbf16>
    %83 = vector.shape_cast %82 : vector<8x8x128xbf16> to vector<64x128xbf16>
    %c8 = arith.constant 8 : index
    %c0_47 = arith.constant 0 : index
    %c0_48 = arith.constant 0 : index
    %c0_49 = arith.constant 0 : index
    %84 = vector.load %arg2[%c8, %c0_47, %c0_48, %c0_49] : memref<9x1x128x128xbf16, #tpu.memory_space<vmem>>, vector<1x1x128x128xbf16>
    %85 = vector.shape_cast %84 : vector<1x1x128x128xbf16> to vector<128x128xbf16>
    %cst_50 = arith.constant dense<0.000000e+00> : vector<64x128xf32>
    %86 = tpu.matmul %83, %85, %cst_50 {dimension_numbers = #tpu.dot_dimension_numbers<[1], [0], [0], [1], [0, 0, 1, 1], [], []>} : vector<64x128xbf16>, vector<128x128xbf16>, vector<64x128xf32> -> vector<64x128xf32>
    %87 = arith.addf %78, %86 : vector<64x128xf32>
    %88 = arith.truncf %87 : vector<64x128xf32> to vector<64x128xbf16>
    %c0_51 = arith.constant 0 : index
    %c0_52 = arith.constant 0 : index
    %89 = vector.load %arg3[%c0_51, %c0_52] : memref<64x128xbf16, #tpu.memory_space<vmem>>, vector<64x128xbf16>
    tpu.vector_store %arg3[%c0_51, %c0_52], %88 {strides = array<i32>} : memref<64x128xbf16, #tpu.memory_space<vmem>>, vector<64x128xbf16>,
    %cst_53 = arith.constant dense<0.000000e+00> : vector<128xf32>
    %90 = vector.multi_reduction <add>, %87, %cst_53 [0] : vector<64x128xf32> to vector<128xf32>
    %91 = vector.shape_cast %90 : vector<128xf32> to vector<1x128xf32>
    %92 = arith.mulf %87, %87 : vector<64x128xf32>
    %cst_54 = arith.constant dense<0.000000e+00> : vector<128xf32>
    %93 = vector.multi_reduction <add>, %92, %cst_54 [0] : vector<64x128xf32> to vector<128xf32>
    %94 = vector.shape_cast %93 : vector<128xf32> to vector<1x128xf32>
    %95 = tpu.concatenate %91, %94 in 0 : vector<1x128xf32>, vector<1x128xf32> -> vector<2x128xf32>
    %c0_55 = arith.constant 0 : index
    %c0_56 = arith.constant 0 : index
    %c0_57 = arith.constant 0 : index
    %96 = vector.load %arg4[%c0_55, %c0_56, %c0_57] : memref<1x2x128xf32, #tpu.memory_space<vmem>>, vector<1x2x128xf32>
    %97 = vector.shape_cast %96 : vector<1x2x128xf32> to vector<2x128xf32>
    %98 = vector.shape_cast %95 : vector<2x128xf32> to vector<1x2x128xf32>
    tpu.vector_store %arg4[%c0_55, %c0_56, %c0_57], %98 {strides = array<i32>} : memref<1x2x128xf32, #tpu.memory_space<vmem>>, vector<1x2x128xf32>,
    return
  }
  func.func @transform_0(%arg0: i32) -> (i32, i32, i32, i32, i32) {
    %c0_i32 = arith.constant 0 : i32
    %c0_i32_0 = arith.constant 0 : i32
    %c0_i32_1 = arith.constant 0 : i32
    %c0_i32_2 = arith.constant 0 : i32
    %c0_i32_3 = arith.constant 0 : i32
    return %arg0, %c0_i32, %c0_i32_0, %c0_i32_1, %c0_i32_2 : i32, i32, i32, i32, i32
  }
  func.func @transform_1(%arg0: i32) -> (i32, i32, i32, i32) {
    %c0_i32 = arith.constant 0 : i32
    %c0_i32_0 = arith.constant 0 : i32
    %c0_i32_1 = arith.constant 0 : i32
    %c0_i32_2 = arith.constant 0 : i32
    %c0_i32_3 = arith.constant 0 : i32
    return %c0_i32, %c0_i32_0, %c0_i32_1, %c0_i32_2 : i32, i32, i32, i32
  }
  func.func @transform_2(%arg0: i32) -> (i32, i32) {
    %c0_i32 = arith.constant 0 : i32
    %c0_i32_0 = arith.constant 0 : i32
    return %arg0, %c0_i32 : i32, i32
  }
  func.func @transform_3(%arg0: i32) -> (i32, i32, i32) {
    %c0_i32 = arith.constant 0 : i32
    %c0_i32_0 = arith.constant 0 : i32
    %c0_i32_1 = arith.constant 0 : i32
    return %arg0, %c0_i32, %c0_i32_0 : i32, i32, i32
  }
}

module attributes {stable_mosaic.version = 11 : i64} {
  func.func @_tail_kernel(%arg0: i32, %arg1: memref<128x128xbf16, #tpu.memory_space<vmem>>, %arg2: memref<1x128xf32, #tpu.memory_space<vmem>>, %arg3: memref<1x128xf32, #tpu.memory_space<vmem>>, %arg4: memref<128x128xbf16, #tpu.memory_space<vmem>>, %arg5: memref<128x128xbf16, #tpu.memory_space<vmem>>, %arg6: memref<128x128xbf16, #tpu.memory_space<vmem>>, %arg7: memref<128x128xbf16, #tpu.memory_space<vmem>>, %arg8: memref<128x128xbf16, #tpu.memory_space<vmem>>, %arg9: memref<1x2x128xf32, #tpu.memory_space<vmem>>, %arg10: memref<1x2x128xf32, #tpu.memory_space<vmem>>) attributes {dimension_semantics = [#tpu.dimension_semantics<parallel>], iteration_bounds = array<i64: 1>, scalar_prefetch = 0 : i64, scratch_operands = 0 : i64, tpu.core_type = #tpu.core_type<tc>, window_params = [{transform_indices = @transform_0, window_bounds = array<i64: 128, 128>}, {pipeline_mode = #tpu.pipeline_mode<synchronous>, transform_indices = @transform_1, window_bounds = array<i64: 1, 128>}, {pipeline_mode = #tpu.pipeline_mode<synchronous>, transform_indices = @transform_2, window_bounds = array<i64: 1, 128>}, {transform_indices = @transform_3, window_bounds = array<i64: 128, 128>}, {pipeline_mode = #tpu.pipeline_mode<synchronous>, transform_indices = @transform_4, window_bounds = array<i64: 128, 128>}, {pipeline_mode = #tpu.pipeline_mode<synchronous>, transform_indices = @transform_5, window_bounds = array<i64: 128, 128>}, {transform_indices = @transform_6, window_bounds = array<i64: 128, 128>}, {transform_indices = @transform_7, window_bounds = array<i64: 128, 128>}, {transform_indices = @transform_8, window_bounds = array<i64: 1, 2, 128>}, {transform_indices = @transform_9, window_bounds = array<i64: 1, 2, 128>}]} {
    %c128_i32 = arith.constant 128 : i32
    %0 = arith.muli %arg0, %c128_i32 : i32
    %1 = tpu.iota {dimensions = array<i32: 0>} : vector<128x1xi32>
    %2 = vector.broadcast %0 : i32 to vector<128x1xi32>
    %3 = arith.addi %2, %1 : vector<128x1xi32>
    %c128_i32_0 = arith.constant 128 : i32
    %4 = vector.broadcast %c128_i32_0 : i32 to vector<128x1xi32>
    %5 = arith.cmpi slt, %3, %4 : vector<128x1xi32>
    %c0 = arith.constant 0 : index
    %c0_1 = arith.constant 0 : index
    %6 = vector.load %arg1[%c0, %c0_1] : memref<128x128xbf16, #tpu.memory_space<vmem>>, vector<128x128xbf16>
    %7 = arith.extf %6 : vector<128x128xbf16> to vector<128x128xf32>
    %c0_2 = arith.constant 0 : index
    %c0_3 = arith.constant 0 : index
    %8 = vector.load %arg2[%c0_2, %c0_3] : memref<1x128xf32, #tpu.memory_space<vmem>>, vector<1x128xf32>
    %9 = vector.broadcast %8 : vector<1x128xf32> to vector<128x128xf32>
    %10 = arith.mulf %7, %9 : vector<128x128xf32>
    %c0_4 = arith.constant 0 : index
    %c0_5 = arith.constant 0 : index
    %11 = vector.load %arg3[%c0_4, %c0_5] : memref<1x128xf32, #tpu.memory_space<vmem>>, vector<1x128xf32>
    %12 = vector.broadcast %11 : vector<1x128xf32> to vector<128x128xf32>
    %13 = arith.addf %10, %12 : vector<128x128xf32>
    %cst = arith.constant 0.000000e+00 : f32
    %14 = vector.broadcast %cst : f32 to vector<128x128xf32>
    %15 = arith.maximumf %13, %14 : vector<128x128xf32>
    %cst_6 = arith.constant 0.000000e+00 : f32
    %16 = vector.shape_cast %5 : vector<128x1xi1> to vector<128x1xi1>
    %17 = vector.broadcast %16 : vector<128x1xi1> to vector<128x128xi1>
    %18 = vector.broadcast %cst_6 : f32 to vector<128x128xf32>
    %19 = arith.select %17, %15, %18 : vector<128x128xi1>, vector<128x128xf32>
    %20 = arith.truncf %19 : vector<128x128xf32> to vector<128x128xbf16>
    %c0_7 = arith.constant 0 : index
    %c0_8 = arith.constant 0 : index
    %21 = vector.load %arg5[%c0_7, %c0_8] : memref<128x128xbf16, #tpu.memory_space<vmem>>, vector<128x128xbf16>
    %cst_9 = arith.constant dense<0.000000e+00> : vector<128x128xf32>
    %22 = tpu.matmul %20, %21, %cst_9 {dimension_numbers = #tpu.dot_dimension_numbers<[1], [0], [0], [1], [0, 0, 1, 1], [], []>} : vector<128x128xbf16>, vector<128x128xbf16>, vector<128x128xf32> -> vector<128x128xf32>
    %c0_10 = arith.constant 0 : index
    %c0_11 = arith.constant 0 : index
    %23 = vector.load %arg4[%c0_10, %c0_11] : memref<128x128xbf16, #tpu.memory_space<vmem>>, vector<128x128xbf16>
    %c0_12 = arith.constant 0 : index
    %c0_13 = arith.constant 0 : index
    %24 = vector.load %arg6[%c0_12, %c0_13] : memref<128x128xbf16, #tpu.memory_space<vmem>>, vector<128x128xbf16>
    %cst_14 = arith.constant dense<0.000000e+00> : vector<128x128xf32>
    %25 = tpu.matmul %23, %24, %cst_14 {dimension_numbers = #tpu.dot_dimension_numbers<[1], [0], [0], [1], [0, 0, 1, 1], [], []>} : vector<128x128xbf16>, vector<128x128xbf16>, vector<128x128xf32> -> vector<128x128xf32>
    %26 = arith.truncf %22 : vector<128x128xf32> to vector<128x128xbf16>
    %c0_15 = arith.constant 0 : index
    %c0_16 = arith.constant 0 : index
    %27 = vector.load %arg7[%c0_15, %c0_16] : memref<128x128xbf16, #tpu.memory_space<vmem>>, vector<128x128xbf16>
    tpu.vector_store %arg7[%c0_15, %c0_16], %26 {strides = array<i32>} : memref<128x128xbf16, #tpu.memory_space<vmem>>, vector<128x128xbf16>,
    %28 = arith.truncf %25 : vector<128x128xf32> to vector<128x128xbf16>
    %c0_17 = arith.constant 0 : index
    %c0_18 = arith.constant 0 : index
    %29 = vector.load %arg8[%c0_17, %c0_18] : memref<128x128xbf16, #tpu.memory_space<vmem>>, vector<128x128xbf16>
    tpu.vector_store %arg8[%c0_17, %c0_18], %28 {strides = array<i32>} : memref<128x128xbf16, #tpu.memory_space<vmem>>, vector<128x128xbf16>,
    %cst_19 = arith.constant dense<0.000000e+00> : vector<128xf32>
    %30 = vector.multi_reduction <add>, %22, %cst_19 [0] : vector<128x128xf32> to vector<128xf32>
    %31 = vector.shape_cast %30 : vector<128xf32> to vector<1x128xf32>
    %32 = arith.mulf %22, %22 : vector<128x128xf32>
    %cst_20 = arith.constant dense<0.000000e+00> : vector<128xf32>
    %33 = vector.multi_reduction <add>, %32, %cst_20 [0] : vector<128x128xf32> to vector<128xf32>
    %34 = vector.shape_cast %33 : vector<128xf32> to vector<1x128xf32>
    %35 = tpu.concatenate %31, %34 in 0 : vector<1x128xf32>, vector<1x128xf32> -> vector<2x128xf32>
    %c0_21 = arith.constant 0 : index
    %c0_22 = arith.constant 0 : index
    %c0_23 = arith.constant 0 : index
    %36 = vector.load %arg9[%c0_21, %c0_22, %c0_23] : memref<1x2x128xf32, #tpu.memory_space<vmem>>, vector<1x2x128xf32>
    %37 = vector.shape_cast %36 : vector<1x2x128xf32> to vector<2x128xf32>
    %38 = vector.shape_cast %35 : vector<2x128xf32> to vector<1x2x128xf32>
    tpu.vector_store %arg9[%c0_21, %c0_22, %c0_23], %38 {strides = array<i32>} : memref<1x2x128xf32, #tpu.memory_space<vmem>>, vector<1x2x128xf32>,
    %cst_24 = arith.constant dense<0.000000e+00> : vector<128xf32>
    %39 = vector.multi_reduction <add>, %25, %cst_24 [0] : vector<128x128xf32> to vector<128xf32>
    %40 = vector.shape_cast %39 : vector<128xf32> to vector<1x128xf32>
    %41 = arith.mulf %25, %25 : vector<128x128xf32>
    %cst_25 = arith.constant dense<0.000000e+00> : vector<128xf32>
    %42 = vector.multi_reduction <add>, %41, %cst_25 [0] : vector<128x128xf32> to vector<128xf32>
    %43 = vector.shape_cast %42 : vector<128xf32> to vector<1x128xf32>
    %44 = tpu.concatenate %40, %43 in 0 : vector<1x128xf32>, vector<1x128xf32> -> vector<2x128xf32>
    %c0_26 = arith.constant 0 : index
    %c0_27 = arith.constant 0 : index
    %c0_28 = arith.constant 0 : index
    %45 = vector.load %arg10[%c0_26, %c0_27, %c0_28] : memref<1x2x128xf32, #tpu.memory_space<vmem>>, vector<1x2x128xf32>
    %46 = vector.shape_cast %45 : vector<1x2x128xf32> to vector<2x128xf32>
    %47 = vector.shape_cast %44 : vector<2x128xf32> to vector<1x2x128xf32>
    tpu.vector_store %arg10[%c0_26, %c0_27, %c0_28], %47 {strides = array<i32>} : memref<1x2x128xf32, #tpu.memory_space<vmem>>, vector<1x2x128xf32>,
    return
  }
  func.func @transform_0(%arg0: i32) -> (i32, i32) {
    %c0_i32 = arith.constant 0 : i32
    %c0_i32_0 = arith.constant 0 : i32
    return %arg0, %c0_i32 : i32, i32
  }
  func.func @transform_1(%arg0: i32) -> (i32, i32) {
    %c0_i32 = arith.constant 0 : i32
    %c0_i32_0 = arith.constant 0 : i32
    %c0_i32_1 = arith.constant 0 : i32
    return %c0_i32, %c0_i32_0 : i32, i32
  }
  func.func @transform_2(%arg0: i32) -> (i32, i32) {
    %c0_i32 = arith.constant 0 : i32
    %c0_i32_0 = arith.constant 0 : i32
    %c0_i32_1 = arith.constant 0 : i32
    return %c0_i32, %c0_i32_0 : i32, i32
  }
  func.func @transform_3(%arg0: i32) -> (i32, i32) {
    %c0_i32 = arith.constant 0 : i32
    %c0_i32_0 = arith.constant 0 : i32
    return %arg0, %c0_i32 : i32, i32
  }
  func.func @transform_4(%arg0: i32) -> (i32, i32) {
    %c0_i32 = arith.constant 0 : i32
    %c0_i32_0 = arith.constant 0 : i32
    %c0_i32_1 = arith.constant 0 : i32
    return %c0_i32, %c0_i32_0 : i32, i32
  }
  func.func @transform_5(%arg0: i32) -> (i32, i32) {
    %c0_i32 = arith.constant 0 : i32
    %c0_i32_0 = arith.constant 0 : i32
    %c0_i32_1 = arith.constant 0 : i32
    return %c0_i32, %c0_i32_0 : i32, i32
  }
  func.func @transform_6(%arg0: i32) -> (i32, i32) {
    %c0_i32 = arith.constant 0 : i32
    %c0_i32_0 = arith.constant 0 : i32
    return %arg0, %c0_i32 : i32, i32
  }
  func.func @transform_7(%arg0: i32) -> (i32, i32) {
    %c0_i32 = arith.constant 0 : i32
    %c0_i32_0 = arith.constant 0 : i32
    return %arg0, %c0_i32 : i32, i32
  }
  func.func @transform_8(%arg0: i32) -> (i32, i32, i32) {
    %c0_i32 = arith.constant 0 : i32
    %c0_i32_0 = arith.constant 0 : i32
    %c0_i32_1 = arith.constant 0 : i32
    return %arg0, %c0_i32, %c0_i32_0 : i32, i32, i32
  }
  func.func @transform_9(%arg0: i32) -> (i32, i32, i32) {
    %c0_i32 = arith.constant 0 : i32
    %c0_i32_0 = arith.constant 0 : i32
    %c0_i32_1 = arith.constant 0 : i32
    return %arg0, %c0_i32, %c0_i32_0 : i32, i32, i32
  }
}

module attributes {stable_mosaic.version = 11 : i64} {
  func.func @_residual_bn_relu_kernel(%arg0: i32, %arg1: memref<128x128xbf16, #tpu.memory_space<vmem>>, %arg2: memref<1x128xf32, #tpu.memory_space<vmem>>, %arg3: memref<1x128xf32, #tpu.memory_space<vmem>>, %arg4: memref<128x128xbf16, #tpu.memory_space<vmem>>, %arg5: memref<1x128xf32, #tpu.memory_space<vmem>>, %arg6: memref<1x128xf32, #tpu.memory_space<vmem>>, %arg7: memref<128x128xf32, #tpu.memory_space<vmem>>) attributes {dimension_semantics = [#tpu.dimension_semantics<parallel>], iteration_bounds = array<i64: 1>, scalar_prefetch = 0 : i64, scratch_operands = 0 : i64, tpu.core_type = #tpu.core_type<tc>, window_params = [{transform_indices = @transform_0, window_bounds = array<i64: 128, 128>}, {pipeline_mode = #tpu.pipeline_mode<synchronous>, transform_indices = @transform_1, window_bounds = array<i64: 1, 128>}, {pipeline_mode = #tpu.pipeline_mode<synchronous>, transform_indices = @transform_2, window_bounds = array<i64: 1, 128>}, {transform_indices = @transform_3, window_bounds = array<i64: 128, 128>}, {pipeline_mode = #tpu.pipeline_mode<synchronous>, transform_indices = @transform_4, window_bounds = array<i64: 1, 128>}, {pipeline_mode = #tpu.pipeline_mode<synchronous>, transform_indices = @transform_5, window_bounds = array<i64: 1, 128>}, {transform_indices = @transform_6, window_bounds = array<i64: 128, 128>}]} {
    %c0 = arith.constant 0 : index
    %c0_0 = arith.constant 0 : index
    %0 = vector.load %arg1[%c0, %c0_0] : memref<128x128xbf16, #tpu.memory_space<vmem>>, vector<128x128xbf16>
    %1 = arith.extf %0 : vector<128x128xbf16> to vector<128x128xf32>
    %c0_1 = arith.constant 0 : index
    %c0_2 = arith.constant 0 : index
    %2 = vector.load %arg2[%c0_1, %c0_2] : memref<1x128xf32, #tpu.memory_space<vmem>>, vector<1x128xf32>
    %3 = vector.broadcast %2 : vector<1x128xf32> to vector<128x128xf32>
    %4 = arith.mulf %1, %3 : vector<128x128xf32>
    %c0_3 = arith.constant 0 : index
    %c0_4 = arith.constant 0 : index
    %5 = vector.load %arg3[%c0_3, %c0_4] : memref<1x128xf32, #tpu.memory_space<vmem>>, vector<1x128xf32>
    %6 = vector.broadcast %5 : vector<1x128xf32> to vector<128x128xf32>
    %7 = arith.addf %4, %6 : vector<128x128xf32>
    %c0_5 = arith.constant 0 : index
    %c0_6 = arith.constant 0 : index
    %8 = vector.load %arg4[%c0_5, %c0_6] : memref<128x128xbf16, #tpu.memory_space<vmem>>, vector<128x128xbf16>
    %9 = arith.extf %8 : vector<128x128xbf16> to vector<128x128xf32>
    %c0_7 = arith.constant 0 : index
    %c0_8 = arith.constant 0 : index
    %10 = vector.load %arg5[%c0_7, %c0_8] : memref<1x128xf32, #tpu.memory_space<vmem>>, vector<1x128xf32>
    %11 = vector.broadcast %10 : vector<1x128xf32> to vector<128x128xf32>
    %12 = arith.mulf %9, %11 : vector<128x128xf32>
    %13 = arith.addf %7, %12 : vector<128x128xf32>
    %c0_9 = arith.constant 0 : index
    %c0_10 = arith.constant 0 : index
    %14 = vector.load %arg6[%c0_9, %c0_10] : memref<1x128xf32, #tpu.memory_space<vmem>>, vector<1x128xf32>
    %15 = vector.broadcast %14 : vector<1x128xf32> to vector<128x128xf32>
    %16 = arith.addf %13, %15 : vector<128x128xf32>
    %cst = arith.constant 0.000000e+00 : f32
    %17 = vector.broadcast %cst : f32 to vector<128x128xf32>
    %18 = arith.maximumf %16, %17 : vector<128x128xf32>
    %c0_11 = arith.constant 0 : index
    %c0_12 = arith.constant 0 : index
    %19 = vector.load %arg7[%c0_11, %c0_12] : memref<128x128xf32, #tpu.memory_space<vmem>>, vector<128x128xf32>
    tpu.vector_store %arg7[%c0_11, %c0_12], %18 {strides = array<i32>} : memref<128x128xf32, #tpu.memory_space<vmem>>, vector<128x128xf32>,
    return
  }
  func.func @transform_0(%arg0: i32) -> (i32, i32) {
    %c0_i32 = arith.constant 0 : i32
    %c0_i32_0 = arith.constant 0 : i32
    return %arg0, %c0_i32 : i32, i32
  }
  func.func @transform_1(%arg0: i32) -> (i32, i32) {
    %c0_i32 = arith.constant 0 : i32
    %c0_i32_0 = arith.constant 0 : i32
    %c0_i32_1 = arith.constant 0 : i32
    return %c0_i32, %c0_i32_0 : i32, i32
  }
  func.func @transform_2(%arg0: i32) -> (i32, i32) {
    %c0_i32 = arith.constant 0 : i32
    %c0_i32_0 = arith.constant 0 : i32
    %c0_i32_1 = arith.constant 0 : i32
    return %c0_i32, %c0_i32_0 : i32, i32
  }
  func.func @transform_3(%arg0: i32) -> (i32, i32) {
    %c0_i32 = arith.constant 0 : i32
    %c0_i32_0 = arith.constant 0 : i32
    return %arg0, %c0_i32 : i32, i32
  }
  func.func @transform_4(%arg0: i32) -> (i32, i32) {
    %c0_i32 = arith.constant 0 : i32
    %c0_i32_0 = arith.constant 0 : i32
    %c0_i32_1 = arith.constant 0 : i32
    return %c0_i32, %c0_i32_0 : i32, i32
  }
  func.func @transform_5(%arg0: i32) -> (i32, i32) {
    %c0_i32 = arith.constant 0 : i32
    %c0_i32_0 = arith.constant 0 : i32
    %c0_i32_1 = arith.constant 0 : i32
    return %c0_i32, %c0_i32_0 : i32, i32
  }
  func.func @transform_6(%arg0: i32) -> (i32, i32) {
    %c0_i32 = arith.constant 0 : i32
    %c0_i32_0 = arith.constant 0 : i32
    return %arg0, %c0_i32 : i32, i32
  }
}

</mosaic_0001>

<bundles_post_ra>
// kernel: resnext_block_forward.6
= control target key start
LH: loop header
LB: loop body
LE: loop exit
PB: predicated region body
PF: predicated region fallthrough
CT: control target
= control target key end

     0   :  { %s1502_s0 = inlined_call_operand.vmem [shape: bf16[512,128], index: 0, kind: input, shape index: {}]   ;;  %s1503_s1 = inlined_call_operand.vmem [shape: f32[1,128], index: 1, kind: input, shape index: {}]   ;;  %s1504_s2 = inlined_call_operand.vmem [shape: f32[1,128], index: 2, kind: input, shape index: {}]   ;;  %s1505_s3 = inlined_call_operand.vmem [shape: bf16[512,128], index: 3, kind: output, shape index: {}]  }
   0x1   :  { %v803_v0 = vld [vmem:[%s1502_s0] sm:$0xff]   ;;  %v1090_v4 = vld [vmem:[%s1502_s0 + $0x8] sm:$0xff]   ;;  %v1091_v5 = vld [vmem:[%s1502_s0 + $0x10] sm:$0xff]  }
   0x2   :  { %v1178_v1 = vld [vmem:[%s1503_s1] ss:$0 sm:$0xff]  ;;  %v804_v2 = vunpack.c.l.bf16 %v803_v0  ;;  %v805_v3 = vunpack.c.h.bf16 %v803_v0  ;;  %v1092_v6 = vld [vmem:[%s1502_s0 + $0x18] sm:$0xff]   ;;  %v808_v8 = vunpack.c.l.bf16 %v1090_v4  ;;  %v809_v9 = vunpack.c.h.bf16 %v1090_v4  ;;  %v1094_v33 = vld [vmem:[%s1502_s0 + $0x28] sm:$0xff]  }
   0x3   :  { %v1192_v7 = vld [vmem:[%s1504_s2] ss:$0 sm:$0xff]  ;;  %v812_v10 = vunpack.c.l.bf16 %v1091_v5  ;;  %v813_v11 = vunpack.c.h.bf16 %v1091_v5  ;;  %v816_v14 = vunpack.c.l.bf16 %v1092_v6  ;;  %v817_v15 = vunpack.c.h.bf16 %v1092_v6  ;;  %v1095_v38 = vld [vmem:[%s1502_s0 + $0x30] sm:$0xff]   ;;  %v1096_v43 = vld [vmem:[%s1502_s0 + $0x38] sm:$0xff]  }
   0x4   :  { %v149_v12 = vmul.f32 %v804_v2, %v1178_v1  ;;  %v150_v13 = vmul.f32 %v805_v3, %v1178_v1  ;;  %v151_v16 = vmul.f32 %v808_v8, %v1178_v1  ;;  %v152_v17 = vmul.f32 %v809_v9, %v1178_v1  ;;  %v1093_v28 = vld [vmem:[%s1502_s0 + $0x20] sm:$0xff]  }
   0x5   :  { %v153_v18 = vmul.f32 %v812_v10, %v1178_v1  ;;  %v154_v19 = vmul.f32 %v813_v11, %v1178_v1  ;;  %v155_v22 = vmul.f32 %v816_v14, %v1178_v1  ;;  %v156_v23 = vmul.f32 %v817_v15, %v1178_v1  ;;  %v1097_v0 = vld [vmem:[%s1502_s0 + $0x40] sm:$0xff]   ;;  %v1098_v11 = vld [vmem:[%s1502_s0 + $0x48] sm:$0xff]  }
   0x6   :  { %v220_v20 = vadd.f32 %v1192_v7, %v149_v12  ;;  %v221_v21 = vadd.f32 %v1192_v7, %v150_v13  ;;  %v222_v24 = vadd.f32 %v1192_v7, %v151_v16  ;;  %v223_v25 = vadd.f32 %v1192_v7, %v152_v17  ;;  %v1099_v16 = vld [vmem:[%s1502_s0 + $0x50] sm:$0xff]  }
   0x7   :  { %v224_v26 = vadd.f32 %v1192_v7, %v153_v18  ;;  %v225_v27 = vadd.f32 %v1192_v7, %v154_v19  ;;  %v226_v31 = vadd.f32 %v1192_v7, %v155_v22  ;;  %v227_v32 = vadd.f32 %v1192_v7, %v156_v23 }
   0x8   :  { %v284_v29 = vmax.f32 %v220_v20, 0.0  ;;  %v285_v30 = vmax.f32 %v221_v21, 0.0  ;;  %v286_v34 = vmax.f32 %v222_v24, 0.0  ;;  %v287_v35 = vmax.f32 %v223_v25, 0.0  ;;  %v1100_v25 = vld [vmem:[%s1502_s0 + $0x58] sm:$0xff]  }
   0x9   :  { %v288_v36 = vmax.f32 %v224_v26, 0.0  ;;  %v289_v37 = vmax.f32 %v225_v27, 0.0  ;;  %v290_v40 = vmax.f32 %v226_v31, 0.0  ;;  %v291_v41 = vmax.f32 %v227_v32, 0.0 }
   0xa   :  { %v933_v39 = vpack.c.bf16 %v285_v30, %v284_v29  ;;  %v820_v42 = vunpack.c.l.bf16 %v1093_v28  ;;  %v938_v44 = vpack.c.bf16 %v287_v35, %v286_v34  ;;  %v821_v46 = vunpack.c.h.bf16 %v1093_v28 }
   0xb   :  { %v943_v45 = vpack.c.bf16 %v289_v37, %v288_v36  ;;  %v824_v47 = vunpack.c.l.bf16 %v1094_v33  ;;  %v948_v48 = vpack.c.bf16 %v291_v41, %v290_v40  ;;  %v825_v50 = vunpack.c.h.bf16 %v1094_v33 }
   0xc   :  { %934 = vst [vmem:[%s1505_s3] sm:$0xff] %v933_v39   ;;  %v157_v49 = vmul.f32 %v820_v42, %v1178_v1  ;;  %v828_v51 = vunpack.c.l.bf16 %v1095_v38  ;;  %1121 = vst [vmem:[%s1505_s3 + $0x8] sm:$0xff] %v938_v44   ;;  %v158_v52 = vmul.f32 %v821_v46, %v1178_v1  ;;  %v829_v54 = vunpack.c.h.bf16 %v1095_v38  ;;  %v1101_v38 = vld [vmem:[%s1502_s0 + $0x60] sm:$0xff]  }
   0xd   :  { %1122 = vst [vmem:[%s1505_s3 + $0x10] sm:$0xff] %v943_v45   ;;  %v159_v53 = vmul.f32 %v824_v47, %v1178_v1  ;;  %v832_v55 = vunpack.c.l.bf16 %v1096_v43  ;;  %1123 = vst [vmem:[%s1505_s3 + $0x18] sm:$0xff] %v948_v48   ;;  %v160_v57 = vmul.f32 %v825_v50, %v1178_v1  ;;  %v833_v59 = vunpack.c.h.bf16 %v1096_v43 }
   0xe   :  { %v228_v56 = vadd.f32 %v1192_v7, %v157_v49  ;;  %v161_v58 = vmul.f32 %v828_v51, %v1178_v1  ;;  %v229_v60 = vadd.f32 %v1192_v7, %v158_v52  ;;  %v162_v62 = vmul.f32 %v829_v54, %v1178_v1  ;;  %v1102_v51 = vld [vmem:[%s1502_s0 + $0x68] sm:$0xff]  }
   0xf   :  { %v230_v61 = vadd.f32 %v1192_v7, %v159_v53  ;;  %v163_v63 = vmul.f32 %v832_v55, %v1178_v1  ;;  %v231_v3 = vadd.f32 %v1192_v7, %v160_v57  ;;  %v164_v5 = vmul.f32 %v833_v59, %v1178_v1 }
  0x10   :  { %v292_v2 = vmax.f32 %v228_v56, 0.0  ;;  %v232_v4 = vadd.f32 %v1192_v7, %v161_v58  ;;  %v293_v6 = vmax.f32 %v229_v60, 0.0  ;;  %v233_v9 = vadd.f32 %v1192_v7, %v162_v62  ;;  %v1103_v60 = vld [vmem:[%s1502_s0 + $0x70] sm:$0xff]  }
  0x11   :  { %v294_v8 = vmax.f32 %v230_v61, 0.0  ;;  %v234_v10 = vadd.f32 %v1192_v7, %v163_v63  ;;  %v295_v12 = vmax.f32 %v231_v3, 0.0  ;;  %v235_v14 = vadd.f32 %v1192_v7, %v164_v5 }
  0x12   :  { %v296_v13 = vmax.f32 %v232_v4, 0.0  ;;  %v836_v15 = vunpack.c.l.bf16 %v1097_v0  ;;  %v953_v17 = vpack.c.bf16 %v293_v6, %v292_v2  ;;  %v297_v18 = vmax.f32 %v233_v9, 0.0  ;;  %v1104_v2 = vld [vmem:[%s1502_s0 + $0x78] sm:$0xff]  }
  0x13   :  { %v298_v19 = vmax.f32 %v234_v10, 0.0  ;;  %v837_v20 = vunpack.c.h.bf16 %v1097_v0  ;;  %v958_v21 = vpack.c.bf16 %v295_v12, %v294_v8  ;;  %v299_v22 = vmax.f32 %v235_v14, 0.0  ;;  %v1105_v12 = vld [vmem:[%s1502_s0 + $0x80] sm:$0xff]  }
  0x14   :  { %v165_v23 = vmul.f32 %v836_v15, %v1178_v1  ;;  %v840_v24 = vunpack.c.l.bf16 %v1098_v11  ;;  %1124 = vst [vmem:[%s1505_s3 + $0x20] sm:$0xff] %v953_v17   ;;  %v963_v26 = vpack.c.bf16 %v297_v18, %v296_v13  ;;  %v841_v28 = vunpack.c.h.bf16 %v1098_v11 }
  0x15   :  { %v166_v27 = vmul.f32 %v837_v20, %v1178_v1  ;;  %v844_v29 = vunpack.c.l.bf16 %v1099_v16  ;;  %1125 = vst [vmem:[%s1505_s3 + $0x28] sm:$0xff] %v958_v21   ;;  %v968_v30 = vpack.c.bf16 %v299_v22, %v298_v19  ;;  %v845_v33 = vunpack.c.h.bf16 %v1099_v16 }
  0x16   :  { %v236_v31 = vadd.f32 %v1192_v7, %v165_v23  ;;  %v167_v32 = vmul.f32 %v840_v24, %v1178_v1  ;;  %1126 = vst [vmem:[%s1505_s3 + $0x30] sm:$0xff] %v963_v26   ;;  %v168_v35 = vmul.f32 %v841_v28, %v1178_v1  ;;  %v848_v37 = vunpack.c.l.bf16 %v1100_v25 }
  0x17   :  { %v237_v34 = vadd.f32 %v1192_v7, %v166_v27  ;;  %v169_v36 = vmul.f32 %v844_v29, %v1178_v1  ;;  %1127 = vst [vmem:[%s1505_s3 + $0x38] sm:$0xff] %v968_v30   ;;  %v170_v41 = vmul.f32 %v845_v33, %v1178_v1  ;;  %v849_v42 = vunpack.c.h.bf16 %v1100_v25  ;;  %v1106_v29 = vld [vmem:[%s1502_s0 + $0x88] sm:$0xff]  }
  0x18   :  { %v300_v39 = vmax.f32 %v236_v31, 0.0  ;;  %v238_v40 = vadd.f32 %v1192_v7, %v167_v32  ;;  %v239_v44 = vadd.f32 %v1192_v7, %v168_v35  ;;  %v171_v46 = vmul.f32 %v848_v37, %v1178_v1 }
  0x19   :  { %v301_v43 = vmax.f32 %v237_v34, 0.0  ;;  %v240_v45 = vadd.f32 %v1192_v7, %v169_v36  ;;  %v241_v48 = vadd.f32 %v1192_v7, %v170_v41  ;;  %v172_v49 = vmul.f32 %v849_v42, %v1178_v1  ;;  %v1107_v34 = vld [vmem:[%s1502_s0 + $0x90] sm:$0xff]  }
  0x1a   :  { %v302_v47 = vmax.f32 %v238_v40, 0.0  ;;  %v852_v50 = vunpack.c.l.bf16 %v1101_v38  ;;  %v303_v53 = vmax.f32 %v239_v44, 0.0  ;;  %v242_v55 = vadd.f32 %v1192_v7, %v171_v46 }
  0x1b   :  { %v973_v52 = vpack.c.bf16 %v301_v43, %v300_v39  ;;  %v304_v54 = vmax.f32 %v240_v45, 0.0  ;;  %v305_v56 = vmax.f32 %v241_v48, 0.0  ;;  %v243_v57 = vadd.f32 %v1192_v7, %v172_v49  ;;  %v1108_v43 = vld [vmem:[%s1502_s0 + $0x98] sm:$0xff]  }
  0x1c   :  { %v853_v58 = vunpack.c.h.bf16 %v1101_v38  ;;  %v173_v59 = vmul.f32 %v852_v50, %v1178_v1  ;;  %v978_v61 = vpack.c.bf16 %v303_v53, %v302_v47  ;;  %v306_v62 = vmax.f32 %v242_v55, 0.0 }
  0x1d   :  { %1128 = vst [vmem:[%s1505_s3 + $0x40] sm:$0xff] %v973_v52   ;;  %v856_v63 = vunpack.c.l.bf16 %v1102_v51  ;;  %v857_v0 = vunpack.c.h.bf16 %v1102_v51  ;;  %v983_v3 = vpack.c.bf16 %v305_v56, %v304_v54  ;;  %v307_v4 = vmax.f32 %v243_v57, 0.0  ;;  %v1109_v56 = vld [vmem:[%s1502_s0 + $0xa0] sm:$0xff]  }
  0x1e   :  { %v174_v5 = vmul.f32 %v853_v58, %v1178_v1  ;;  %v244_v6 = vadd.f32 %v1192_v7, %v173_v59  ;;  %1129 = vst [vmem:[%s1505_s3 + $0x48] sm:$0xff] %v978_v61   ;;  %v860_v10 = vunpack.c.l.bf16 %v1103_v60  ;;  %v861_v11 = vunpack.c.h.bf16 %v1103_v60 }
  0x1f   :  { %v175_v8 = vmul.f32 %v856_v63, %v1178_v1  ;;  %v176_v9 = vmul.f32 %v857_v0, %v1178_v1  ;;  %1130 = vst [vmem:[%s1505_s3 + $0x50] sm:$0xff] %v983_v3   ;;  %v988_v13 = vpack.c.bf16 %v307_v4, %v306_v62  ;;  %v864_v16 = vunpack.c.l.bf16 %v1104_v2 }
  0x20   :  { %v245_v14 = vadd.f32 %v1192_v7, %v174_v5  ;;  %v308_v15 = vmax.f32 %v244_v6, 0.0  ;;  %v177_v19 = vmul.f32 %v860_v10, %v1178_v1  ;;  %v178_v20 = vmul.f32 %v861_v11, %v1178_v1 }
  0x21   :  { %v246_v17 = vadd.f32 %v1192_v7, %v175_v8  ;;  %v247_v18 = vadd.f32 %v1192_v7, %v176_v9  ;;  %1131 = vst [vmem:[%s1505_s3 + $0x58] sm:$0xff] %v988_v13   ;;  %v865_v22 = vunpack.c.h.bf16 %v1104_v2  ;;  %v179_v23 = vmul.f32 %v864_v16, %v1178_v1  ;;  %v1110_v2 = vld [vmem:[%s1502_s0 + $0xa8] sm:$0xff]   ;;  %v1111_v16 = vld [vmem:[%s1502_s0 + $0xb0] sm:$0xff]  }
  0x22   :  { %v309_v21 = vmax.f32 %v245_v14, 0.0  ;;  %v868_v24 = vunpack.c.l.bf16 %v1105_v12  ;;  %v248_v27 = vadd.f32 %v1192_v7, %v177_v19  ;;  %v249_v28 = vadd.f32 %v1192_v7, %v178_v20 }
  0x23   :  { %v310_v25 = vmax.f32 %v246_v17, 0.0  ;;  %v311_v26 = vmax.f32 %v247_v18, 0.0  ;;  %v180_v31 = vmul.f32 %v865_v22, %v1178_v1  ;;  %v250_v32 = vadd.f32 %v1192_v7, %v179_v23 }
  0x24   :  { %v993_v30 = vpack.c.bf16 %v309_v21, %v308_v15  ;;  %v869_v33 = vunpack.c.h.bf16 %v1105_v12  ;;  %v312_v36 = vmax.f32 %v248_v27, 0.0  ;;  %v313_v37 = vmax.f32 %v249_v28, 0.0  ;;  %v1112_v21 = vld [vmem:[%s1502_s0 + $0xb8] sm:$0xff]  }
  0x25   :  { %v998_v35 = vpack.c.bf16 %v311_v26, %v310_v25  ;;  %v181_v38 = vmul.f32 %v868_v24, %v1178_v1  ;;  %v251_v39 = vadd.f32 %v1192_v7, %v180_v31  ;;  %v314_v40 = vmax.f32 %v250_v32, 0.0 }
  0x26   :  { %1132 = vst [vmem:[%s1505_s3 + $0x60] sm:$0xff] %v993_v30   ;;  %v182_v41 = vmul.f32 %v869_v33, %v1178_v1  ;;  %v872_v42 = vunpack.c.l.bf16 %v1106_v29  ;;  %v1003_v44 = vpack.c.bf16 %v313_v37, %v312_v36  ;;  %v873_v46 = vunpack.c.h.bf16 %v1106_v29 }
  0x27   :  { %1133 = vst [vmem:[%s1505_s3 + $0x68] sm:$0xff] %v998_v35   ;;  %v252_v45 = vadd.f32 %v1192_v7, %v181_v38  ;;  %v876_v47 = vunpack.c.l.bf16 %v1107_v34  ;;  %v315_v48 = vmax.f32 %v251_v39, 0.0  ;;  %v877_v51 = vunpack.c.h.bf16 %v1107_v34  ;;  %v1113_v34 = vld [vmem:[%s1502_s0 + $0xc0] sm:$0xff]  }
  0x28   :  { %v253_v49 = vadd.f32 %v1192_v7, %v182_v41  ;;  %v183_v50 = vmul.f32 %v872_v42, %v1178_v1  ;;  %1134 = vst [vmem:[%s1505_s3 + $0x70] sm:$0xff] %v1003_v44   ;;  %v184_v53 = vmul.f32 %v873_v46, %v1178_v1  ;;  %v880_v55 = vunpack.c.l.bf16 %v1108_v43 }
  0x29   :  { %v316_v52 = vmax.f32 %v252_v45, 0.0  ;;  %v185_v54 = vmul.f32 %v876_v47, %v1178_v1  ;;  %v1008_v57 = vpack.c.bf16 %v315_v48, %v314_v40  ;;  %v186_v60 = vmul.f32 %v877_v51, %v1178_v1  ;;  %v1114_v47 = vld [vmem:[%s1502_s0 + $0xc8] sm:$0xff]  }
  0x2a   :  { %v317_v58 = vmax.f32 %v253_v49, 0.0  ;;  %v254_v59 = vadd.f32 %v1192_v7, %v183_v50  ;;  %v255_v61 = vadd.f32 %v1192_v7, %v184_v53  ;;  %v881_v63 = vunpack.c.h.bf16 %v1108_v43 }
  0x2b   :  { %v256_v62 = vadd.f32 %v1192_v7, %v185_v54  ;;  %v187_v0 = vmul.f32 %v880_v55, %v1178_v1  ;;  %1135 = vst [vmem:[%s1505_s3 + $0x78] sm:$0xff] %v1008_v57   ;;  %v257_v5 = vadd.f32 %v1192_v7, %v186_v60  ;;  %v884_v6 = vunpack.c.l.bf16 %v1109_v56 }
  0x2c   :  { %v1013_v3 = vpack.c.bf16 %v317_v58, %v316_v52  ;;  %v318_v4 = vmax.f32 %v254_v59, 0.0  ;;  %v319_v8 = vmax.f32 %v255_v61, 0.0  ;;  %v188_v10 = vmul.f32 %v881_v63, %v1178_v1  ;;  %v1115_v52 = vld [vmem:[%s1502_s0 + $0xd0] sm:$0xff]   ;;  %v1116_v61 = vld [vmem:[%s1502_s0 + $0xd8] sm:$0xff]  }
  0x2d   :  { %v320_v9 = vmax.f32 %v256_v62, 0.0  ;;  %v258_v11 = vadd.f32 %v1192_v7, %v187_v0  ;;  %v321_v12 = vmax.f32 %v257_v5, 0.0  ;;  %v885_v13 = vunpack.c.h.bf16 %v1109_v56 }
  0x2e   :  { %1136 = vst [vmem:[%s1505_s3 + $0x80] sm:$0xff] %v1013_v3   ;;  %v189_v14 = vmul.f32 %v884_v6, %v1178_v1  ;;  %v888_v15 = vunpack.c.l.bf16 %v1110_v2  ;;  %v1018_v17 = vpack.c.bf16 %v319_v8, %v318_v4  ;;  %v259_v18 = vadd.f32 %v1192_v7, %v188_v10 }
  0x2f   :  { %v322_v19 = vmax.f32 %v258_v11, 0.0  ;;  %v889_v20 = vunpack.c.h.bf16 %v1110_v2  ;;  %v1023_v22 = vpack.c.bf16 %v321_v12, %v320_v9  ;;  %v190_v23 = vmul.f32 %v885_v13, %v1178_v1  ;;  %v1117_v12 = vld [vmem:[%s1502_s0 + $0xe0] sm:$0xff]  }
  0x30   :  { %v260_v24 = vadd.f32 %v1192_v7, %v189_v14  ;;  %v191_v25 = vmul.f32 %v888_v15, %v1178_v1  ;;  %1137 = vst [vmem:[%s1505_s3 + $0x88] sm:$0xff] %v1018_v17   ;;  %v323_v26 = vmax.f32 %v259_v18, 0.0  ;;  %v892_v28 = vunpack.c.l.bf16 %v1111_v16 }
  0x31   :  { %v192_v27 = vmul.f32 %v889_v20, %v1178_v1  ;;  %v893_v29 = vunpack.c.h.bf16 %v1111_v16  ;;  %1138 = vst [vmem:[%s1505_s3 + $0x90] sm:$0xff] %v1023_v22   ;;  %v261_v30 = vadd.f32 %v1192_v7, %v190_v23  ;;  %v896_v33 = vunpack.c.l.bf16 %v1112_v21 }
  0x32   :  { %v324_v31 = vmax.f32 %v260_v24, 0.0  ;;  %v262_v32 = vadd.f32 %v1192_v7, %v191_v25  ;;  %v1028_v35 = vpack.c.bf16 %v323_v26, %v322_v19  ;;  %v193_v37 = vmul.f32 %v892_v28, %v1178_v1 }
  0x33   :  { %v263_v36 = vadd.f32 %v1192_v7, %v192_v27  ;;  %v194_v38 = vmul.f32 %v893_v29, %v1178_v1  ;;  %v325_v39 = vmax.f32 %v261_v30, 0.0  ;;  %v897_v41 = vunpack.c.h.bf16 %v1112_v21  ;;  %v1118_v21 = vld [vmem:[%s1502_s0 + $0xe8] sm:$0xff]  }
  0x34   :  { %v326_v40 = vmax.f32 %v262_v32, 0.0  ;;  %v195_v42 = vmul.f32 %v896_v33, %v1178_v1  ;;  %1139 = vst [vmem:[%s1505_s3 + $0x98] sm:$0xff] %v1028_v35   ;;  %v264_v44 = vadd.f32 %v1192_v7, %v193_v37  ;;  %v900_v46 = vunpack.c.l.bf16 %v1113_v34 }
  0x35   :  { %v327_v43 = vmax.f32 %v263_v36, 0.0  ;;  %v265_v45 = vadd.f32 %v1192_v7, %v194_v38  ;;  %v1033_v48 = vpack.c.bf16 %v325_v39, %v324_v31  ;;  %v196_v49 = vmul.f32 %v897_v41, %v1178_v1  ;;  %v1120_v39 = vld [vmem:[%s1502_s0 + $0xf8] sm:$0xff]  }
  0x36   :  { %v266_v50 = vadd.f32 %v1192_v7, %v195_v42  ;;  %v901_v51 = vunpack.c.h.bf16 %v1113_v34  ;;  %v328_v54 = vmax.f32 %v264_v44, 0.0  ;;  %v197_v56 = vmul.f32 %v900_v46, %v1178_v1  ;;  %v1119_v34 = vld [vmem:[%s1502_s0 + $0xf0] sm:$0xff]  }
  0x37   :  { %v1038_v53 = vpack.c.bf16 %v327_v43, %v326_v40  ;;  %v329_v55 = vmax.f32 %v265_v45, 0.0  ;;  %1140 = vst [vmem:[%s1505_s3 + $0xa0] sm:$0xff] %v1033_v48   ;;  %v267_v57 = vadd.f32 %v1192_v7, %v196_v49  ;;  %v904_v60 = vunpack.c.l.bf16 %v1114_v47 }
  0x38   :  { %v330_v58 = vmax.f32 %v266_v50, 0.0  ;;  %v198_v59 = vmul.f32 %v901_v51, %v1178_v1  ;;  %v268_v63 = vadd.f32 %v1192_v7, %v197_v56  ;;  %v905_v0 = vunpack.c.h.bf16 %v1114_v47 }
  0x39   :  { %1141 = vst [vmem:[%s1505_s3 + $0xa8] sm:$0xff] %v1038_v53   ;;  %v1043_v62 = vpack.c.bf16 %v329_v55, %v328_v54  ;;  %v908_v2 = vunpack.c.l.bf16 %v1115_v52  ;;  %v331_v3 = vmax.f32 %v267_v57, 0.0  ;;  %v199_v5 = vmul.f32 %v904_v60, %v1178_v1 }
  0x3a   :  { %v269_v4 = vadd.f32 %v1192_v7, %v198_v59  ;;  %v909_v6 = vunpack.c.h.bf16 %v1115_v52  ;;  %v332_v8 = vmax.f32 %v268_v63, 0.0  ;;  %v200_v9 = vmul.f32 %v905_v0, %v1178_v1 }
  0x3b   :  { %1142 = vst [vmem:[%s1505_s3 + $0xb0] sm:$0xff] %v1043_v62   ;;  %v201_v10 = vmul.f32 %v908_v2, %v1178_v1  ;;  %v912_v11 = vunpack.c.l.bf16 %v1116_v61  ;;  %v1048_v13 = vpack.c.bf16 %v331_v3, %v330_v58  ;;  %v270_v15 = vadd.f32 %v1192_v7, %v199_v5 }
  0x3c   :  { %v333_v14 = vmax.f32 %v269_v4, 0.0  ;;  %v202_v16 = vmul.f32 %v909_v6, %v1178_v1  ;;  %v271_v17 = vadd.f32 %v1192_v7, %v200_v9  ;;  %v913_v19 = vunpack.c.h.bf16 %v1116_v61 }
  0x3d   :  { %v272_v18 = vadd.f32 %v1192_v7, %v201_v10  ;;  %v203_v20 = vmul.f32 %v912_v11, %v1178_v1  ;;  %1143 = vst [vmem:[%s1505_s3 + $0xb8] sm:$0xff] %v1048_v13   ;;  %v334_v23 = vmax.f32 %v270_v15, 0.0  ;;  %v916_v25 = vunpack.c.l.bf16 %v1117_v12 }
  0x3e   :  { %v1053_v22 = vpack.c.bf16 %v333_v14, %v332_v8  ;;  %v273_v24 = vadd.f32 %v1192_v7, %v202_v16  ;;  %v335_v26 = vmax.f32 %v271_v17, 0.0  ;;  %v204_v28 = vmul.f32 %v913_v19, %v1178_v1 }
  0x3f   :  { %v336_v27 = vmax.f32 %v272_v18, 0.0  ;;  %v274_v29 = vadd.f32 %v1192_v7, %v203_v20  ;;  %v917_v31 = vunpack.c.h.bf16 %v1117_v12  ;;  %v205_v32 = vmul.f32 %v916_v25, %v1178_v1 }
  0x40   :  { %1144 = vst [vmem:[%s1505_s3 + $0xc0] sm:$0xff] %v1053_v22   ;;  %v337_v30 = vmax.f32 %v273_v24, 0.0  ;;  %v920_v33 = vunpack.c.l.bf16 %v1118_v21  ;;  %v1058_v35 = vpack.c.bf16 %v335_v26, %v334_v23  ;;  %v275_v36 = vadd.f32 %v1192_v7, %v204_v28 }
  0x41   :  { %v338_v37 = vmax.f32 %v274_v29, 0.0  ;;  %v921_v38 = vunpack.c.h.bf16 %v1118_v21  ;;  %v206_v41 = vmul.f32 %v917_v31, %v1178_v1  ;;  %v276_v42 = vadd.f32 %v1192_v7, %v205_v32 }
  0x42   :  { %v1063_v40 = vpack.c.bf16 %v337_v30, %v336_v27  ;;  %v207_v43 = vmul.f32 %v920_v33, %v1178_v1  ;;  %1145 = vst [vmem:[%s1505_s3 + $0xc8] sm:$0xff] %v1058_v35   ;;  %v339_v44 = vmax.f32 %v275_v36, 0.0  ;;  %v924_v46 = vunpack.c.l.bf16 %v1119_v34 }
  0x43   :  { %v208_v45 = vmul.f32 %v921_v38, %v1178_v1  ;;  %v925_v47 = vunpack.c.h.bf16 %v1119_v34  ;;  %v277_v48 = vadd.f32 %v1192_v7, %v206_v41  ;;  %v340_v49 = vmax.f32 %v276_v42, 0.0 }
  0x44   :  { %1146 = vst [vmem:[%s1505_s3 + $0xd0] sm:$0xff] %v1063_v40   ;;  %v278_v50 = vadd.f32 %v1192_v7, %v207_v43  ;;  %v928_v51 = vunpack.c.l.bf16 %v1120_v39  ;;  %v1068_v52 = vpack.c.bf16 %v339_v44, %v338_v37  ;;  %v209_v54 = vmul.f32 %v924_v46, %v1178_v1 }
  0x45   :  { %v279_v53 = vadd.f32 %v1192_v7, %v208_v45  ;;  %v210_v55 = vmul.f32 %v925_v47, %v1178_v1  ;;  %v341_v56 = vmax.f32 %v277_v48, 0.0  ;;  %v929_v58 = vunpack.c.h.bf16 %v1120_v39 }
  0x46   :  { %v342_v57 = vmax.f32 %v278_v50, 0.0  ;;  %v211_v59 = vmul.f32 %v928_v51, %v1178_v1  ;;  %1147 = vst [vmem:[%s1505_s3 + $0xd8] sm:$0xff] %v1068_v52   ;;  %v280_v61 = vadd.f32 %v1192_v7, %v209_v54 }
  0x47   :  { %v343_v60 = vmax.f32 %v279_v53, 0.0  ;;  %v281_v62 = vadd.f32 %v1192_v7, %v210_v55  ;;  %v1073_v63 = vpack.c.bf16 %v341_v56, %v340_v49  ;;  %v212_v0 = vmul.f32 %v929_v58, %v1178_v1 }
  0x48   :  { %v282_v2 = vadd.f32 %v1192_v7, %v211_v59  ;;  %v344_v4 = vmax.f32 %v280_v61, 0.0 }
  0x49   :  { %v1078_v3 = vpack.c.bf16 %v343_v60, %v342_v57  ;;  %v345_v5 = vmax.f32 %v281_v62, 0.0  ;;  %1148 = vst [vmem:[%s1505_s3 + $0xe0] sm:$0xff] %v1073_v63   ;;  %v283_v6 = vadd.f32 %v1192_v7, %v212_v0 }
  0x4a   :  { %v346_v8 = vmax.f32 %v282_v2, 0.0 }
  0x4b   :  { %1149 = vst [vmem:[%s1505_s3 + $0xe8] sm:$0xff] %v1078_v3   ;;  %v1083_v9 = vpack.c.bf16 %v345_v5, %v344_v4  ;;  %v347_v10 = vmax.f32 %v283_v6, 0.0 }
  0x4d   :  { %1150 = vst [vmem:[%s1505_s3 + $0xf0] sm:$0xff] %v1083_v9   ;;  %v1088_v1 = vpack.c.bf16 %v347_v10, %v346_v8 }
  0x4f   :  { %1151 = vst [vmem:[%s1505_s3 + $0xf8] sm:$0xff] %v1088_v1  }

// kernel: resnext_block_forward.5
= control target key start
LH: loop header
LB: loop body
LE: loop exit
PB: predicated region body
PF: predicated region fallthrough
CT: control target
= control target key end

     0   :  { %vm1145_vm0 = vcmask 1040384   ;;  %s2122_s1 = inlined_call_operand.vmem [shape: bf16[128,128], index: 1, kind: input, shape index: {}]   ;;  %s2123_s0 = inlined_call_operand.vmem [shape: bf16[512,128], index: 0, kind: input, shape index: {}]   ;;  %s2124_s2 = inlined_call_operand.vmem [shape: bf16[512,128], index: 2, kind: output, shape index: {0}]   ;;  %s2125_s3 = inlined_call_operand.vmem [shape: f32[1,2,128], index: 3, kind: output, shape index: {1}]  }
   0x1   :  { %v1651_v0 = vld [vmem:[%s2122_s1] sm:$0xff]   ;;  %v1652_v1 = vld [vmem:[%s2122_s1 + $0x8] sm:$0xff]   ;;  %v1653_v2 = vld [vmem:[%s2122_s1 + $0x10] sm:$0xff]  }
   0x2   :  { %1555 = vmatprep.subr.bf16.mxu0 %v1651_v0  ;;  %1635 = vmatprep.subr.bf16.mxu1 %v1651_v0  ;;  %v1654_v3 = vld [vmem:[%s2122_s1 + $0x18] sm:$0xff]   ;;  %v1659_v4 = vld [vmem:[%s2123_s0] sm:$0xff]   ;;  %v1656_v6 = vld [vmem:[%s2122_s1 + $0x28] sm:$0xff]  }
   0x3   :  { %1556 = vmatpush3.bf16.msra.mxu0 %v1651_v0  ;;  %1643 = vmatpush3.bf16.msra.mxu1 %v1651_v0  ;;  %v1655_v5 = vld [vmem:[%s2122_s1 + $0x20] sm:$0xff]   ;;  %v1657_v7 = vld [vmem:[%s2122_s1 + $0x30] sm:$0xff]   ;;  %v1658_v8 = vld [vmem:[%s2122_s1 + $0x38] sm:$0xff]  }
   0x4   :  { %1557 = vmatprep.subr.bf16.mxu0 %v1652_v1  ;;  %1636 = vmatprep.subr.bf16.mxu1 %v1652_v1  ;;  %v1675_v9 = vld [vmem:[%s2123_s0 + $0x80] sm:$0xff]   ;;  %v1660_v10 = vld [vmem:[%s2123_s0 + $0x8] sm:$0xff]   ;;  %v1661_v11 = vld [vmem:[%s2123_s0 + $0x10] sm:$0xff]  }
   0x5   :  { %1571 = vmatprep.mubr.bf16.mxu0 %v1659_v4  ;;  %1603 = vmatprep.mubr.bf16.mxu1 %v1675_v9  ;;  %v1676_v12 = vld [vmem:[%s2123_s0 + $0x88] sm:$0xff]   ;;  %v1677_v13 = vld [vmem:[%s2123_s0 + $0x90] sm:$0xff]   ;;  %v1662_v14 = vld [vmem:[%s2123_s0 + $0x18] sm:$0xff]  }
   0x6   :  { %v1663_v15 = vld [vmem:[%s2123_s0 + $0x20] sm:$0xff]   ;;  %v1678_v16 = vld [vmem:[%s2123_s0 + $0x98] sm:$0xff]   ;;  %v1664_v18 = vld [vmem:[%s2123_s0 + $0x28] sm:$0xff]  }
   0x7   :  { %1558 = vmatpush3.bf16.msra.mxu0 %v1652_v1  ;;  %1644 = vmatpush3.bf16.msra.mxu1 %v1652_v1  ;;  %v1679_v17 = vld [vmem:[%s2123_s0 + $0xa0] sm:$0xff]   ;;  %v1680_v19 = vld [vmem:[%s2123_s0 + $0xa8] sm:$0xff]   ;;  %v1665_v20 = vld [vmem:[%s2123_s0 + $0x30] sm:$0xff]  }
   0x8   :  { %1559 = vmatprep.subr.bf16.mxu0 %v1653_v2  ;;  %1637 = vmatprep.subr.bf16.mxu1 %v1653_v2  ;;  %v1681_v21 = vld [vmem:[%s2123_s0 + $0xb0] sm:$0xff]   ;;  %v1666_v22 = vld [vmem:[%s2123_s0 + $0x38] sm:$0xff]   ;;  %v1667_v24 = vld [vmem:[%s2123_s0 + $0x40] sm:$0xff]  }
   0x9   :  { %v1682_v23 = vld [vmem:[%s2123_s0 + $0xb8] sm:$0xff]   ;;  %v1683_v25 = vld [vmem:[%s2123_s0 + $0xc0] sm:$0xff]   ;;  %v1668_v26 = vld [vmem:[%s2123_s0 + $0x48] sm:$0xff]  }
   0xa   :  { %v1684_v27 = vld [vmem:[%s2123_s0 + $0xc8] sm:$0xff]   ;;  %v1669_v28 = vld [vmem:[%s2123_s0 + $0x50] sm:$0xff]   ;;  %v1670_v30 = vld [vmem:[%s2123_s0 + $0x58] sm:$0xff]  }
   0xb   :  { %1560 = vmatpush3.bf16.msra.mxu0 %v1653_v2  ;;  %1645 = vmatpush3.bf16.msra.mxu1 %v1653_v2  ;;  %v1685_v29 = vld [vmem:[%s2123_s0 + $0xd0] sm:$0xff]   ;;  %v1686_v31 = vld [vmem:[%s2123_s0 + $0xd8] sm:$0xff]   ;;  %v1671_v32 = vld [vmem:[%s2123_s0 + $0x60] sm:$0xff]  }
   0xc   :  { %1561 = vmatprep.subr.bf16.mxu0 %v1654_v3  ;;  %1638 = vmatprep.subr.bf16.mxu1 %v1654_v3  ;;  %v1687_v33 = vld [vmem:[%s2123_s0 + $0xe0] sm:$0xff]   ;;  %v1672_v34 = vld [vmem:[%s2123_s0 + $0x68] sm:$0xff]   ;;  %v1673_v36 = vld [vmem:[%s2123_s0 + $0x70] sm:$0xff]  }
   0xd   :  { %v1688_v35 = vld [vmem:[%s2123_s0 + $0xe8] sm:$0xff]   ;;  %v1689_v37 = vld [vmem:[%s2123_s0 + $0xf0] sm:$0xff]   ;;  %v1674_v38 = vld [vmem:[%s2123_s0 + $0x78] sm:$0xff]  }
   0xe   :  { %v1690_v39 = vld [vmem:[%s2123_s0 + $0xf8] sm:$0xff]  }
   0xf   :  { %1562 = vmatpush3.bf16.msra.mxu0 %v1654_v3  ;;  %1646 = vmatpush3.bf16.msra.mxu1 %v1654_v3 }
  0x10   :  { %1563 = vmatprep.subr.bf16.mxu0 %v1655_v5  ;;  %1639 = vmatprep.subr.bf16.mxu1 %v1655_v5 }
  0x13   :  { %1564 = vmatpush3.bf16.msra.mxu0 %v1655_v5  ;;  %1647 = vmatpush3.bf16.msra.mxu1 %v1655_v5 }
  0x14   :  { %1565 = vmatprep.subr.bf16.mxu0 %v1656_v6  ;;  %1640 = vmatprep.subr.bf16.mxu1 %v1656_v6 }
  0x17   :  { %1566 = vmatpush3.bf16.msra.mxu0 %v1656_v6  ;;  %1648 = vmatpush3.bf16.msra.mxu1 %v1656_v6 }
  0x18   :  { %1567 = vmatprep.subr.bf16.mxu0 %v1657_v7  ;;  %1641 = vmatprep.subr.bf16.mxu1 %v1657_v7 }
  0x1b   :  { %1568 = vmatpush3.bf16.msra.mxu0 %v1657_v7  ;;  %1649 = vmatpush3.bf16.msra.mxu1 %v1657_v7 }
  0x1c   :  { %1569 = vmatprep.subr.bf16.mxu0 %v1658_v8  ;;  %1642 = vmatprep.subr.bf16.mxu1 %v1658_v8 }
  0x1f   :  { %1570 = vmatpush3.bf16.msra.mxu0 %v1658_v8  ;;  %1650 = vmatpush3.bf16.msra.mxu1 %v1658_v8 }
  0x22   :  { %1572 = vmatmul.mubr.bf16.vlgmr.msra.gmra.mrb[0].mxu0 %v1660_v10  ;;  %1604 = vmatmul.mubr.bf16.vlgmr.msra.gmra.mrb[0].mxu1 %v1676_v12 }
  0x23   :  { %1575 = vmatprep.mubr.bf16.mxu0 %v1661_v11  ;;  %1607 = vmatprep.mubr.bf16.mxu1 %v1677_v13 }
  0x2a   :  { %1576 = vmatmul.mubr.bf16.gmra.mrb[4].mxu0 %v1662_v14  ;;  %1608 = vmatmul.mubr.bf16.gmra.mrb[4].mxu1 %v1678_v16 }
  0x2b   :  { %1579 = vmatprep.mubr.bf16.mxu0 %v1663_v15  ;;  %1611 = vmatprep.mubr.bf16.mxu1 %v1679_v17 }
  0x32   :  { %1580 = vmatmul.mubr.bf16.gmra.mrb[8].mxu0 %v1664_v18  ;;  %1612 = vmatmul.mubr.bf16.gmra.mrb[8].mxu1 %v1680_v19 }
  0x33   :  { %1583 = vmatprep.mubr.bf16.mxu0 %v1665_v20  ;;  %1615 = vmatprep.mubr.bf16.mxu1 %v1681_v21 }
  0x3a   :  { %1584 = vmatmul.mubr.bf16.gmra.mrb[12].mxu0 %v1666_v22  ;;  %1616 = vmatmul.mubr.bf16.gmra.mrb[12].mxu1 %v1682_v23 }
  0x3b   :  { %1587 = vmatprep.mubr.bf16.mxu0 %v1667_v24  ;;  %1619 = vmatprep.mubr.bf16.mxu1 %v1683_v25 }
  0x42   :  { %1588 = vmatmul.mubr.bf16.gmra.mrb[16].mxu0 %v1668_v26  ;;  %1620 = vmatmul.mubr.bf16.gmra.mrb[16].mxu1 %v1684_v27 }
  0x43   :  { %1591 = vmatprep.mubr.bf16.mxu0 %v1669_v28  ;;  %1623 = vmatprep.mubr.bf16.mxu1 %v1685_v29 }
  0x4a   :  { %1592 = vmatmul.mubr.bf16.gmra.mrb[20].mxu0 %v1670_v30  ;;  %1624 = vmatmul.mubr.bf16.gmra.mrb[20].mxu1 %v1686_v31 }
  0x4b   :  { %1595 = vmatprep.mubr.bf16.mxu0 %v1671_v32  ;;  %1627 = vmatprep.mubr.bf16.mxu1 %v1687_v33 }
  0x52   :  { %1596 = vmatmul.mubr.bf16.gmra.mrb[24].mxu0 %v1672_v34  ;;  %1628 = vmatmul.mubr.bf16.gmra.mrb[24].mxu1 %v1688_v35 }
  0x53   :  { %1599 = vmatprep.mubr.bf16.mxu0 %v1673_v36  ;;  %1631 = vmatprep.mubr.bf16.mxu1 %v1689_v37 }
  0x5a   :  { %1600 = vmatmul.mubr.bf16.gmra.mrb[28].mxu0 %v1674_v38  ;;  %1632 = vmatmul.mubr.bf16.gmra.mrb[28].mxu1 %v1690_v39 }
  0xf5   :  { %v1573_v40 = vpop.f32.mrb[0].mxu0  ;;  %v1831_v41 = vpop.f32.mrb[0].mxu1 }
  0xf6   :  { %v368_v42 = vpop.f32.mrb[1].mxu0  ;;  %v1833_v43 = vpop.f32.mrb[1].mxu1  ;;  %v1014_v55 = vmul.f32 %v1573_v40, %v1573_v40 }
  0xf7   :  { %v1574_v44 = vpop.f32.mrb[2].mxu0  ;;  %v1835_v45 = vpop.f32.mrb[2].mxu1  ;;  %v1012_v46 = vmul.f32 %v368_v42, %v368_v42 }
  0xf8   :  { %v1332_v47 = vpack.c.bf16 %v1574_v44, %v1573_v40  ;;  %v371_v48 = vpop.f32.mrb[3].mxu0  ;;  %v1412_v49 = vpack.c.bf16 %v1835_v45, %v1831_v41  ;;  %v1839_v50 = vpop.f32.mrb[3].mxu1  ;;  %v1015_v58 = vmul.f32 %v1574_v44, %v1574_v44 }
  0xf9   :  { %v1327_v51 = vpack.c.bf16 %v371_v48, %v368_v42  ;;  %v943_v52 = vadd.f32 %v371_v48, %v368_v42  ;;  %v1013_v53 = vmul.f32 %v371_v48, %v371_v48  ;;  %v1407_v54 = vpack.c.bf16 %v1839_v50, %v1833_v43 }
  0xfa   :  { %1484 = vst [vmem:[%s2124_s2 + $0x8] sm:$0xff] %v1332_v47   ;;  %1500 = vst [vmem:[%s2124_s2 + $0x88] sm:$0xff] %v1412_v49  }
  0xfb   :  { %1328 = vst [vmem:[%s2124_s2] sm:$0xff] %v1327_v51   ;;  %v944_v56 = vadd.f32 %v1573_v40, %v943_v52  ;;  %v1076_v57 = vadd.f32 %v1013_v53, %v1012_v46  ;;  %1499 = vst [vmem:[%s2124_s2 + $0x80] sm:$0xff] %v1407_v54  }
  0xfd   :  { %v1077_v59 = vadd.f32 %v1076_v57, %v1014_v55  ;;  %v1577_v60 = vpop.f32.mrb[4].mxu0  ;;  %v945_v61 = vadd.f32 %v1574_v44, %v944_v56  ;;  %v1855_v62 = vpop.f32.mrb[4].mxu1 }
  0xfe   :  { %v384_v63 = vpop.f32.mrb[5].mxu0  ;;  %v1857_v0 = vpop.f32.mrb[5].mxu1  ;;  %v1018_v15 = vmul.f32 %v1577_v60, %v1577_v60 }
  0xff   :  { %v946_v1 = vadd.f32 %v945_v61, %v384_v63  ;;  %v1016_v2 = vmul.f32 %v384_v63, %v384_v63  ;;  %v1078_v3 = vadd.f32 %v1077_v59, %v1015_v58  ;;  %v1578_v4 = vpop.f32.mrb[6].mxu0  ;;  %v1859_v5 = vpop.f32.mrb[6].mxu1 }
 0x100   :  { %v1342_v6 = vpack.c.bf16 %v1578_v4, %v1577_v60  ;;  %v387_v7 = vpop.f32.mrb[7].mxu0  ;;  %v1422_v8 = vpack.c.bf16 %v1859_v5, %v1855_v62  ;;  %v1863_v9 = vpop.f32.mrb[7].mxu1  ;;  %v1019_v18 = vmul.f32 %v1578_v4, %v1578_v4 }
 0x101   :  { %v1079_v10 = vadd.f32 %v1078_v3, %v1016_v2  ;;  %v1337_v11 = vpack.c.bf16 %v387_v7, %v384_v63  ;;  %v947_v12 = vadd.f32 %v946_v1, %v387_v7  ;;  %v1017_v13 = vmul.f32 %v387_v7, %v387_v7 }
 0x102   :  { %1486 = vst [vmem:[%s2124_s2 + $0x18] sm:$0xff] %v1342_v6   ;;  %1502 = vst [vmem:[%s2124_s2 + $0x98] sm:$0xff] %v1422_v8   ;;  %v1417_v14 = vpack.c.bf16 %v1863_v9, %v1857_v0 }
 0x103   :  { %1485 = vst [vmem:[%s2124_s2 + $0x10] sm:$0xff] %v1337_v11   ;;  %v948_v16 = vadd.f32 %v1577_v60, %v947_v12  ;;  %v1080_v17 = vadd.f32 %v1079_v10, %v1017_v13 }
 0x104   :  { %1501 = vst [vmem:[%s2124_s2 + $0x90] sm:$0xff] %v1417_v14  }
 0x105   :  { %v1081_v19 = vadd.f32 %v1080_v17, %v1018_v15  ;;  %v1581_v20 = vpop.f32.mrb[8].mxu0  ;;  %v949_v21 = vadd.f32 %v1578_v4, %v948_v16  ;;  %v1879_v22 = vpop.f32.mrb[8].mxu1 }
 0x106   :  { %v400_v23 = vpop.f32.mrb[9].mxu0  ;;  %v1881_v24 = vpop.f32.mrb[9].mxu1  ;;  %v1022_v39 = vmul.f32 %v1581_v20, %v1581_v20 }
 0x107   :  { %v950_v25 = vadd.f32 %v949_v21, %v400_v23  ;;  %v1020_v26 = vmul.f32 %v400_v23, %v400_v23  ;;  %v1082_v27 = vadd.f32 %v1081_v19, %v1019_v18  ;;  %v1582_v28 = vpop.f32.mrb[10].mxu0  ;;  %v1883_v29 = vpop.f32.mrb[10].mxu1 }
 0x108   :  { %v1352_v30 = vpack.c.bf16 %v1582_v28, %v1581_v20  ;;  %v403_v31 = vpop.f32.mrb[11].mxu0  ;;  %v1432_v32 = vpack.c.bf16 %v1883_v29, %v1879_v22  ;;  %v1887_v33 = vpop.f32.mrb[11].mxu1  ;;  %v1023_v44 = vmul.f32 %v1582_v28, %v1582_v28 }
 0x109   :  { %v1083_v34 = vadd.f32 %v1082_v27, %v1020_v26  ;;  %v1347_v35 = vpack.c.bf16 %v403_v31, %v400_v23  ;;  %v951_v36 = vadd.f32 %v950_v25, %v403_v31  ;;  %v1021_v37 = vmul.f32 %v403_v31, %v403_v31 }
 0x10a   :  { %1488 = vst [vmem:[%s2124_s2 + $0x28] sm:$0xff] %v1352_v30   ;;  %1504 = vst [vmem:[%s2124_s2 + $0xa8] sm:$0xff] %v1432_v32   ;;  %v1427_v38 = vpack.c.bf16 %v1887_v33, %v1881_v24 }
 0x10b   :  { %1487 = vst [vmem:[%s2124_s2 + $0x20] sm:$0xff] %v1347_v35   ;;  %v952_v40 = vadd.f32 %v1581_v20, %v951_v36  ;;  %v1084_v42 = vadd.f32 %v1083_v34, %v1021_v37 }
 0x10c   :  { %1503 = vst [vmem:[%s2124_s2 + $0xa0] sm:$0xff] %v1427_v38  }
 0x10d   :  { %v1085_v46 = vadd.f32 %v1084_v42, %v1022_v39  ;;  %v1585_v47 = vpop.f32.mrb[12].mxu0  ;;  %v953_v48 = vadd.f32 %v1582_v28, %v952_v40  ;;  %v1903_v49 = vpop.f32.mrb[12].mxu1 }
 0x10e   :  { %v416_v51 = vpop.f32.mrb[13].mxu0  ;;  %v1905_v52 = vpop.f32.mrb[13].mxu1  ;;  %v1026_v6 = vmul.f32 %v1585_v47, %v1585_v47 }
 0x10f   :  { %v954_v53 = vadd.f32 %v953_v48, %v416_v51  ;;  %v1024_v54 = vmul.f32 %v416_v51, %v416_v51  ;;  %v1086_v55 = vadd.f32 %v1085_v46, %v1023_v44  ;;  %v1586_v56 = vpop.f32.mrb[14].mxu0  ;;  %v1907_v57 = vpop.f32.mrb[14].mxu1 }
 0x110   :  { %v1362_v58 = vpack.c.bf16 %v1586_v56, %v1585_v47  ;;  %v419_v59 = vpop.f32.mrb[15].mxu0  ;;  %v1442_v60 = vpack.c.bf16 %v1907_v57, %v1903_v49  ;;  %v1911_v61 = vpop.f32.mrb[15].mxu1  ;;  %v1027_v10 = vmul.f32 %v1586_v56, %v1586_v56 }
 0x111   :  { %v1087_v63 = vadd.f32 %v1086_v55, %v1024_v54  ;;  %v1357_v1 = vpack.c.bf16 %v419_v59, %v416_v51  ;;  %v955_v2 = vadd.f32 %v954_v53, %v419_v59  ;;  %v1025_v3 = vmul.f32 %v419_v59, %v419_v59 }
 0x112   :  { %1490 = vst [vmem:[%s2124_s2 + $0x38] sm:$0xff] %v1362_v58   ;;  %1506 = vst [vmem:[%s2124_s2 + $0xb8] sm:$0xff] %v1442_v60   ;;  %v1437_v4 = vpack.c.bf16 %v1911_v61, %v1905_v52 }
 0x113   :  { %1489 = vst [vmem:[%s2124_s2 + $0x30] sm:$0xff] %v1357_v1   ;;  %v956_v7 = vadd.f32 %v1585_v47, %v955_v2  ;;  %v1088_v8 = vadd.f32 %v1087_v63, %v1025_v3 }
 0x114   :  { %1505 = vst [vmem:[%s2124_s2 + $0xb0] sm:$0xff] %v1437_v4  }
 0x115   :  { %v1089_v11 = vadd.f32 %v1088_v8, %v1026_v6  ;;  %v1589_v12 = vpop.f32.mrb[16].mxu0  ;;  %v957_v13 = vadd.f32 %v1586_v56, %v956_v7  ;;  %v1927_v14 = vpop.f32.mrb[16].mxu1 }
 0x116   :  { %v432_v15 = vpop.f32.mrb[17].mxu0  ;;  %v1929_v16 = vpop.f32.mrb[17].mxu1  ;;  %v1030_v35 = vmul.f32 %v1589_v12, %v1589_v12 }
 0x117   :  { %v958_v17 = vadd.f32 %v957_v13, %v432_v15  ;;  %v1028_v18 = vmul.f32 %v432_v15, %v432_v15  ;;  %v1090_v19 = vadd.f32 %v1089_v11, %v1027_v10  ;;  %v1590_v20 = vpop.f32.mrb[18].mxu0  ;;  %v1931_v21 = vpop.f32.mrb[18].mxu1 }
 0x118   :  { %v1372_v23 = vpack.c.bf16 %v1590_v20, %v1589_v12  ;;  %v435_v25 = vpop.f32.mrb[19].mxu0  ;;  %v1452_v26 = vpack.c.bf16 %v1931_v21, %v1927_v14  ;;  %v1935_v27 = vpop.f32.mrb[19].mxu1  ;;  %v1031_v38 = vmul.f32 %v1590_v20, %v1590_v20 }
 0x119   :  { %v1091_v28 = vadd.f32 %v1090_v19, %v1028_v18  ;;  %v1367_v30 = vpack.c.bf16 %v435_v25, %v432_v15  ;;  %v959_v31 = vadd.f32 %v958_v17, %v435_v25  ;;  %v1029_v32 = vmul.f32 %v435_v25, %v435_v25 }
 0x11a   :  { %1492 = vst [vmem:[%s2124_s2 + $0x48] sm:$0xff] %v1372_v23   ;;  %1508 = vst [vmem:[%s2124_s2 + $0xc8] sm:$0xff] %v1452_v26   ;;  %v1447_v34 = vpack.c.bf16 %v1935_v27, %v1929_v16 }
 0x11b   :  { %1491 = vst [vmem:[%s2124_s2 + $0x40] sm:$0xff] %v1367_v30   ;;  %v960_v36 = vadd.f32 %v1589_v12, %v959_v31  ;;  %v1092_v37 = vadd.f32 %v1091_v28, %v1029_v32 }
 0x11c   :  { %1507 = vst [vmem:[%s2124_s2 + $0xc0] sm:$0xff] %v1447_v34  }
 0x11d   :  { %v1093_v39 = vadd.f32 %v1092_v37, %v1030_v35  ;;  %v1593_v40 = vpop.f32.mrb[20].mxu0  ;;  %v961_v42 = vadd.f32 %v1590_v20, %v960_v36  ;;  %v1951_v44 = vpop.f32.mrb[20].mxu1 }
 0x11e   :  { %v448_v46 = vpop.f32.mrb[21].mxu0  ;;  %v1953_v47 = vpop.f32.mrb[21].mxu1  ;;  %v1034_v6 = vmul.f32 %v1593_v40, %v1593_v40 }
 0x11f   :  { %v962_v48 = vadd.f32 %v961_v42, %v448_v46  ;;  %v1032_v51 = vmul.f32 %v448_v46, %v448_v46  ;;  %v1094_v53 = vadd.f32 %v1093_v39, %v1031_v38  ;;  %v1594_v54 = vpop.f32.mrb[22].mxu0  ;;  %v1955_v55 = vpop.f32.mrb[22].mxu1 }
 0x120   :  { %v1382_v56 = vpack.c.bf16 %v1594_v54, %v1593_v40  ;;  %v451_v58 = vpop.f32.mrb[23].mxu0  ;;  %v1462_v59 = vpack.c.bf16 %v1955_v55, %v1951_v44  ;;  %v1959_v60 = vpop.f32.mrb[23].mxu1  ;;  %v1035_v10 = vmul.f32 %v1594_v54, %v1594_v54 }
 0x121   :  { %v1095_v63 = vadd.f32 %v1094_v53, %v1032_v51  ;;  %v1377_v1 = vpack.c.bf16 %v451_v58, %v448_v46  ;;  %v963_v2 = vadd.f32 %v962_v48, %v451_v58  ;;  %v1033_v3 = vmul.f32 %v451_v58, %v451_v58 }
 0x122   :  { %1494 = vst [vmem:[%s2124_s2 + $0x58] sm:$0xff] %v1382_v56   ;;  %1510 = vst [vmem:[%s2124_s2 + $0xd8] sm:$0xff] %v1462_v59   ;;  %v1457_v4 = vpack.c.bf16 %v1959_v60, %v1953_v47 }
 0x123   :  { %1493 = vst [vmem:[%s2124_s2 + $0x50] sm:$0xff] %v1377_v1   ;;  %v964_v7 = vadd.f32 %v1593_v40, %v963_v2  ;;  %v1096_v8 = vadd.f32 %v1095_v63, %v1033_v3 }
 0x124   :  { %1509 = vst [vmem:[%s2124_s2 + $0xd0] sm:$0xff] %v1457_v4  }
 0x125   :  { %v1097_v11 = vadd.f32 %v1096_v8, %v1034_v6  ;;  %v1597_v12 = vpop.f32.mrb[24].mxu0  ;;  %v965_v13 = vadd.f32 %v1594_v54, %v964_v7  ;;  %v1975_v15 = vpop.f32.mrb[24].mxu1 }
 0x126   :  { %v464_v17 = vpop.f32.mrb[25].mxu0  ;;  %v1977_v18 = vpop.f32.mrb[25].mxu1  ;;  %v1038_v39 = vmul.f32 %v1597_v12, %v1597_v12 }
 0x127   :  { %v966_v19 = vadd.f32 %v965_v13, %v464_v17  ;;  %v1036_v20 = vmul.f32 %v464_v17, %v464_v17  ;;  %v1098_v23 = vadd.f32 %v1097_v11, %v1035_v10  ;;  %v1598_v25 = vpop.f32.mrb[26].mxu0  ;;  %v1979_v26 = vpop.f32.mrb[26].mxu1 }
 0x128   :  { %v1392_v28 = vpack.c.bf16 %v1598_v25, %v1597_v12  ;;  %v467_v30 = vpop.f32.mrb[27].mxu0  ;;  %v1472_v31 = vpack.c.bf16 %v1979_v26, %v1975_v15  ;;  %v1983_v32 = vpop.f32.mrb[27].mxu1  ;;  %v1039_v46 = vmul.f32 %v1598_v25, %v1598_v25 }
 0x129   :  { %v1099_v34 = vadd.f32 %v1098_v23, %v1036_v20  ;;  %v1387_v35 = vpack.c.bf16 %v467_v30, %v464_v17  ;;  %v967_v36 = vadd.f32 %v966_v19, %v467_v30  ;;  %v1037_v37 = vmul.f32 %v467_v30, %v467_v30 }
 0x12a   :  { %1496 = vst [vmem:[%s2124_s2 + $0x68] sm:$0xff] %v1392_v28   ;;  %1512 = vst [vmem:[%s2124_s2 + $0xe8] sm:$0xff] %v1472_v31   ;;  %v1467_v38 = vpack.c.bf16 %v1983_v32, %v1977_v18  ;;  %v1044_v31 = vmul.f32 %v1833_v43, %v1833_v43 }
 0x12b   :  { %1495 = vst [vmem:[%s2124_s2 + $0x60] sm:$0xff] %v1387_v35   ;;  %v968_v40 = vadd.f32 %v1597_v12, %v967_v36  ;;  %v1100_v42 = vadd.f32 %v1099_v34, %v1037_v37 }
 0x12c   :  { %1511 = vst [vmem:[%s2124_s2 + $0xe0] sm:$0xff] %v1467_v38   ;;  %v1045_v38 = vmul.f32 %v1839_v50, %v1839_v50 }
 0x12d   :  { %v1101_v48 = vadd.f32 %v1100_v42, %v1038_v39  ;;  %v1601_v51 = vpop.f32.mrb[28].mxu0  ;;  %v969_v53 = vadd.f32 %v1598_v25, %v968_v40  ;;  %v1999_v54 = vpop.f32.mrb[28].mxu1  ;;  %v1046_v39 = vmul.f32 %v1831_v41, %v1831_v41 }
 0x12e   :  { %v480_v56 = vpop.f32.mrb[29].mxu0  ;;  %v2001_v58 = vpop.f32.mrb[29].mxu1  ;;  %v1042_v19 = vmul.f32 %v1601_v51, %v1601_v51 }
 0x12f   :  { %v970_v59 = vadd.f32 %v969_v53, %v480_v56  ;;  %v1040_v63 = vmul.f32 %v480_v56, %v480_v56  ;;  %v1102_v1 = vadd.f32 %v1101_v48, %v1039_v46  ;;  %v1602_v2 = vpop.f32.mrb[30].mxu0  ;;  %v2003_v3 = vpop.f32.mrb[30].mxu1  ;;  %v1047_v46 = vmul.f32 %v1835_v45, %v1835_v45 }
 0x130   :  { %v1402_v4 = vpack.c.bf16 %v1602_v2, %v1601_v51  ;;  %v483_v6 = vpop.f32.mrb[31].mxu0  ;;  %v1482_v7 = vpack.c.bf16 %v2003_v3, %v1999_v54  ;;  %v2007_v8 = vpop.f32.mrb[31].mxu1  ;;  %v1043_v25 = vmul.f32 %v1602_v2, %v1602_v2 }
 0x131   :  { %v1103_v10 = vadd.f32 %v1102_v1, %v1040_v63  ;;  %v1397_v11 = vpack.c.bf16 %v483_v6, %v480_v56  ;;  %v971_v12 = vadd.f32 %v970_v59, %v483_v6  ;;  %v1041_v13 = vmul.f32 %v483_v6, %v483_v6 }
 0x132   :  { %1498 = vst [vmem:[%s2124_s2 + $0x78] sm:$0xff] %v1402_v4   ;;  %1514 = vst [vmem:[%s2124_s2 + $0xf8] sm:$0xff] %v1482_v7   ;;  %v1477_v17 = vpack.c.bf16 %v2007_v8, %v2001_v58  ;;  %v1049_v63 = vmul.f32 %v1863_v9, %v1863_v9 }
 0x133   :  { %1497 = vst [vmem:[%s2124_s2 + $0x70] sm:$0xff] %v1397_v11   ;;  %v972_v20 = vadd.f32 %v1601_v51, %v971_v12  ;;  %v1104_v23 = vadd.f32 %v1103_v10, %v1041_v13  ;;  %v1053_v12 = vmul.f32 %v1887_v33, %v1887_v33 }
 0x134   :  { %1513 = vst [vmem:[%s2124_s2 + $0xf0] sm:$0xff] %v1477_v17  }
 0x135   :  { %v1105_v28 = vadd.f32 %v1104_v23, %v1042_v19  ;;  %v973_v30 = vadd.f32 %v1602_v2, %v972_v20 }
 0x137   :  { %v974_v34 = vadd.f32 %v973_v30, %v1833_v43  ;;  %v1106_v35 = vadd.f32 %v1105_v28, %v1043_v25  ;;  %v1048_v43 = vmul.f32 %v1857_v0, %v1857_v0  ;;  %v1057_v30 = vmul.f32 %v1911_v61, %v1911_v61 }
 0x139   :  { %v1107_v36 = vadd.f32 %v1106_v35, %v1044_v31  ;;  %v975_v37 = vadd.f32 %v974_v34, %v1839_v50 }
 0x13b   :  { %v976_v40 = vadd.f32 %v1831_v41, %v975_v37  ;;  %v1108_v42 = vadd.f32 %v1107_v36, %v1045_v38  ;;  %v1050_v41 = vmul.f32 %v1855_v62, %v1855_v62 }
 0x13d   :  { %v1109_v48 = vadd.f32 %v1108_v42, %v1046_v39  ;;  %v977_v51 = vadd.f32 %v1835_v45, %v976_v40  ;;  %v1051_v45 = vmul.f32 %v1859_v5, %v1859_v5  ;;  %v1061_v40 = vmul.f32 %v1935_v27, %v1935_v27 }
 0x13f   :  { %v978_v53 = vadd.f32 %v977_v51, %v1857_v0  ;;  %v1110_v56 = vadd.f32 %v1109_v48, %v1047_v46  ;;  %v1052_v0 = vmul.f32 %v1881_v24, %v1881_v24 }
 0x141   :  { %v1111_v59 = vadd.f32 %v1110_v56, %v1048_v43  ;;  %v979_v50 = vadd.f32 %v978_v53, %v1863_v9 }
 0x143   :  { %v980_v1 = vadd.f32 %v1855_v62, %v979_v50  ;;  %v1112_v2 = vadd.f32 %v1111_v59, %v1049_v63  ;;  %v1054_v62 = vmul.f32 %v1879_v22, %v1879_v22  ;;  %v1065_v59 = vmul.f32 %v1959_v60, %v1959_v60 }
 0x145   :  { %v1113_v4 = vadd.f32 %v1112_v2, %v1050_v41  ;;  %v981_v6 = vadd.f32 %v1859_v5, %v980_v1  ;;  %v1055_v5 = vmul.f32 %v1883_v29, %v1883_v29 }
 0x147   :  { %v982_v7 = vadd.f32 %v981_v6, %v1881_v24  ;;  %v1114_v10 = vadd.f32 %v1113_v4, %v1051_v45  ;;  %v1056_v24 = vmul.f32 %v1905_v52, %v1905_v52  ;;  %v1069_v6 = vmul.f32 %v1983_v32, %v1983_v32 }
 0x149   :  { %v1115_v11 = vadd.f32 %v1114_v10, %v1052_v0  ;;  %v983_v9 = vadd.f32 %v982_v7, %v1887_v33 }
 0x14b   :  { %v984_v13 = vadd.f32 %v1879_v22, %v983_v9  ;;  %v1116_v17 = vadd.f32 %v1115_v11, %v1053_v12  ;;  %v1058_v22 = vmul.f32 %v1903_v49, %v1903_v49 }
 0x14d   :  { %v1117_v19 = vadd.f32 %v1116_v17, %v1054_v62  ;;  %v985_v20 = vadd.f32 %v1883_v29, %v984_v13  ;;  %v1059_v29 = vmul.f32 %v1907_v57, %v1907_v57  ;;  %v1073_v13 = vmul.f32 %v2007_v8, %v2007_v8 }
 0x14f   :  { %v986_v23 = vadd.f32 %v985_v20, %v1905_v52  ;;  %v1118_v25 = vadd.f32 %v1117_v19, %v1055_v5  ;;  %v1060_v52 = vmul.f32 %v1929_v16, %v1929_v16 }
 0x151   :  { %v1119_v28 = vadd.f32 %v1118_v25, %v1056_v24  ;;  %v987_v33 = vadd.f32 %v986_v23, %v1911_v61 }
 0x153   :  { %v988_v31 = vadd.f32 %v1903_v49, %v987_v33  ;;  %v1120_v34 = vadd.f32 %v1119_v28, %v1057_v30  ;;  %v1062_v49 = vmul.f32 %v1927_v14, %v1927_v14 }
 0x155   :  { %v1121_v35 = vadd.f32 %v1120_v34, %v1058_v22  ;;  %v989_v36 = vadd.f32 %v1907_v57, %v988_v31  ;;  %v1063_v57 = vmul.f32 %v1931_v21, %v1931_v21 }
 0x157   :  { %v990_v37 = vadd.f32 %v989_v36, %v1929_v16  ;;  %v1122_v38 = vadd.f32 %v1121_v35, %v1059_v29  ;;  %v1064_v16 = vmul.f32 %v1953_v47, %v1953_v47 }
 0x159   :  { %v1123_v39 = vadd.f32 %v1122_v38, %v1060_v52  ;;  %v991_v61 = vadd.f32 %v990_v37, %v1935_v27 }
 0x15b   :  { %v992_v42 = vadd.f32 %v1927_v14, %v991_v61  ;;  %v1124_v46 = vadd.f32 %v1123_v39, %v1061_v40  ;;  %v1066_v14 = vmul.f32 %v1951_v44, %v1951_v44 }
 0x15d   :  { %v1125_v48 = vadd.f32 %v1124_v46, %v1062_v49  ;;  %v993_v51 = vadd.f32 %v1931_v21, %v992_v42  ;;  %v1067_v21 = vmul.f32 %v1955_v55, %v1955_v55 }
 0x15f   :  { %v994_v43 = vadd.f32 %v993_v51, %v1953_v47  ;;  %v1126_v53 = vadd.f32 %v1125_v48, %v1063_v57  ;;  %v1068_v47 = vmul.f32 %v1977_v18, %v1977_v18 }
 0x161   :  { %v1127_v56 = vadd.f32 %v1126_v53, %v1064_v16  ;;  %v995_v27 = vadd.f32 %v994_v43, %v1959_v60 }
 0x163   :  { %v996_v50 = vadd.f32 %v1951_v44, %v995_v27  ;;  %v1128_v63 = vadd.f32 %v1127_v56, %v1065_v59  ;;  %v1070_v44 = vmul.f32 %v1975_v15, %v1975_v15 }
 0x165   :  { %v1129_v41 = vadd.f32 %v1128_v63, %v1066_v14  ;;  %v997_v1 = vadd.f32 %v1955_v55, %v996_v50  ;;  %v1071_v55 = vmul.f32 %v1979_v26, %v1979_v26 }
 0x167   :  { %v998_v2 = vadd.f32 %v997_v1, %v1977_v18  ;;  %v1130_v45 = vadd.f32 %v1129_v41, %v1067_v21  ;;  %v1072_v18 = vmul.f32 %v2001_v58, %v2001_v58 }
 0x169   :  { %v1131_v4 = vadd.f32 %v1130_v45, %v1068_v47  ;;  %v999_v60 = vadd.f32 %v998_v2, %v1983_v32 }
 0x16b   :  { %v1000_v0 = vadd.f32 %v1975_v15, %v999_v60  ;;  %v1132_v7 = vadd.f32 %v1131_v4, %v1069_v6  ;;  %v1074_v15 = vmul.f32 %v1999_v54, %v1999_v54 }
 0x16d   :  { %v1133_v10 = vadd.f32 %v1132_v7, %v1070_v44  ;;  %v1001_v11 = vadd.f32 %v1979_v26, %v1000_v0  ;;  %v1075_v26 = vmul.f32 %v2003_v3, %v2003_v3 }
 0x16f   :  { %v1002_v9 = vadd.f32 %v1001_v11, %v2001_v58  ;;  %v1134_v12 = vadd.f32 %v1133_v10, %v1071_v55 }
 0x171   :  { %v1135_v62 = vadd.f32 %v1134_v12, %v1072_v18  ;;  %v1003_v32 = vadd.f32 %v1002_v9, %v2007_v8 }
 0x173   :  { %v1004_v17 = vadd.f32 %v1999_v54, %v1003_v32  ;;  %v1136_v5 = vadd.f32 %v1135_v62, %v1073_v13 }
 0x175   :  { %v1005_v19 = vadd.f32 %v2003_v3, %v1004_v17  ;;  %v1137_v20 = vadd.f32 %v1136_v5, %v1074_v15 }
 0x177   :  { %v1006_v58 = vrot.slane %v1005_v19, 4  ;;  %v1138_v24 = vadd.f32 %v1137_v20, %v1075_v26 }
 0x179   :  { %v1007_v23 = vadd.f32 %v1006_v58, %v1005_v19  ;;  %v1139_v25 = vrot.slane %v1138_v24, 4 }
 0x17b   :  { %v1008_v28 = vrot.slane %v1007_v23, 2  ;;  %v1140_v33 = vadd.f32 %v1139_v25, %v1138_v24 }
 0x17d   :  { %v1009_v30 = vadd.f32 %v1008_v28, %v1007_v23  ;;  %v1141_v8 = vrot.slane %v1140_v33, 2 }
 0x17f   :  { %v1010_v22 = vrot.slane %v1009_v30, 1  ;;  %v1142_v31 = vadd.f32 %v1141_v8, %v1140_v33 }
 0x181   :  { %v1143_v34 = vrot.slane %v1142_v31, 1  ;;  %v1011_v54 = vadd.f32 %v1010_v22, %v1009_v30 }
 0x183   :  { %v1144_v29 = vadd.f32 %v1143_v34, %v1142_v31 }
 0x185   :  { %v1146_v35 = vsel %vm1145_vm0, %v1011_v54, %v1144_v29 }
 0x186   :  { %1147 = vst [vmem:[%s2125_s3] sm:$0x3] %v1146_v35 }

// kernel: resnext_block_forward.7
= control target key start
LH: loop header
LB: loop body
LE: loop exit
PB: predicated region body
PF: predicated region fallthrough
CT: control target
= control target key end

     0   :  { %s2856_s12 = smov 0   ;;  %s3295_s0 = inlined_call_operand.vmem [shape: bf16[2,18,2,9,128], index: 0, kind: input, shape index: {}]   ;;  %s3296_s1 = inlined_call_operand.vmem [shape: bf16[9,1,128,128], index: 1, kind: input, shape index: {}]   ;;  %s3297_s2 = inlined_call_operand.vmem [shape: bf16[128,128], index: 2, kind: output, shape index: {0}]   ;;  %s3298_s3 = inlined_call_operand.vmem [shape: f32[2,2,128], index: 3, kind: output, shape index: {1}]  }
   0x1 LB: > { %s2862_s13 = sadd.s32 4294967295, %s2834_s12   ;;  %p2044_p0 = scmp.ge.s32.totalorder %s2834_s12, 1  ;;  %s2834_s12 = sphi %s2856_s12, %s14_s12  }
   0x2   : > { %p140_p1 = scmp.lt.s32.totalorder %s2834_s12, 3 }
   0x4   : > { %p141_p2 = pnand %p2044_p0, %p140_p1 }
   0x5   : > { %v2756_v0 = vld [vmem:[%s3296_s1 + $0xc0] sm:$0xff] (!%p141_p2)   ;;  %p168_p3 = scmp.lt.s32.totalorder (!%p141_p2), %s2862_s13, 1  ;;  %v2758_v2 = vld [vmem:[%s3296_s1 + $0xc8] sm:$0xff] (!%p141_p2)   ;;  %v2760_v4 = vld [vmem:[%s3296_s1 + $0xd0] sm:$0xff] (!%p141_p2)   ;;  %vm1180_vm0 = vsmask.f32 (!%p141_p2), 3328 }
   0x6   : > { %144 = sbr.rel (%p141_p2) target bundleno = 414 (0x19e), region = 28  ;;  %v2757_v1 = vld [vmem:[%s3296_s1 + $0x100] sm:$0xff] (!%p141_p2)   ;;  %2451 = vmatprep.subr.bf16.mxu1 (!%p141_p2), %v2756_v0  ;;  %v2759_v3 = vld [vmem:[%s3296_s1 + $0x108] sm:$0xff] (!%p141_p2)   ;;  %v2761_v5 = vld [vmem:[%s3296_s1 + $0x110] sm:$0xff] (!%p141_p2)   ;;  %vm1181_vm1 = vsmask.f32 (!%p141_p2), 7440 }
   0x7   : > { %2547 = vmatprep.subr.bf16.mxu0 (!%p141_p2), %v2757_v1  ;;  %2452 = vmatpush3.bf16.msra.mxu1 (!%p141_p2), %v2756_v0  ;;  %v2762_v6 = vld [vmem:[%s3296_s1 + $0xd8] sm:$0xff] (!%p141_p2)   ;;  %v2764_v8 = vld [vmem:[%s3296_s1 + $0xe0] sm:$0xff] (!%p141_p2)   ;;  %v2766_v10 = vld [vmem:[%s3296_s1 + $0xe8] sm:$0xff] (!%p141_p2)   ;;  %s2046_s22 = sshll.u32 (!%p141_p2), %s2862_s13, 3  ;;  %vm1950_vm3 = vcmask (!%p141_p2), 1040384  }
   0x8   : > { %2548 = vmatpush3.bf16.msra.mxu0 (!%p141_p2), %v2757_v1  ;;  %2453 = vmatprep.subr.bf16.mxu1 (!%p141_p2), %v2758_v2  ;;  %v2763_v7 = vld [vmem:[%s3296_s1 + $0x118] sm:$0xff] (!%p141_p2)   ;;  %v2765_v9 = vld [vmem:[%s3296_s1 + $0x120] sm:$0xff] (!%p141_p2)   ;;  %v2767_v13 = vld [vmem:[%s3296_s1 + $0x128] sm:$0xff] (!%p141_p2)   ;;  %p174_p4 = scmp.lt.s32.totalorder (!%p141_p2), %s2046_s22, 15 }
   0x9   : > { %2549 = vmatprep.subr.bf16.mxu0 (!%p141_p2), %v2759_v3  ;;  %v2768_v18 = vld [vmem:[%s3296_s1 + $0xf0] sm:$0xff] (!%p141_p2)   ;;  %v2770_v20 = vld [vmem:[%s3296_s1 + $0xf8] sm:$0xff] (!%p141_p2)   ;;  %v2772_v23 = vld [vmem:[%s3296_s1] sm:$0xff] (!%p141_p2)  }
   0xa   : > { %v2769_v19 = vld [vmem:[%s3296_s1 + $0x130] sm:$0xff] (!%p141_p2)   ;;  %v2771_v21 = vld [vmem:[%s3296_s1 + $0x138] sm:$0xff] (!%p141_p2)   ;;  %v2773_v27 = vld [vmem:[%s3296_s1 + $0x1c0] sm:$0xff] (!%p141_p2)  }
   0xb   : > { %2454 = vmatpush3.bf16.msra.mxu1 (!%p141_p2), %v2758_v2  ;;  %v2774_v32 = vld [vmem:[%s3296_s1 + $0x8] sm:$0xff] (!%p141_p2)   ;;  %v2776_v37 = vld [vmem:[%s3296_s1 + $0x10] sm:$0xff] (!%p141_p2)   ;;  %v2778_v50 = vld [vmem:[%s3296_s1 + $0x18] sm:$0xff] (!%p141_p2)  }
   0xc   : > { %2550 = vmatpush3.bf16.msra.mxu0 (!%p141_p2), %v2759_v3  ;;  %2455 = vmatprep.subr.bf16.mxu1 (!%p141_p2), %v2760_v4  ;;  %v2775_v35 = vld [vmem:[%s3296_s1 + $0x1c8] sm:$0xff] (!%p141_p2)   ;;  %v2777_v43 = vld [vmem:[%s3296_s1 + $0x1d0] sm:$0xff] (!%p141_p2)   ;;  %v2779_v51 = vld [vmem:[%s3296_s1 + $0x1d8] sm:$0xff] (!%p141_p2)  }
   0xd   : > { %s2886_s26 = scalar_select %p168_p3, %s2862_s13, 1  ;;  %2551 = vmatprep.subr.bf16.mxu0 %v2761_v5  ;;  %v2780_v54 = vld [vmem:[%s3296_s1 + $0x20] sm:$0xff]   ;;  %v2782_v56 = vld [vmem:[%s3296_s1 + $0x28] sm:$0xff]   ;;  %v2784_v58 = vld [vmem:[%s3296_s1 + $0x30] sm:$0xff]  }
   0xe   : > { %v2781_v55 = vld [vmem:[%s3296_s1 + $0x1e0] sm:$0xff]   ;;  %v2783_v57 = vld [vmem:[%s3296_s1 + $0x1e8] sm:$0xff]   ;;  %v2785_v59 = vld [vmem:[%s3296_s1 + $0x1f0] sm:$0xff]   ;;  %s3302_s22 = smov (!%p174_p4, %s2046_s22), 15 }
   0xf   : > { %s2747_s4 = smul.u32 288, %s2886_s26  ;;  %2456 = vmatpush3.bf16.msra.mxu1 %v2760_v4  ;;  %v2786_v60 = vld [vmem:[%s3296_s1 + $0x38] sm:$0xff]   ;;  %v2788_v0 = vld [vmem:[%s3296_s1 + $0x180] sm:$0xff]   ;;  %vm3067_vm2 = vmor %vm1180_vm0, %vm1181_vm1  ;;  %s2047_s23 = sshll.u32 %s3302_s22, 2 }
  0x10   : > { %2552 = vmatpush3.bf16.msra.mxu0 %v2761_v5  ;;  %2457 = vmatprep.subr.bf16.mxu1 %v2762_v6  ;;  %v2787_v61 = vld [vmem:[%s3296_s1 + $0x1f8] sm:$0xff]   ;;  %v2789_v2 = vld [vmem:[%s3296_s1 + $0x80] sm:$0xff]   ;;  %s177_s27 = scalar_lea.vmem %s3297_s2, %s2047_s23  ;;  %s2048_s13 = sshll.u32 %s2886_s26, 1 }
  0x11   : > { %2553 = vmatprep.subr.bf16.mxu0 %v2763_v7  ;;  %s2904_s11 = scalar_lea.vmem %s3295_s0, %s2747_s4  ;;  %s182_s30 = scalar_lea.vmem %s3298_s3, %s2048_s13 }
  0x12   : > { %v185_v11 = vld [vmem:[%s2904_s11 + $0x10] sm:$0xf]  ;;  %v2118_v15 = vld [vmem:[%s2904_s11 + $0x18] sm:$0xf]  ;;  %v184_v44 = vld [vmem:[%s2904_s11] sm:$0xf] }
  0x13   : > { %2458 = vmatpush3.bf16.msra.mxu1 %v2762_v6  ;;  %v187_v12 = vld [vmem:[%s2904_s11 + $0x30] sm:$0xf]  ;;  %v2120_v16 = vld [vmem:[%s2904_s11 + $0x38] sm:$0xf]  ;;  %v2960_v46 = vld [vmem:[%s2904_s11 + $0x20] sm:$0xf] }
  0x14   : > { %2554 = vmatpush3.bf16.msra.mxu0 %v2763_v7  ;;  %2459 = vmatprep.subr.bf16.mxu1 %v2764_v8  ;;  %v2065_v14 = vcombine.low %v185_v11, %v187_v12  ;;  %v2178_v17 = vcombine.low %v2118_v15, %v2120_v16  ;;  %v189_v22 = vld [vmem:[%s2904_s11 + $0x50] sm:$0xf]  ;;  %v2122_v25 = vld [vmem:[%s2904_s11 + $0x58] sm:$0xf]  ;;  %v2963_v48 = vld [vmem:[%s2904_s11 + $0x28] sm:$0xf]  ;;  %v2077_v52 = vcombine.low %v184_v44, %v2960_v46 }
  0x15   : > { %2555 = vmatprep.subr.bf16.mxu0 %v2765_v9  ;;  %v191_v24 = vld [vmem:[%s2904_s11 + $0x70] sm:$0xf]  ;;  %v2124_v26 = vld [vmem:[%s2904_s11 + $0x78] sm:$0xf]  ;;  %v2966_v49 = vld [vmem:[%s2904_s11 + $0x48] sm:$0xf] }
  0x16   : > { %2467 = vmatprep.mubr.bf16.mxu1 %v2065_v14  ;;  %2563 = vmatprep.mubr.bf16.mxu0 %v2178_v17  ;;  %v2066_v28 = vcombine.low %v189_v22, %v191_v24  ;;  %v193_v29 = vld [vmem:[%s2904_s11 + $0x90] sm:$0xf]  ;;  %v2179_v30 = vcombine.low %v2122_v25, %v2124_v26  ;;  %v2126_v33 = vld [vmem:[%s2904_s11 + $0x98] sm:$0xf]  ;;  %v2206_v53 = vcombine.low %v2963_v48, %v2966_v49  ;;  %v3002_v62 = vld [vmem:[%s2904_s11 + $0x68] sm:$0xf] }
  0x17   : > { %2460 = vmatpush3.bf16.msra.mxu1 %v2764_v8  ;;  %v195_v31 = vld [vmem:[%s2904_s11 + $0xb0] sm:$0xf]  ;;  %v2128_v34 = vld [vmem:[%s2904_s11 + $0xb8] sm:$0xf]  ;;  %v3005_v63 = vld [vmem:[%s2904_s11 + $0x88] sm:$0xf] }
  0x18   : > { %2556 = vmatpush3.bf16.msra.mxu0 %v2765_v9  ;;  %2461 = vmatprep.subr.bf16.mxu1 %v2766_v10  ;;  %v2067_v36 = vcombine.low %v193_v29, %v195_v31  ;;  %v2180_v38 = vcombine.low %v2126_v33, %v2128_v34  ;;  %v197_v39 = vld [vmem:[%s2904_s11 + $0xd0] sm:$0xf]  ;;  %v2130_v41 = vld [vmem:[%s2904_s11 + $0xd8] sm:$0xf]  ;;  %v3011_v1 = vld [vmem:[%s2904_s11 + $0x40] sm:$0xf] }
  0x19   : > { %2557 = vmatprep.subr.bf16.mxu0 %v2767_v13  ;;  %v199_v40 = vld [vmem:[%s2904_s11 + $0xf0] sm:$0xf]  ;;  %v2132_v42 = vld [vmem:[%s2904_s11 + $0xf8] sm:$0xf]  ;;  %v3017_v3 = vld [vmem:[%s2904_s11 + $0x60] sm:$0xf] }
  0x1a   : > { %v2068_v45 = vcombine.low %v197_v39, %v199_v40  ;;  %v2181_v47 = vcombine.low %v2130_v41, %v2132_v42  ;;  %v1146_v4 = vld [vmem:[%s2904_s11] sm:$0xf]  ;;  %v1147_v6 = vld [vmem:[%s2904_s11 + $0x4] sm:$0x1]  ;;  %v2078_v14 = vcombine.low %v3011_v1, %v3017_v3  ;;  %v3037_v15 = vld [vmem:[%s2904_s11 + $0xc8] sm:$0xf] }
  0x1b   : > { %2462 = vmatpush3.bf16.msra.mxu1 %v2766_v10  ;;  %v3021_v5 = vld [vmem:[%s2904_s11 + $0x80] sm:$0xf]  ;;  %v1151_v8 = vld [vmem:[%s2904_s11 + $0x24] sm:$0x1]  ;;  %v3030_v10 = vld [vmem:[%s2904_s11 + $0xa8] sm:$0xf] }
  0x1c   : > { %2558 = vmatpush3.bf16.msra.mxu0 %v2767_v13  ;;  %2463 = vmatprep.subr.bf16.mxu1 %v2768_v18  ;;  %v1150_v7 = vld [vmem:[%s2904_s11 + $0x20] sm:$0xf]  ;;  %v1184_v11 = vshrl.u32 %v1146_v4, 16  ;;  %v1187_v12 = vshll.u32 %v1146_v4, 16  ;;  %v2207_v13 = vcombine.low %v3002_v62, %v3005_v63  ;;  %v2790_v22 = vld [vmem:[%s3296_s1 + $0x188] sm:$0xff]   ;;  %v2792_v29 = vld [vmem:[%s3296_s1 + $0x190] sm:$0xff]  }
  0x1d   : > { %2559 = vmatprep.subr.bf16.mxu0 %v2769_v19  ;;  %v3027_v9 = vld [vmem:[%s2904_s11 + $0xa0] sm:$0xf]  ;;  %v1198_v16 = vshrl.u32 %v1150_v7, 16  ;;  %v1201_v17 = vshll.u32 %v1150_v7, 16  ;;  %v2793_v34 = vld [vmem:[%s3296_s1 + $0x90] sm:$0xff]   ;;  %v2798_v7 = vld [vmem:[%s3296_s1 + $0x1a8] sm:$0xff]  }
  0x1e   : > { %v2079_v26 = vcombine.low %v3021_v5, %v3027_v9  ;;  %v3056_v31 = vld [vmem:[%s2904_s11 + $0xe0] sm:$0xf] }
  0x1f   : > { %2464 = vmatpush3.bf16.msra.mxu1 %v2768_v18  ;;  %v1186_v18 = vrot.slane %v1184_v11, 4  ;;  %v1200_v24 = vrot.slane %v1198_v16, 4  ;;  %v1203_v25 = vrot.slane %v1201_v17, 5  ;;  %v1154_v41 = vld [vmem:[%s2904_s11 + $0x40] sm:$0xf]  ;;  %v2799_v17 = vld [vmem:[%s3296_s1 + $0xa8] sm:$0xff]  }
  0x20   : > { %2560 = vmatpush3.bf16.msra.mxu0 %v2769_v19  ;;  %2465 = vmatprep.subr.bf16.mxu1 %v2770_v20  ;;  %v1189_v19 = vrot.slane %v1187_v12, 5  ;;  %v1158_v42 = vld [vmem:[%s2904_s11 + $0x60] sm:$0xf] }
  0x21   : > { %2561 = vmatprep.subr.bf16.mxu0 %v2771_v21  ;;  %v1204_v33 = vor.u32 %v1203_v25, %v1200_v24  ;;  %v1162_v4 = vld [vmem:[%s2904_s11 + $0x80] sm:$0xf]  ;;  %v1167_v24 = vld [vmem:[%s2904_s11 + $0xa4] sm:$0x1] }
  0x22   : > { %v1240_v11 = vshrl.u32 %v1162_v4, 16  ;;  %v1243_v12 = vshll.u32 %v1162_v4, 16 }
  0x23   : > { %2466 = vmatpush3.bf16.msra.mxu1 %v2770_v20  ;;  %v1193_v20 = vshll.u32 %v1147_v6, 16  ;;  %v1205_v40 = vrot.slane %v1204_v33, 4  ;;  %v1166_v6 = vld [vmem:[%s2904_s11 + $0xa0] sm:$0xf] }
  0x24   : > { %2562 = vmatpush3.bf16.msra.mxu0 %v2771_v21  ;;  %2475 = vmatprep.subr.bf16.mxu1 %v2772_v23  ;;  %v1207_v21 = vshll.u32 %v1151_v8, 16  ;;  %v1257_v16 = vshll.u32 %v1166_v6, 16 }
  0x25   : > { %2571 = vmatprep.subr.bf16.mxu0 %v2773_v27 }
  0x26   : > { %2468 = vmatmul.mubr.bf16.vlgmr.msra.gmra.mrb[0].mxu1 %v2066_v28  ;;  %v1190_v28 = vor.u32 %v1189_v19, %v1186_v18 }
  0x27   : > { %2476 = vmatpush3.bf16.msra.mxu1 %v2772_v23  ;;  %2564 = vmatmul.mubr.bf16.vlgmr.msra.gmra.mrb[0].mxu0 %v2179_v30  ;;  %v2791_v23 = vld [vmem:[%s3296_s1 + $0x88] sm:$0xff]   ;;  %v2208_v30 = vcombine.low %v3030_v10, %v3037_v15 }
  0x28   : > { %2572 = vmatpush3.bf16.msra.mxu0 %v2773_v27  ;;  %2477 = vmatprep.subr.bf16.mxu1 %v2774_v32  ;;  %v3048_v27 = vld [vmem:[%s2904_s11 + $0xc0] sm:$0xf] }
  0x29   : > { %2573 = vmatprep.subr.bf16.mxu0 %v2775_v35  ;;  %2471 = vmatprep.mubr.bf16.mxu1 %v2067_v36  ;;  %v1195_v36 = vrot.slane %v1193_v20, 5  ;;  %v2080_v44 = vcombine.low %v3048_v27, %v3056_v31  ;;  %v1163_v20 = vld [vmem:[%s2904_s11 + $0x84] sm:$0x1] }
  0x2a   : > { %2567 = vmatprep.mubr.bf16.mxu0 %v2180_v38  ;;  %v2133_v38 = vld [vmem:[%s2904_s11 + $0x108] sm:$0xf] }
  0x2b   : > { %2478 = vmatpush3.bf16.msra.mxu1 %v2774_v32  ;;  %v3059_v32 = vld [vmem:[%s2904_s11 + $0xe8] sm:$0xf] }
  0x2c   : > { %2574 = vmatpush3.bf16.msra.mxu0 %v2775_v35  ;;  %2479 = vmatprep.subr.bf16.mxu1 %v2776_v37  ;;  %v1191_v35 = vrot.slane %v1190_v28, 4  ;;  %v1174_v28 = vld [vmem:[%s2904_s11 + $0xe0] sm:$0xf] }
  0x2d   : > { %2575 = vmatprep.subr.bf16.mxu0 %v2777_v43 }
  0x2e   : > { %2472 = vmatmul.mubr.bf16.gmra.mrb[4].mxu1 %v2068_v45  ;;  %v2795_v45 = vld [vmem:[%s3296_s1 + $0x98] sm:$0xff]  }
  0x2f   : > { %2480 = vmatpush3.bf16.msra.mxu1 %v2776_v37  ;;  %2568 = vmatmul.mubr.bf16.gmra.mrb[4].mxu0 %v2181_v47  ;;  %v1209_v37 = vrot.slane %v1207_v21, 5  ;;  %v2209_v47 = vcombine.low %v3059_v32, %v2133_v38  ;;  %v1242_v21 = vrot.slane %v1240_v11, 4 }
  0x30   : > { %2576 = vmatpush3.bf16.msra.mxu0 %v2777_v43  ;;  %2481 = vmatprep.subr.bf16.mxu1 %v2778_v50  ;;  %v2794_v43 = vld [vmem:[%s3296_s1 + $0x198] sm:$0xff]  }
  0x31   : > { %2577 = vmatprep.subr.bf16.mxu0 %v2779_v51  ;;  %2491 = vmatprep.mubr.bf16.mxu1 %v2077_v52  ;;  %v1212_v52 = vshrl.u32 %v1154_v41, 16 }
  0x32   : > { %2587 = vmatprep.mubr.bf16.mxu0 %v2206_v53  ;;  %v1215_v53 = vshll.u32 %v1154_v41, 16  ;;  %v1285_v41 = vshll.u32 %v1174_v28, 16 }
  0x33   : > { %2482 = vmatpush3.bf16.msra.mxu1 %v2778_v50  ;;  %v1196_v50 = vsel %vm3067_vm2, %v1191_v35, %v1195_v36 }
  0x34   : > { %2578 = vmatpush3.bf16.msra.mxu0 %v2779_v51  ;;  %2483 = vmatprep.subr.bf16.mxu1 %v2780_v54  ;;  %v3086_v51 = vsel %vm3067_vm2, %v1205_v40, %v1209_v37  ;;  %v1282_v40 = vshrl.u32 %v1174_v28, 16 }
  0x35   : > { %2579 = vmatprep.subr.bf16.mxu0 %v2781_v55 }
  0x37   : > { %2484 = vmatpush3.bf16.msra.mxu1 %v2780_v54  ;;  %v2105_v54 = vcombine.low %v2960_v46, %v3011_v1  ;;  %v1214_v46 = vrot.slane %v1212_v52, 4  ;;  %v1175_v52 = vld [vmem:[%s2904_s11 + $0xe4] sm:$0x1] }
  0x38   : > { %2580 = vmatpush3.bf16.msra.mxu0 %v2781_v55  ;;  %2485 = vmatprep.subr.bf16.mxu1 %v2782_v56  ;;  %v1226_v55 = vshrl.u32 %v1158_v42, 16 }
  0x39   : > { %2581 = vmatprep.subr.bf16.mxu0 %v2783_v57 }
  0x3a   : > { %v1228_v1 = vrot.slane %v1226_v55, 4  ;;  %v1284_v55 = vrot.slane %v1282_v40, 4 }
  0x3b   : > { %2486 = vmatpush3.bf16.msra.mxu1 %v2782_v56  ;;  %v1229_v56 = vshll.u32 %v1158_v42, 16  ;;  %v2802_v42 = vld [vmem:[%s3296_s1 + $0x1b8] sm:$0xff]  }
  0x3c   : > { %2582 = vmatpush3.bf16.msra.mxu0 %v2783_v57  ;;  %2487 = vmatprep.subr.bf16.mxu1 %v2784_v58  ;;  %v2796_v57 = vld [vmem:[%s3296_s1 + $0x1a0] sm:$0xff]  }
  0x3d   : > { %2583 = vmatprep.subr.bf16.mxu0 %v2785_v59 }
  0x3f   : > { %2488 = vmatpush3.bf16.msra.mxu1 %v2784_v58  ;;  %v2234_v58 = vcombine.low %v1196_v50, %v3086_v51 }
  0x40   : > { %2584 = vmatpush3.bf16.msra.mxu0 %v2785_v59  ;;  %2489 = vmatprep.subr.bf16.mxu1 %v2786_v60  ;;  %v1155_v59 = vld [vmem:[%s2904_s11 + $0x44] sm:$0x1] }
  0x41   : > { %2585 = vmatprep.subr.bf16.mxu0 %v2787_v61  ;;  %v1221_v8 = vshll.u32 %v1155_v59, 16  ;;  %v2804_v59 = vld [vmem:[%s3296_s1 + $0x40] sm:$0xff]  }
  0x43   : > { %2490 = vmatpush3.bf16.msra.mxu1 %v2786_v60  ;;  %v2797_v60 = vld [vmem:[%s3296_s1 + $0xa0] sm:$0xff]   ;;  %v1223_v33 = vrot.slane %v1221_v8, 5 }
  0x44   : > { %2586 = vmatpush3.bf16.msra.mxu0 %v2787_v61  ;;  %2499 = vmatprep.subr.bf16.mxu1 %v2788_v0  ;;  %v1159_v61 = vld [vmem:[%s2904_s11 + $0x64] sm:$0x1] }
  0x45   : > { %2595 = vmatprep.subr.bf16.mxu0 %v2789_v2 }
  0x46   : > { %2492 = vmatmul.mubr.bf16.vlgmr.msra.gmra.mrb[0].mxu1 %v2078_v14  ;;  %v1235_v14 = vshll.u32 %v1159_v61, 16 }
  0x47   : > { %2500 = vmatpush3.bf16.msra.mxu1 %v2788_v0  ;;  %2588 = vmatmul.mubr.bf16.vlgmr.msra.gmra.mrb[0].mxu0 %v2207_v13  ;;  %v1217_v0 = vrot.slane %v1215_v53, 5  ;;  %v1254_v13 = vshrl.u32 %v1166_v6, 16  ;;  %v1291_v6 = vshll.u32 %v1175_v52, 16  ;;  %v2809_v52 = vld [vmem:[%s3296_s1 + $0x150] sm:$0xff]  }
  0x48   : > { %2596 = vmatpush3.bf16.msra.mxu0 %v2789_v2  ;;  %2501 = vmatprep.subr.bf16.mxu1 %v2790_v22  ;;  %v1231_v2 = vrot.slane %v1229_v56, 5  ;;  %v1287_v56 = vrot.slane %v1285_v41, 5 }
  0x49   : > { %2597 = vmatprep.subr.bf16.mxu0 %v2791_v23  ;;  %2495 = vmatprep.mubr.bf16.mxu1 %v2079_v26  ;;  %v1218_v18 = vor.u32 %v1217_v0, %v1214_v46  ;;  %v1256_v25 = vrot.slane %v1254_v13, 4  ;;  %v1259_v26 = vrot.slane %v1257_v16, 5  ;;  %v1149_v13 = vld [vmem:[%s2904_s11 + $0x14] sm:$0x1] }
  0x4a   : > { %2591 = vmatprep.mubr.bf16.mxu0 %v2208_v30  ;;  %v1232_v19 = vor.u32 %v1231_v2, %v1228_v1  ;;  %v2801_v30 = vld [vmem:[%s3296_s1 + $0xb0] sm:$0xff]  }
  0x4b   : > { %2502 = vmatpush3.bf16.msra.mxu1 %v2790_v22  ;;  %v1245_v22 = vrot.slane %v1243_v12, 5  ;;  %v1219_v37 = vrot.slane %v1218_v18, 4  ;;  %v1260_v50 = vor.u32 %v1259_v26, %v1256_v25  ;;  %v1148_v1 = vld [vmem:[%s2904_s11 + $0x10] sm:$0xf]  ;;  %v1288_v12 = vor.u32 %v1287_v56, %v1284_v55  ;;  %v2117_v55 = vld [vmem:[%s2904_s11 + $0x8] sm:$0xf] }
  0x4c   : > { %2598 = vmatpush3.bf16.msra.mxu0 %v2791_v23  ;;  %2503 = vmatprep.subr.bf16.mxu1 %v2792_v29  ;;  %v1170_v23 = vld [vmem:[%s2904_s11 + $0xc0] sm:$0xf]  ;;  %v1233_v38 = vrot.slane %v1232_v19, 4  ;;  %v1450_v8 = vshrl.u32 %v1148_v1, 16  ;;  %v1453_v16 = vshll.u32 %v1148_v1, 16  ;;  %v2106_v18 = vcombine.low %v3017_v3, %v3021_v5  ;;  %v2811_v1 = vld [vmem:[%s3296_s1 + $0x158] sm:$0xff]  }
  0x4d   : > { %2599 = vmatprep.subr.bf16.mxu0 %v2793_v34  ;;  %v1268_v35 = vshrl.u32 %v1170_v23, 16  ;;  %v1271_v36 = vshll.u32 %v1170_v23, 16  ;;  %v1261_v2 = vrot.slane %v1260_v50, 4  ;;  %v2805_v19 = vld [vmem:[%s3296_s1 + $0x140] sm:$0xff]   ;;  %v1459_v5 = vshll.u32 %v1149_v13, 16 }
  0x4e   : > { %2496 = vmatmul.mubr.bf16.gmra.mrb[4].mxu1 %v2080_v44  ;;  %v1249_v44 = vshll.u32 %v1163_v20, 16  ;;  %v1455_v25 = vrot.slane %v1453_v16, 5  ;;  %v1160_v56 = vld [vmem:[%s2904_s11 + $0x70] sm:$0xf]  ;;  %v1157_v16 = vld [vmem:[%s2904_s11 + $0x54] sm:$0x1] }
  0x4f   : > { %2504 = vmatpush3.bf16.msra.mxu1 %v2792_v29  ;;  %2592 = vmatmul.mubr.bf16.gmra.mrb[4].mxu0 %v2209_v47  ;;  %v2800_v29 = vld [vmem:[%s3296_s1 + $0x1b0] sm:$0xff]   ;;  %v1171_v47 = vld [vmem:[%s2904_s11 + $0xc4] sm:$0x1]  ;;  %v1270_v53 = vrot.slane %v1268_v35, 4  ;;  %v1293_v35 = vrot.slane %v1291_v6, 5  ;;  %v1495_v6 = vshll.u32 %v1160_v56, 16 }
  0x50   : > { %2600 = vmatpush3.bf16.msra.mxu0 %v2793_v34  ;;  %2505 = vmatprep.subr.bf16.mxu1 %v2794_v43  ;;  %v1237_v34 = vrot.slane %v1235_v14, 5  ;;  %v1251_v46 = vrot.slane %v1249_v44, 5  ;;  %v1277_v0 = vshll.u32 %v1171_v47, 16  ;;  %v1153_v14 = vld [vmem:[%s2904_s11 + $0x34] sm:$0x1]  ;;  %v1461_v44 = vrot.slane %v1459_v5, 5 }
  0x51   : > { %2601 = vmatprep.subr.bf16.mxu0 %v2795_v45  ;;  %2515 = vmatprep.mubr.bf16.mxu1 %v2105_v54  ;;  %v1273_v54 = vrot.slane %v1271_v36, 5  ;;  %v1172_v5 = vld [vmem:[%s2904_s11 + $0xd0] sm:$0xf] }
  0x52   : > { %2611 = vmatprep.mubr.bf16.mxu0 %v2234_v58  ;;  %v3127_v58 = vsel %vm3067_vm2, %v1219_v37, %v1223_v33  ;;  %v2807_v37 = vld [vmem:[%s3296_s1 + $0x148] sm:$0xff]  }
  0x53   : > { %2506 = vmatpush3.bf16.msra.mxu1 %v2794_v43  ;;  %v1246_v43 = vor.u32 %v1245_v22, %v1242_v21  ;;  %v1274_v11 = vor.u32 %v1273_v54, %v1270_v53  ;;  %v1452_v21 = vrot.slane %v1450_v8, 4  ;;  %v1156_v53 = vld [vmem:[%s2904_s11 + $0x50] sm:$0xf] }
  0x54   : > { %2602 = vmatpush3.bf16.msra.mxu0 %v2795_v45  ;;  %2507 = vmatprep.subr.bf16.mxu1 %v2796_v57  ;;  %v1263_v45 = vshll.u32 %v1167_v24, 16  ;;  %v1279_v24 = vrot.slane %v1277_v0, 5  ;;  %v1481_v0 = vshll.u32 %v1156_v53, 16 }
  0x55   : > { %2603 = vmatprep.subr.bf16.mxu0 %v2797_v60  ;;  %v1247_v61 = vrot.slane %v1246_v43, 4  ;;  %v1275_v33 = vrot.slane %v1274_v11, 4  ;;  %v1456_v36 = vor.u32 %v1455_v25, %v1452_v21  ;;  %v1164_v11 = vld [vmem:[%s2904_s11 + $0x90] sm:$0xf]  ;;  %v2814_v25 = vld [vmem:[%s3296_s1 + $0x68] sm:$0xff]  }
  0x56   : > { %v1265_v4 = vrot.slane %v1263_v45, 5  ;;  %v1483_v13 = vrot.slane %v1481_v0, 5  ;;  %v1509_v21 = vshll.u32 %v1164_v11, 16 }
  0x57   : > { %2508 = vmatpush3.bf16.msra.mxu1 %v2796_v57  ;;  %v2803_v57 = vld [vmem:[%s3296_s1 + $0xb8] sm:$0xff]   ;;  %v3149_v23 = vsel %vm3067_vm2, %v1247_v61, %v1251_v46  ;;  %v1457_v43 = vrot.slane %v1456_v36, 4  ;;  %v1165_v36 = vld [vmem:[%s2904_s11 + $0x94] sm:$0x1] }
  0x58   : > { %2604 = vmatpush3.bf16.msra.mxu0 %v2797_v60  ;;  %2509 = vmatprep.subr.bf16.mxu1 %v2798_v7  ;;  %v3134_v60 = vsel %vm3067_vm2, %v1233_v38, %v1237_v34  ;;  %v3153_v3 = vsel %vm3067_vm2, %v1261_v2, %v1265_v4  ;;  %v1289_v34 = vrot.slane %v1288_v12, 4  ;;  %v2107_v38 = vcombine.low %v3027_v9, %v3048_v27  ;;  %v2808_v9 = vld [vmem:[%s3296_s1 + $0x50] sm:$0xff]   ;;  %v2810_v46 = vld [vmem:[%s3296_s1 + $0x58] sm:$0xff]   ;;  %v2813_v12 = vld [vmem:[%s3296_s1 + $0x160] sm:$0xff]  }
  0x59   : > { %2605 = vmatprep.subr.bf16.mxu0 %v2799_v17  ;;  %v2235_v20 = vcombine.low %v3127_v58, %v3134_v60  ;;  %v2236_v41 = vcombine.low %v3149_v23, %v3153_v3  ;;  %v3171_v27 = vsel %vm3067_vm2, %v1275_v33, %v1279_v24  ;;  %v2150_v2 = vcombine.low %v2117_v55, %v2963_v48 }
  0x5a   : > { %v3175_v50 = vsel %vm3067_vm2, %v1289_v34, %v1293_v35  ;;  %v1492_v4 = vshrl.u32 %v1160_v56, 16  ;;  %v1487_v33 = vshll.u32 %v1157_v16, 16  ;;  %v1515_v55 = vshll.u32 %v1165_v36, 16  ;;  %v2818_v56 = vld [vmem:[%s3296_s1 + $0x78] sm:$0xff]   ;;  %v1178_v36 = vld [vmem:[%s2904_s11 + $0x100] sm:$0xf] }
  0x5b   : > { %2510 = vmatpush3.bf16.msra.mxu1 %v2798_v7  ;;  %v1152_v7 = vld [vmem:[%s2904_s11 + $0x30] sm:$0xf] }
  0x5c   : > { %2606 = vmatpush3.bf16.msra.mxu0 %v2799_v17  ;;  %2511 = vmatprep.subr.bf16.mxu1 %v2800_v29  ;;  %v1464_v17 = vshrl.u32 %v1152_v7, 16  ;;  %v1467_v22 = vshll.u32 %v1152_v7, 16  ;;  %v2812_v7 = vld [vmem:[%s3296_s1 + $0x60] sm:$0xff]  }
  0x5d   : > { %2607 = vmatprep.subr.bf16.mxu0 %v2801_v30 }
  0x5e   : > { %v1466_v26 = vrot.slane %v1464_v17, 4  ;;  %v1469_v28 = vrot.slane %v1467_v22, 5  ;;  %v1161_v17 = vld [vmem:[%s2904_s11 + $0x74] sm:$0x1] }
  0x5f   : > { %2512 = vmatpush3.bf16.msra.mxu1 %v2800_v29  ;;  %v1473_v29 = vshll.u32 %v1153_v14, 16  ;;  %v1168_v14 = vld [vmem:[%s2904_s11 + $0xb0] sm:$0xf]  ;;  %v1501_v35 = vshll.u32 %v1161_v17, 16  ;;  %v2820_v17 = vld [vmem:[%s3296_s1 + $0x200] sm:$0xff]  }
  0x60   : > { %2608 = vmatpush3.bf16.msra.mxu0 %v2801_v30  ;;  %2513 = vmatprep.subr.bf16.mxu1 %v2802_v42  ;;  %v2806_v30 = vld [vmem:[%s3296_s1 + $0x48] sm:$0xff]   ;;  %v1470_v40 = vor.u32 %v1469_v28, %v1466_v26  ;;  %v1520_v22 = vshrl.u32 %v1168_v14, 16  ;;  %v1523_v24 = vshll.u32 %v1168_v14, 16  ;;  %v1176_v28 = vld [vmem:[%s2904_s11 + $0xf0] sm:$0xf] }
  0x61   : > { %2609 = vmatprep.subr.bf16.mxu0 %v2803_v57  ;;  %v1475_v47 = vrot.slane %v1473_v29, 5  ;;  %v2815_v26 = vld [vmem:[%s3296_s1 + $0x168] sm:$0xff]   ;;  %v2816_v29 = vld [vmem:[%s3296_s1 + $0x70] sm:$0xff]  }
  0x62   : > { %v1471_v45 = vrot.slane %v1470_v40, 4  ;;  %v1522_v40 = vrot.slane %v1520_v22, 4 }
  0x63   : > { %2514 = vmatpush3.bf16.msra.mxu1 %v2802_v42  ;;  %v200_v42 = vld [vmem:[%s2904_s11 + $0x100] sm:$0xf] }
  0x64   : > { %2610 = vmatpush3.bf16.msra.mxu0 %v2803_v57  ;;  %2523 = vmatprep.subr.bf16.mxu1 %v2804_v59  ;;  %v2108_v54 = vcombine.low %v3056_v31, %v200_v42  ;;  %v2237_v57 = vcombine.low %v3171_v27, %v3175_v50  ;;  %v1476_v61 = vsel %vm3067_vm2, %v1471_v45, %v1475_v47  ;;  %v1478_v31 = vshrl.u32 %v1156_v53, 16  ;;  %v1169_v42 = vld [vmem:[%s2904_s11 + $0xb4] sm:$0x1] }
  0x65   : > { %2619 = vmatprep.subr.bf16.mxu0 %v2805_v19  ;;  %v1548_v45 = vshrl.u32 %v1176_v28, 16  ;;  %v1551_v47 = vshll.u32 %v1176_v28, 16  ;;  %v1489_v53 = vrot.slane %v1487_v33, 5 }
  0x66   : > { %2516 = vmatmul.mubr.bf16.vlgmr.msra.gmra.mrb[0].mxu1 %v2106_v18  ;;  %v1480_v48 = vrot.slane %v1478_v31, 4  ;;  %v1494_v18 = vrot.slane %v1492_v4, 4  ;;  %v1173_v31 = vld [vmem:[%s2904_s11 + $0xd4] sm:$0x1] }
  0x67   : > { %2524 = vmatpush3.bf16.msra.mxu1 %v2804_v59  ;;  %2612 = vmatmul.mubr.bf16.vlgmr.msra.gmra.mrb[0].mxu0 %v2235_v20  ;;  %v1462_v59 = vsel %vm3067_vm2, %v1457_v43, %v1461_v44  ;;  %v1506_v20 = vshrl.u32 %v1164_v11, 16  ;;  %v1534_v43 = vshrl.u32 %v1172_v5, 16  ;;  %v1537_v44 = vshll.u32 %v1172_v5, 16 }
  0x68   : > { %2620 = vmatpush3.bf16.msra.mxu0 %v2805_v19  ;;  %2525 = vmatprep.subr.bf16.mxu1 %v2806_v30  ;;  %v2262_v8 = vcombine.low %v1462_v59, %v1476_v61  ;;  %v1497_v19 = vrot.slane %v1495_v6, 5  ;;  %v1553_v4 = vrot.slane %v1551_v47, 5  ;;  %v2819_v6 = vld [vmem:[%s3296_s1 + $0x178] sm:$0xff]   ;;  %v1517_v11 = vrot.slane %v1515_v55, 5 }
  0x69   : > { %2621 = vmatprep.subr.bf16.mxu0 %v2807_v37  ;;  %2519 = vmatprep.mubr.bf16.mxu1 %v2107_v38  ;;  %v1511_v38 = vrot.slane %v1509_v21, 5  ;;  %v1536_v0 = vrot.slane %v1534_v43, 4  ;;  %v1543_v14 = vshll.u32 %v1173_v31, 16  ;;  %v2151_v21 = vcombine.low %v2966_v49, %v3002_v62 }
  0x6a   : > { %2615 = vmatprep.mubr.bf16.mxu0 %v2236_v41  ;;  %v1498_v34 = vor.u32 %v1497_v19, %v1494_v18  ;;  %v1525_v41 = vrot.slane %v1523_v24, 5  ;;  %v2152_v49 = vcombine.low %v3005_v63, %v3030_v10  ;;  %v2153_v63 = vcombine.low %v3037_v15, %v3059_v32  ;;  %v2824_v32 = vld [vmem:[%s3296_s1 + $0x220] sm:$0xff]  }
  0x6b   : > { %2526 = vmatpush3.bf16.msra.mxu1 %v2806_v30  ;;  %v1484_v30 = vor.u32 %v1483_v13, %v1480_v48  ;;  %v1545_v28 = vrot.slane %v1543_v14, 5  ;;  %v1719_v15 = vshll.u32 %v1178_v36, 16 }
  0x6c   : > { %2622 = vmatpush3.bf16.msra.mxu0 %v2807_v37  ;;  %2527 = vmatprep.subr.bf16.mxu1 %v2808_v9  ;;  %v1508_v37 = vrot.slane %v1506_v20, 4  ;;  %v1526_v61 = vor.u32 %v1525_v41, %v1522_v40  ;;  %v2292_v40 = vcombine.low %v3153_v3, %v3171_v27  ;;  %v1716_v41 = vshrl.u32 %v1178_v36, 16  ;;  %v2825_v3 = vld [vmem:[%s3296_s1 + $0x228] sm:$0xff]  }
  0x6d   : > { %2623 = vmatprep.subr.bf16.mxu0 %v2809_v52 }
  0x6e   : > { %2520 = vmatmul.mubr.bf16.gmra.mrb[4].mxu1 %v2108_v54  ;;  %v1503_v54 = vrot.slane %v1501_v35, 5  ;;  %v1512_v59 = vor.u32 %v1511_v38, %v1508_v37  ;;  %v1527_v48 = vrot.slane %v1526_v61, 4  ;;  %v2822_v35 = vld [vmem:[%s3296_s1 + $0x210] sm:$0xff]   ;;  %v2823_v37 = vld [vmem:[%s3296_s1 + $0x218] sm:$0xff]   ;;  %v2290_v38 = vcombine.low %v3086_v51, %v3127_v58  ;;  %v1179_v58 = vld [vmem:[%s2904_s11 + $0x104] sm:$0x1] }
  0x6f   : > { %2528 = vmatpush3.bf16.msra.mxu1 %v2808_v9  ;;  %2616 = vmatmul.mubr.bf16.gmra.mrb[4].mxu0 %v2237_v57  ;;  %v2817_v9 = vld [vmem:[%s3296_s1 + $0x170] sm:$0xff]   ;;  %v1499_v57 = vrot.slane %v1498_v34, 4  ;;  %v1721_v51 = vrot.slane %v1719_v15, 5  ;;  %v1725_v43 = vshll.u32 %v1179_v58, 16 }
  0x70   : > { %2624 = vmatpush3.bf16.msra.mxu0 %v2809_v52  ;;  %2529 = vmatprep.subr.bf16.mxu1 %v2810_v46  ;;  %v1485_v52 = vrot.slane %v1484_v30, 4 }
  0x71   : > { %2625 = vmatprep.subr.bf16.mxu0 %v2811_v1  ;;  %2539 = vmatprep.mubr.bf16.mxu1 %v2150_v2  ;;  %v1550_v2 = vrot.slane %v1548_v45, 4  ;;  %v1504_v16 = vsel %vm3067_vm2, %v1499_v57, %v1503_v54  ;;  %v1727_v47 = vrot.slane %v1725_v43, 5  ;;  %v2291_v54 = vcombine.low %v3134_v60, %v3149_v23 }
  0x72   : > { %2635 = vmatprep.mubr.bf16.mxu0 %v2262_v8  ;;  %v1490_v8 = vsel %vm3067_vm2, %v1485_v52, %v1489_v53 }
  0x73   : > { %2530 = vmatpush3.bf16.msra.mxu1 %v2810_v46  ;;  %v1529_v46 = vshll.u32 %v1169_v42, 16  ;;  %v1554_v19 = vor.u32 %v1553_v4, %v1550_v2  ;;  %v2263_v22 = vcombine.low %v1490_v8, %v1504_v16  ;;  %v1718_v42 = vrot.slane %v1716_v41, 4 }
  0x74   : > { %2626 = vmatpush3.bf16.msra.mxu0 %v2811_v1  ;;  %2531 = vmatprep.subr.bf16.mxu1 %v2812_v7  ;;  %v1539_v1 = vrot.slane %v1537_v44, 5  ;;  %v2826_v44 = vld [vmem:[%s3296_s1 + $0x230] sm:$0xff]  }
  0x75   : > { %2627 = vmatprep.subr.bf16.mxu0 %v2813_v12  ;;  %v1531_v13 = vrot.slane %v1529_v46, 5  ;;  %v1722_v27 = vor.u32 %v1721_v51, %v1718_v42 }
  0x76   : > { %v1540_v18 = vor.u32 %v1539_v1, %v1536_v0 }
  0x77   : > { %2532 = vmatpush3.bf16.msra.mxu1 %v2812_v7  ;;  %v1177_v7 = vld [vmem:[%s2904_s11 + $0xf4] sm:$0x1]  ;;  %v1723_v45 = vrot.slane %v1722_v27, 4 }
  0x78   : > { %2628 = vmatpush3.bf16.msra.mxu0 %v2813_v12  ;;  %2533 = vmatprep.subr.bf16.mxu1 %v2814_v25  ;;  %v1513_v12 = vrot.slane %v1512_v59, 4  ;;  %v1557_v20 = vshll.u32 %v1177_v7, 16  ;;  %v1541_v5 = vrot.slane %v1540_v18, 4 }
  0x79   : > { %2629 = vmatprep.subr.bf16.mxu0 %v2815_v26  ;;  %v1728_v52 = vsel %vm3067_vm2, %v1723_v45, %v1727_v47 }
  0x7a   : > { %v1518_v24 = vsel %vm3067_vm2, %v1513_v12, %v1517_v11  ;;  %v1559_v30 = vrot.slane %v1557_v20, 5  ;;  %v1546_v33 = vsel %vm3067_vm2, %v1541_v5, %v1545_v28  ;;  %v2293_v53 = vcombine.low %v3175_v50, %v1728_v52 }
  0x7b   : > { %2534 = vmatpush3.bf16.msra.mxu1 %v2814_v25  ;;  %v1532_v25 = vsel %vm3067_vm2, %v1527_v48, %v1531_v13 }
  0x7c   : > { %2630 = vmatpush3.bf16.msra.mxu0 %v2815_v26  ;;  %2535 = vmatprep.subr.bf16.mxu1 %v2816_v29  ;;  %v2821_v26 = vld [vmem:[%s3296_s1 + $0x208] sm:$0xff]   ;;  %v2264_v62 = vcombine.low %v1518_v24, %v1532_v25 }
  0x7d   : > { %2631 = vmatprep.subr.bf16.mxu0 %v2817_v9 }
  0x7f   : > { %2536 = vmatpush3.bf16.msra.mxu1 %v2816_v29  ;;  %v1555_v29 = vrot.slane %v1554_v19, 4 }
  0x80   : > { %2632 = vmatpush3.bf16.msra.mxu0 %v2817_v9  ;;  %2537 = vmatprep.subr.bf16.mxu1 %v2818_v56  ;;  %v2827_v9 = vld [vmem:[%s3296_s1 + $0x238] sm:$0xff]  }
  0x81   : > { %2633 = vmatprep.subr.bf16.mxu0 %v2819_v6  ;;  %v1560_v34 = vsel %vm3067_vm2, %v1555_v29, %v1559_v30 }
  0x82   : > { %v2265_v10 = vcombine.low %v1546_v33, %v1560_v34 }
  0x83   : > { %2538 = vmatpush3.bf16.msra.mxu1 %v2818_v56 }
  0x84   : > { %2634 = vmatpush3.bf16.msra.mxu0 %v2819_v6  ;;  %2667 = vmatprep.subr.bf16.mxu1 %v2820_v17 }
  0x85   : > { %2643 = vmatprep.subr.bf16.mxu0 %v2820_v17 }
  0x86   : > { %2540 = vmatmul.mubr.bf16.vlgmr.msra.gmra.mrb[0].mxu1 %v2151_v21 }
  0x87   : > { %2636 = vmatmul.mubr.bf16.vlgmr.msra.gmra.mrb[0].mxu0 %v2263_v22  ;;  %2675 = vmatpush3.bf16.msra.mxu1 %v2820_v17 }
  0x88   : > { %2644 = vmatpush3.bf16.msra.mxu0 %v2820_v17  ;;  %2668 = vmatprep.subr.bf16.mxu1 %v2821_v26 }
  0x89   : > { %2645 = vmatprep.subr.bf16.mxu0 %v2821_v26  ;;  %2543 = vmatprep.mubr.bf16.mxu1 %v2152_v49 }
  0x8a   : > { %2639 = vmatprep.mubr.bf16.mxu0 %v2264_v62 }
  0x8b   : > { %2676 = vmatpush3.bf16.msra.mxu1 %v2821_v26 }
  0x8c   : > { %2646 = vmatpush3.bf16.msra.mxu0 %v2821_v26  ;;  %2669 = vmatprep.subr.bf16.mxu1 %v2822_v35 }
  0x8d   : > { %2647 = vmatprep.subr.bf16.mxu0 %v2822_v35 }
  0x8e   : > { %2544 = vmatmul.mubr.bf16.gmra.mrb[4].mxu1 %v2153_v63 }
  0x8f   : > { %2640 = vmatmul.mubr.bf16.gmra.mrb[4].mxu0 %v2265_v10  ;;  %2677 = vmatpush3.bf16.msra.mxu1 %v2822_v35 }
  0x90   : > { %2648 = vmatpush3.bf16.msra.mxu0 %v2822_v35  ;;  %2670 = vmatprep.subr.bf16.mxu1 %v2823_v37 }
  0x91   : > { %2649 = vmatprep.subr.bf16.mxu0 %v2823_v37  ;;  %2659 = vmatprep.mubr.bf16.mxu0 %v2290_v38 }
  0x92   : > { %2663 = vmatprep.mubr.bf16.mxu1 %v2292_v40 }
  0x93   : > { %2678 = vmatpush3.bf16.msra.mxu1 %v2823_v37 }
  0x94   : > { %2650 = vmatpush3.bf16.msra.mxu0 %v2823_v37  ;;  %2671 = vmatprep.subr.bf16.mxu1 %v2824_v32 }
  0x95   : > { %2651 = vmatprep.subr.bf16.mxu0 %v2824_v32 }
  0x97   : > { %2679 = vmatpush3.bf16.msra.mxu1 %v2824_v32 }
  0x98   : > { %2652 = vmatpush3.bf16.msra.mxu0 %v2824_v32  ;;  %2672 = vmatprep.subr.bf16.mxu1 %v2825_v3 }
  0x99   : > { %2653 = vmatprep.subr.bf16.mxu0 %v2825_v3 }
  0x9b   : > { %2680 = vmatpush3.bf16.msra.mxu1 %v2825_v3 }
  0x9c   : > { %2654 = vmatpush3.bf16.msra.mxu0 %v2825_v3  ;;  %2673 = vmatprep.subr.bf16.mxu1 %v2826_v44 }
  0x9d   : > { %2655 = vmatprep.subr.bf16.mxu0 %v2826_v44 }
  0x9f   : > { %2681 = vmatpush3.bf16.msra.mxu1 %v2826_v44 }
  0xa0   : > { %2656 = vmatpush3.bf16.msra.mxu0 %v2826_v44  ;;  %2674 = vmatprep.subr.bf16.mxu1 %v2827_v9 }
  0xa1   : > { %2657 = vmatprep.subr.bf16.mxu0 %v2827_v9 }
  0xa3   : > { %2682 = vmatpush3.bf16.msra.mxu1 %v2827_v9 }
  0xa4   : > { %2658 = vmatpush3.bf16.msra.mxu0 %v2827_v9 }
  0xa6   : > { %2664 = vmatmul.mubr.bf16.vlgmr.msra.gmra.mrb[8].mxu1 %v2293_v53 }
  0xa7   : > { %2660 = vmatmul.mubr.bf16.vlgmr.msra.gmra.mrb[0].mxu0 %v2291_v54 }
 0x159   : > { %v2541_v55 = vpop.f32.mrb[0].mxu1 }
 0x15a   : > { %v797_v56 = vpop.f32.mrb[1].mxu1 }
 0x15b   : > { %v2542_v57 = vpop.f32.mrb[2].mxu1 }
 0x15c   : > { %v800_v59 = vpop.f32.mrb[3].mxu1 }
 0x161   : > { %v2545_v39 = vpop.f32.mrb[4].mxu1 }
 0x162   : > { %v2641_v61 = vpop.f32.mrb[4].mxu0  ;;  %v813_v46 = vpop.f32.mrb[5].mxu1 }
 0x163   : > { %v2687_v31 = vadd.f32 %v2641_v61, %v2545_v39  ;;  %v1692_v0 = vpop.f32.mrb[5].mxu0  ;;  %v2546_v1 = vpop.f32.mrb[6].mxu1 }
 0x164   : > { %v2689_v2 = vadd.f32 %v1692_v0, %v813_v46  ;;  %v2642_v50 = vpop.f32.mrb[6].mxu0  ;;  %v816_v4 = vpop.f32.mrb[7].mxu1 }
 0x165   : > { %v2691_v6 = vadd.f32 %v2642_v50, %v2546_v1  ;;  %v1695_v60 = vpop.f32.mrb[7].mxu0 }
 0x166   : > { %v2693_v23 = vadd.f32 %v1695_v60, %v816_v4 }
 0x179   : > { %v2665_v7 = vpop.f32.mrb[8].mxu1 }
 0x17a   : > { %v2661_v8 = vpop.f32.mrb[0].mxu0  ;;  %v2688_v11 = vadd.f32 %v2687_v31, %v2665_v7  ;;  %v1853_v12 = vpop.f32.mrb[9].mxu1 }
 0x17b   : > { %v2683_v48 = vadd.f32 %v2661_v8, %v2541_v55  ;;  %v1837_v13 = vpop.f32.mrb[1].mxu0  ;;  %v2690_v14 = vadd.f32 %v2689_v2, %v1853_v12  ;;  %v2666_v16 = vpop.f32.mrb[10].mxu1 }
 0x17c   : > { %v2684_v17 = vadd.f32 %v1837_v13, %v797_v56  ;;  %v2662_v18 = vpop.f32.mrb[2].mxu0  ;;  %v2692_v19 = vadd.f32 %v2691_v6, %v2666_v16  ;;  %v1856_v20 = vpop.f32.mrb[11].mxu1  ;;  %v1935_v42 = vmul.f32 %v2688_v11, %v2688_v11 }
 0x17d   : > { %v2685_v21 = vadd.f32 %v2662_v18, %v2542_v57  ;;  %v1840_v22 = vpop.f32.mrb[3].mxu0  ;;  %v2694_v24 = vadd.f32 %v2693_v23, %v1856_v20  ;;  %v1931_v33 = vmul.f32 %v2683_v48, %v2683_v48  ;;  %v1933_v37 = vmul.f32 %v2690_v14, %v2690_v14 }
 0x17e   : > { %v2338_v25 = vpack.c.bf16 %v2692_v19, %v2688_v11  ;;  %v2686_v26 = vadd.f32 %v1840_v22, %v800_v59  ;;  %v1929_v29 = vmul.f32 %v2684_v17, %v2684_v17  ;;  %v1936_v3 = vmul.f32 %v2692_v19, %v2692_v19 }
 0x17f   : > { %v2328_v5 = vpack.c.bf16 %v2685_v21, %v2683_v48  ;;  %v2333_v28 = vpack.c.bf16 %v2694_v24, %v2690_v14  ;;  %v1932_v63 = vmul.f32 %v2685_v21, %v2685_v21  ;;  %v1934_v15 = vmul.f32 %v2694_v24, %v2694_v24 }
 0x180   : > { %2342 = vst [vmem:[%s177_s27 + $0x18] sm:$0xff] %v2338_v25   ;;  %v2323_v30 = vpack.c.bf16 %v2686_v26, %v2684_v17  ;;  %v1916_v49 = vadd.f32 %v2686_v26, %v2684_v17  ;;  %v1930_v62 = vmul.f32 %v2686_v26, %v2686_v26 }
 0x181   : > { %2340 = vst [vmem:[%s177_s27 + $0x8] sm:$0xff] %v2328_v5   ;;  %2341 = vst [vmem:[%s177_s27 + $0x10] sm:$0xff] %v2333_v28  }
 0x182   : > { %2324 = vst [vmem:[%s177_s27] sm:$0xff] %v2323_v30   ;;  %v1917_v34 = vadd.f32 %v2683_v48, %v1916_v49  ;;  %v1937_v35 = vadd.f32 %v1930_v62, %v1929_v29 }
 0x184   : > { %v1938_v10 = vadd.f32 %v1937_v35, %v1931_v33  ;;  %v1918_v36 = vadd.f32 %v2685_v21, %v1917_v34 }
 0x186   : > { %v1919_v38 = vadd.f32 %v2690_v14, %v1918_v36  ;;  %v1939_v40 = vadd.f32 %v1938_v10, %v1932_v63 }
 0x188   : > { %v1920_v41 = vadd.f32 %v2694_v24, %v1919_v38  ;;  %v1940_v32 = vadd.f32 %v1939_v40, %v1933_v37 }
 0x18a   : > { %v1921_v51 = vadd.f32 %v2688_v11, %v1920_v41  ;;  %v1941_v58 = vadd.f32 %v1940_v32, %v1934_v15 }
 0x18c   : > { %v1922_v27 = vadd.f32 %v2692_v19, %v1921_v51  ;;  %v1942_v43 = vadd.f32 %v1941_v58, %v1935_v42 }
 0x18e   : > { %v1923_v44 = vrot.slane %v1922_v27, 4  ;;  %v1943_v45 = vadd.f32 %v1942_v43, %v1936_v3 }
 0x190   : > { %v1924_v47 = vadd.f32 %v1923_v44, %v1922_v27  ;;  %v1944_v9 = vrot.slane %v1943_v45, 4 }
 0x192   : > { %v1925_v52 = vrot.slane %v1924_v47, 2  ;;  %v1945_v53 = vadd.f32 %v1944_v9, %v1943_v45 }
 0x194   : > { %v1926_v54 = vadd.f32 %v1925_v52, %v1924_v47  ;;  %v1946_v55 = vrot.slane %v1945_v53, 2 }
 0x196   : > { %v1927_v56 = vrot.slane %v1926_v54, 1  ;;  %v1947_v57 = vadd.f32 %v1946_v55, %v1945_v53 }
 0x198   : > { %v1948_v59 = vrot.slane %v1947_v57, 1  ;;  %v1928_v39 = vadd.f32 %v1927_v56, %v1926_v54 }
 0x19a   : > { %v1949_v61 = vadd.f32 %v1948_v59, %v1947_v57 }
 0x19c   : > { %v1951_v46 = vsel %vm1950_vm3, %v1928_v39, %v1949_v61 }
 0x19d   : > { %1952 = vst [vmem:[%s182_s30] sm:$0x3] %v1951_v46 }
 0x19e PF: > { %s14_s12 = sadd.s32 1, %s2834_s12  }
 0x19f   : > { %p11_p5 = scmp.ge.s32.totalorder %s14_s12, 4  }
 0x1a1   :  { %13 = sbr.rel (!%p11_p5) target bundleno = 1 (0x1), region = 79 }

// kernel: resnext_block_forward.8
= control target key start
LH: loop header
LB: loop body
LE: loop exit
PB: predicated region body
PF: predicated region fallthrough
CT: control target
= control target key end

     0   :  { %vm833_vm0 = vcmask 1040384   ;;  %s1497_s4 = inlined_call_operand.vmem [shape: bf16[128,128], index: 4, kind: input, shape index: {}]   ;;  %s1498_s5 = inlined_call_operand.vmem [shape: bf16[128,128], index: 5, kind: input, shape index: {}]   ;;  %s1499_s0 = inlined_call_operand.vmem [shape: bf16[128,128], index: 0, kind: input, shape index: {}]   ;;  %s1500_s1 = inlined_call_operand.vmem [shape: f32[1,128], index: 1, kind: input, shape index: {}]   ;;  %s1501_s2 = inlined_call_operand.vmem [shape: f32[1,128], index: 2, kind: input, shape index: {}]   ;;  %s1502_s3 = inlined_call_operand.vmem [shape: bf16[128,128], index: 3, kind: input, shape index: {}]   ;;  %s1503_s6 = inlined_call_operand.vmem [shape: bf16[128,128], index: 6, kind: output, shape index: {0}]   ;;  %s1504_s7 = inlined_call_operand.vmem [shape: bf16[128,128], index: 7, kind: output, shape index: {1}]   ;;  %s1505_s8 = inlined_call_operand.vmem [shape: f32[1,2,128], index: 8, kind: output, shape index: {2}]   ;;  %s1506_s9 = inlined_call_operand.vmem [shape: f32[1,2,128], index: 9, kind: output, shape index: {3}]  }
   0x1   :  { %v1231_v0 = vld [vmem:[%s1497_s4] sm:$0xff]   ;;  %v1233_v2 = vld [vmem:[%s1497_s4 + $0x8] sm:$0xff]   ;;  %v1235_v4 = vld [vmem:[%s1497_s4 + $0x10] sm:$0xff]  }
   0x2   :  { %v1232_v1 = vld [vmem:[%s1498_s5] sm:$0xff]   ;;  %1167 = vmatprep.subr.bf16.mxu0 %v1231_v0  ;;  %v1234_v3 = vld [vmem:[%s1498_s5 + $0x8] sm:$0xff]   ;;  %v1236_v5 = vld [vmem:[%s1498_s5 + $0x10] sm:$0xff]  }
   0x3   :  { %1199 = vmatprep.subr.bf16.mxu1 %v1232_v1  ;;  %1168 = vmatpush3.bf16.msra.mxu0 %v1231_v0  ;;  %v1237_v6 = vld [vmem:[%s1497_s4 + $0x18] sm:$0xff]   ;;  %v1239_v8 = vld [vmem:[%s1497_s4 + $0x20] sm:$0xff]   ;;  %v1241_v10 = vld [vmem:[%s1497_s4 + $0x28] sm:$0xff]  }
   0x4   :  { %1200 = vmatpush3.bf16.msra.mxu1 %v1232_v1  ;;  %1169 = vmatprep.subr.bf16.mxu0 %v1233_v2  ;;  %v1238_v7 = vld [vmem:[%s1498_s5 + $0x18] sm:$0xff]   ;;  %v1240_v9 = vld [vmem:[%s1498_s5 + $0x20] sm:$0xff]   ;;  %v1242_v11 = vld [vmem:[%s1498_s5 + $0x28] sm:$0xff]  }
   0x5   :  { %1201 = vmatprep.subr.bf16.mxu1 %v1234_v3  ;;  %v1003_v12 = vld [vmem:[%s1499_s0] sm:$0xff]   ;;  %v1114_v18 = vld [vmem:[%s1499_s0 + $0x8] sm:$0xff]   ;;  %v1115_v23 = vld [vmem:[%s1499_s0 + $0x10] sm:$0xff]  }
   0x6   :  { %v1347_v13 = vld [vmem:[%s1500_s1] ss:$0 sm:$0xff]  ;;  %v1004_v15 = vunpack.c.l.bf16 %v1003_v12  ;;  %v1005_v16 = vunpack.c.h.bf16 %v1003_v12  ;;  %v1008_v21 = vunpack.c.l.bf16 %v1114_v18  ;;  %v1009_v22 = vunpack.c.h.bf16 %v1114_v18  ;;  %v1243_v24 = vld [vmem:[%s1497_s4 + $0x30] sm:$0xff]   ;;  %v1116_v27 = vld [vmem:[%s1499_s0 + $0x18] sm:$0xff]  }
   0x7   :  { %1170 = vmatpush3.bf16.msra.mxu0 %v1233_v2  ;;  %v1352_v14 = vld [vmem:[%s1501_s2] ss:$0 sm:$0xff]  ;;  %v1012_v25 = vunpack.c.l.bf16 %v1115_v23  ;;  %v1013_v26 = vunpack.c.h.bf16 %v1115_v23  ;;  %v1244_v28 = vld [vmem:[%s1498_s5 + $0x30] sm:$0xff]   ;;  %v1016_v35 = vunpack.c.l.bf16 %v1116_v27  ;;  %v1017_v36 = vunpack.c.h.bf16 %v1116_v27  ;;  %v1245_v42 = vld [vmem:[%s1497_s4 + $0x38] sm:$0xff]  }
   0x8   :  { %1202 = vmatpush3.bf16.msra.mxu1 %v1234_v3  ;;  %1171 = vmatprep.subr.bf16.mxu0 %v1235_v4  ;;  %v1247_v17 = vld [vmem:[%s1502_s3] sm:$0xff]   ;;  %v118_v19 = vmul.f32 %v1004_v15, %v1347_v13  ;;  %v119_v20 = vmul.f32 %v1005_v16, %v1347_v13  ;;  %v120_v31 = vmul.f32 %v1008_v21, %v1347_v13  ;;  %v1246_v43 = vld [vmem:[%s1498_s5 + $0x38] sm:$0xff]   ;;  %v1118_v56 = vld [vmem:[%s1499_s0 + $0x28] sm:$0xff]  }
   0x9   :  { %1203 = vmatprep.subr.bf16.mxu1 %v1236_v5  ;;  %1215 = vmatprep.mubr.bf16.mxu1 %v1247_v17  ;;  %v121_v32 = vmul.f32 %v1009_v22, %v1347_v13  ;;  %v122_v33 = vmul.f32 %v1012_v25, %v1347_v13  ;;  %v123_v34 = vmul.f32 %v1013_v26, %v1347_v13  ;;  %v1117_v37 = vld [vmem:[%s1499_s0 + $0x20] sm:$0xff]   ;;  %v1119_v58 = vld [vmem:[%s1499_s0 + $0x30] sm:$0xff]   ;;  %v1024_v63 = vunpack.c.l.bf16 %v1118_v56  ;;  %v1248_v1 = vld [vmem:[%s1502_s3 + $0x8] sm:$0xff]  }
   0xa   :  { %v141_v29 = vadd.f32 %v1352_v14, %v118_v19  ;;  %v142_v30 = vadd.f32 %v1352_v14, %v119_v20  ;;  %v143_v40 = vadd.f32 %v1352_v14, %v120_v31  ;;  %v1020_v46 = vunpack.c.l.bf16 %v1117_v37  ;;  %v1250_v23 = vld [vmem:[%s1502_s3 + $0x18] sm:$0xff]   ;;  %v1251_v27 = vld [vmem:[%s1502_s3 + $0x20] sm:$0xff]  }
   0xb   :  { %1172 = vmatpush3.bf16.msra.mxu0 %v1235_v4  ;;  %v144_v41 = vadd.f32 %v1352_v14, %v121_v32  ;;  %v145_v44 = vadd.f32 %v1352_v14, %v122_v33  ;;  %v146_v45 = vadd.f32 %v1352_v14, %v123_v34  ;;  %v124_v50 = vmul.f32 %v1016_v35, %v1347_v13 }
   0xc   :  { %1204 = vmatpush3.bf16.msra.mxu1 %v1236_v5  ;;  %1173 = vmatprep.subr.bf16.mxu0 %v1237_v6  ;;  %v157_v38 = vmax.f32 %v141_v29, 0.0  ;;  %v158_v39 = vmax.f32 %v142_v30, 0.0  ;;  %v159_v48 = vmax.f32 %v143_v40, 0.0  ;;  %v125_v53 = vmul.f32 %v1017_v36, %v1347_v13 }
   0xd   :  { %1205 = vmatprep.subr.bf16.mxu1 %v1238_v7  ;;  %v160_v49 = vmax.f32 %v144_v41, 0.0  ;;  %v161_v51 = vmax.f32 %v145_v44, 0.0  ;;  %v162_v52 = vmax.f32 %v146_v45, 0.0  ;;  %v1021_v54 = vunpack.c.h.bf16 %v1117_v37  ;;  %v1252_v37 = vld [vmem:[%s1502_s3 + $0x28] sm:$0xff]  }
   0xe   :  { %v221_v47 = vpack.c.bf16 %v158_v39, %v157_v38  ;;  %v126_v55 = vmul.f32 %v1020_v46, %v1347_v13  ;;  %v147_v60 = vadd.f32 %v1352_v14, %v124_v50  ;;  %v148_v62 = vadd.f32 %v1352_v14, %v125_v53  ;;  %v1253_v39 = vld [vmem:[%s1502_s3 + $0x30] sm:$0xff]  }
   0xf   :  { %1174 = vmatpush3.bf16.msra.mxu0 %v1237_v6  ;;  %v127_v57 = vmul.f32 %v1021_v54, %v1347_v13  ;;  %v222_v59 = vpack.c.bf16 %v160_v49, %v159_v48  ;;  %v223_v61 = vpack.c.bf16 %v162_v52, %v161_v51  ;;  %v1025_v0 = vunpack.c.h.bf16 %v1118_v56  ;;  %v1249_v6 = vld [vmem:[%s1502_s3 + $0x10] sm:$0xff]  }
  0x10   :  { %1206 = vmatpush3.bf16.msra.mxu1 %v1238_v7  ;;  %1175 = vmatprep.subr.bf16.mxu0 %v1239_v8  ;;  %v149_v2 = vadd.f32 %v1352_v14, %v126_v55  ;;  %v1028_v4 = vunpack.c.l.bf16 %v1119_v58  ;;  %v1029_v5 = vunpack.c.h.bf16 %v1119_v58  ;;  %v163_v7 = vmax.f32 %v147_v60, 0.0 }
  0x11   :  { %1207 = vmatprep.subr.bf16.mxu1 %v1240_v9  ;;  %1183 = vmatprep.mubr.bf16.mxu0 %v221_v47  ;;  %v150_v3 = vadd.f32 %v1352_v14, %v127_v57 }
  0x12   :  { %v165_v12 = vmax.f32 %v149_v2, 0.0  ;;  %v130_v16 = vmul.f32 %v1028_v4, %v1347_v13  ;;  %v131_v17 = vmul.f32 %v1029_v5, %v1347_v13 }
  0x13   :  { %1176 = vmatpush3.bf16.msra.mxu0 %v1239_v8  ;;  %v164_v8 = vmax.f32 %v148_v62, 0.0  ;;  %v166_v15 = vmax.f32 %v150_v3, 0.0 }
  0x14   :  { %1208 = vmatpush3.bf16.msra.mxu1 %v1240_v9  ;;  %1177 = vmatprep.subr.bf16.mxu0 %v1241_v10  ;;  %v128_v9 = vmul.f32 %v1024_v63, %v1347_v13  ;;  %v153_v25 = vadd.f32 %v1352_v14, %v130_v16  ;;  %v154_v26 = vadd.f32 %v1352_v14, %v131_v17 }
  0x15   :  { %1209 = vmatprep.subr.bf16.mxu1 %v1242_v11  ;;  %v224_v19 = vpack.c.bf16 %v164_v8, %v163_v7 }
  0x16   :  { %v151_v20 = vadd.f32 %v1352_v14, %v128_v9  ;;  %v169_v32 = vmax.f32 %v153_v25, 0.0  ;;  %v170_v33 = vmax.f32 %v154_v26, 0.0 }
  0x17   :  { %1178 = vmatpush3.bf16.msra.mxu0 %v1241_v10  ;;  %v129_v10 = vmul.f32 %v1025_v0, %v1347_v13 }
  0x18   :  { %1210 = vmatpush3.bf16.msra.mxu1 %v1242_v11  ;;  %1179 = vmatprep.subr.bf16.mxu0 %v1243_v24  ;;  %v1120_v11 = vld [vmem:[%s1499_s0 + $0x38] sm:$0xff]   ;;  %v227_v38 = vpack.c.bf16 %v170_v33, %v169_v32 }
  0x19   :  { %1211 = vmatprep.subr.bf16.mxu1 %v1244_v28  ;;  %v1032_v18 = vunpack.c.l.bf16 %v1120_v11  ;;  %v152_v21 = vadd.f32 %v1352_v14, %v129_v10  ;;  %v1033_v22 = vunpack.c.h.bf16 %v1120_v11 }
  0x1b   :  { %1180 = vmatpush3.bf16.msra.mxu0 %v1243_v24  ;;  %v225_v24 = vpack.c.bf16 %v166_v15, %v165_v12  ;;  %v168_v29 = vmax.f32 %v152_v21, 0.0  ;;  %v132_v30 = vmul.f32 %v1032_v18, %v1347_v13  ;;  %v133_v31 = vmul.f32 %v1033_v22, %v1347_v13 }
  0x1c   :  { %1212 = vmatpush3.bf16.msra.mxu1 %v1244_v28  ;;  %1181 = vmatprep.subr.bf16.mxu0 %v1245_v42  ;;  %v167_v28 = vmax.f32 %v151_v20, 0.0 }
  0x1d   :  { %1213 = vmatprep.subr.bf16.mxu1 %v1246_v43  ;;  %v155_v35 = vadd.f32 %v1352_v14, %v132_v30  ;;  %v156_v36 = vadd.f32 %v1352_v14, %v133_v31  ;;  %v1254_v14 = vld [vmem:[%s1502_s3 + $0x38] sm:$0xff]  }
  0x1e   :  { %v226_v34 = vpack.c.bf16 %v168_v29, %v167_v28 }
  0x1f   :  { %1182 = vmatpush3.bf16.msra.mxu0 %v1245_v42  ;;  %v171_v13 = vmax.f32 %v155_v35, 0.0  ;;  %v172_v40 = vmax.f32 %v156_v36, 0.0 }
  0x20   :  { %1214 = vmatpush3.bf16.msra.mxu1 %v1246_v43 }
  0x21   :  { %v228_v41 = vpack.c.bf16 %v172_v40, %v171_v13 }
  0x22   :  { %1184 = vmatmul.mubr.bf16.vlgmr.msra.gmra.mrb[0].mxu0 %v222_v59 }
  0x23   :  { %1216 = vmatmul.mubr.bf16.vlgmr.msra.gmra.mrb[0].mxu1 %v1248_v1  ;;  %1187 = vmatprep.mubr.bf16.mxu0 %v223_v61 }
  0x24   :  { %1219 = vmatprep.mubr.bf16.mxu1 %v1249_v6 }
  0x2a   :  { %1188 = vmatmul.mubr.bf16.gmra.mrb[4].mxu0 %v224_v19 }
  0x2b   :  { %1220 = vmatmul.mubr.bf16.gmra.mrb[4].mxu1 %v1250_v23  ;;  %1191 = vmatprep.mubr.bf16.mxu0 %v225_v24 }
  0x2c   :  { %1223 = vmatprep.mubr.bf16.mxu1 %v1251_v27 }
  0x32   :  { %1192 = vmatmul.mubr.bf16.gmra.mrb[8].mxu0 %v226_v34 }
  0x33   :  { %1224 = vmatmul.mubr.bf16.gmra.mrb[8].mxu1 %v1252_v37  ;;  %1195 = vmatprep.mubr.bf16.mxu0 %v227_v38 }
  0x34   :  { %1227 = vmatprep.mubr.bf16.mxu1 %v1253_v39 }
  0x3a   :  { %1196 = vmatmul.mubr.bf16.gmra.mrb[12].mxu0 %v228_v41 }
  0x3b   :  { %1228 = vmatmul.mubr.bf16.gmra.mrb[12].mxu1 %v1254_v14 }
  0xf5   :  { %v1185_v42 = vpop.f32.mrb[0].mxu0 }
  0xf6   :  { %v1217_v43 = vpop.f32.mrb[0].mxu1  ;;  %v327_v44 = vpop.f32.mrb[1].mxu0  ;;  %v798_v60 = vmul.f32 %v1185_v42, %v1185_v42 }
  0xf7   :  { %v552_v45 = vpop.f32.mrb[1].mxu1  ;;  %v1186_v46 = vpop.f32.mrb[2].mxu0  ;;  %v796_v47 = vmul.f32 %v327_v44, %v327_v44  ;;  %v859_v62 = vmul.f32 %v1217_v43, %v1217_v43 }
  0xf8   :  { %v1042_v48 = vpack.c.bf16 %v1186_v46, %v1185_v42  ;;  %v1218_v49 = vpop.f32.mrb[2].mxu1  ;;  %v330_v50 = vpop.f32.mrb[3].mxu0  ;;  %v857_v51 = vmul.f32 %v552_v45, %v552_v45  ;;  %v799_v2 = vmul.f32 %v1186_v46, %v1186_v46 }
  0xf9   :  { %v1082_v52 = vpack.c.bf16 %v1218_v49, %v1217_v43  ;;  %v1037_v53 = vpack.c.bf16 %v330_v50, %v327_v44  ;;  %v775_v54 = vadd.f32 %v330_v50, %v327_v44  ;;  %v555_v55 = vpop.f32.mrb[3].mxu1  ;;  %v797_v56 = vmul.f32 %v330_v50, %v330_v50 }
  0xfa   :  { %1121 = vst [vmem:[%s1503_s6 + $0x8] sm:$0xff] %v1042_v48   ;;  %v1077_v57 = vpack.c.bf16 %v555_v55, %v552_v45  ;;  %v836_v58 = vadd.f32 %v555_v55, %v552_v45  ;;  %v858_v59 = vmul.f32 %v555_v55, %v555_v55  ;;  %v860_v5 = vmul.f32 %v1218_v49, %v1218_v49 }
  0xfb   :  { %1128 = vst [vmem:[%s1504_s7 + $0x8] sm:$0xff] %v1082_v52   ;;  %1038 = vst [vmem:[%s1503_s6] sm:$0xff] %v1037_v53   ;;  %v776_v61 = vadd.f32 %v1185_v42, %v775_v54  ;;  %v812_v63 = vadd.f32 %v797_v56, %v796_v47 }
  0xfc   :  { %1078 = vst [vmem:[%s1504_s7] sm:$0xff] %v1077_v57   ;;  %v837_v0 = vadd.f32 %v1217_v43, %v836_v58  ;;  %v873_v1 = vadd.f32 %v858_v59, %v857_v51 }
  0xfd   :  { %v1189_v3 = vpop.f32.mrb[4].mxu0  ;;  %v777_v4 = vadd.f32 %v1186_v46, %v776_v61  ;;  %v813_v6 = vadd.f32 %v812_v63, %v798_v60 }
  0xfe   :  { %v874_v7 = vadd.f32 %v873_v1, %v859_v62  ;;  %v1221_v8 = vpop.f32.mrb[4].mxu1  ;;  %v343_v9 = vpop.f32.mrb[5].mxu0  ;;  %v838_v10 = vadd.f32 %v1218_v49, %v837_v0  ;;  %v802_v34 = vmul.f32 %v1189_v3, %v1189_v3 }
  0xff   :  { %v778_v11 = vadd.f32 %v777_v4, %v343_v9  ;;  %v800_v12 = vmul.f32 %v343_v9, %v343_v9  ;;  %v568_v15 = vpop.f32.mrb[5].mxu1  ;;  %v1190_v16 = vpop.f32.mrb[6].mxu0  ;;  %v814_v17 = vadd.f32 %v813_v6, %v799_v2  ;;  %v863_v36 = vmul.f32 %v1221_v8, %v1221_v8 }
 0x100   :  { %v839_v18 = vadd.f32 %v838_v10, %v568_v15  ;;  %v861_v19 = vmul.f32 %v568_v15, %v568_v15  ;;  %v875_v20 = vadd.f32 %v874_v7, %v860_v5  ;;  %v1222_v21 = vpop.f32.mrb[6].mxu1  ;;  %v346_v22 = vpop.f32.mrb[7].mxu0  ;;  %v1052_v23 = vpack.c.bf16 %v1190_v16, %v1189_v3 }
 0x101   :  { %v1092_v24 = vpack.c.bf16 %v1222_v21, %v1221_v8  ;;  %v571_v25 = vpop.f32.mrb[7].mxu1  ;;  %v815_v26 = vadd.f32 %v814_v17, %v800_v12  ;;  %v1047_v28 = vpack.c.bf16 %v346_v22, %v343_v9  ;;  %v779_v29 = vadd.f32 %v778_v11, %v346_v22 }
 0x102   :  { %v876_v27 = vadd.f32 %v875_v20, %v861_v19  ;;  %1123 = vst [vmem:[%s1503_s6 + $0x18] sm:$0xff] %v1052_v23   ;;  %v801_v30 = vmul.f32 %v346_v22, %v346_v22  ;;  %v1087_v31 = vpack.c.bf16 %v571_v25, %v568_v15  ;;  %v840_v32 = vadd.f32 %v839_v18, %v571_v25 }
 0x103   :  { %1130 = vst [vmem:[%s1504_s7 + $0x18] sm:$0xff] %v1092_v24   ;;  %v862_v33 = vmul.f32 %v571_v25, %v571_v25  ;;  %1122 = vst [vmem:[%s1503_s6 + $0x10] sm:$0xff] %v1047_v28   ;;  %v780_v35 = vadd.f32 %v1189_v3, %v779_v29  ;;  %v803_v40 = vmul.f32 %v1190_v16, %v1190_v16 }
 0x104   :  { %v816_v37 = vadd.f32 %v815_v26, %v801_v30  ;;  %1129 = vst [vmem:[%s1504_s7 + $0x10] sm:$0xff] %v1087_v31   ;;  %v841_v38 = vadd.f32 %v1221_v8, %v840_v32  ;;  %v864_v43 = vmul.f32 %v1222_v21, %v1222_v21 }
 0x105   :  { %v877_v39 = vadd.f32 %v876_v27, %v862_v33  ;;  %v1193_v13 = vpop.f32.mrb[8].mxu0  ;;  %v781_v42 = vadd.f32 %v1190_v16, %v780_v35 }
 0x106   :  { %v1225_v41 = vpop.f32.mrb[8].mxu1  ;;  %v359_v14 = vpop.f32.mrb[9].mxu0  ;;  %v817_v44 = vadd.f32 %v816_v37, %v802_v34  ;;  %v842_v50 = vadd.f32 %v1222_v21, %v841_v38  ;;  %v806_v5 = vmul.f32 %v1193_v13, %v1193_v13 }
 0x107   :  { %v878_v45 = vadd.f32 %v877_v39, %v863_v36  ;;  %v804_v46 = vmul.f32 %v359_v14, %v359_v14  ;;  %v584_v47 = vpop.f32.mrb[9].mxu1  ;;  %v1194_v48 = vpop.f32.mrb[10].mxu0  ;;  %v782_v49 = vadd.f32 %v781_v42, %v359_v14  ;;  %v867_v8 = vmul.f32 %v1225_v41, %v1225_v41 }
 0x108   :  { %v865_v51 = vmul.f32 %v584_v47, %v584_v47  ;;  %v1062_v52 = vpack.c.bf16 %v1194_v48, %v1193_v13  ;;  %v1226_v53 = vpop.f32.mrb[10].mxu1  ;;  %v362_v54 = vpop.f32.mrb[11].mxu0  ;;  %v818_v55 = vadd.f32 %v817_v44, %v803_v40  ;;  %v843_v59 = vadd.f32 %v842_v50, %v584_v47 }
 0x109   :  { %v879_v56 = vadd.f32 %v878_v45, %v864_v43  ;;  %v1102_v57 = vpack.c.bf16 %v1226_v53, %v1225_v41  ;;  %v587_v58 = vpop.f32.mrb[11].mxu1  ;;  %v1057_v60 = vpack.c.bf16 %v362_v54, %v359_v14  ;;  %v783_v61 = vadd.f32 %v782_v49, %v362_v54 }
 0x10a   :  { %1125 = vst [vmem:[%s1503_s6 + $0x28] sm:$0xff] %v1062_v52   ;;  %v819_v62 = vadd.f32 %v818_v55, %v804_v46  ;;  %v805_v0 = vmul.f32 %v362_v54, %v362_v54  ;;  %v1097_v1 = vpack.c.bf16 %v587_v58, %v584_v47  ;;  %v844_v3 = vadd.f32 %v843_v59, %v587_v58 }
 0x10b   :  { %v880_v63 = vadd.f32 %v879_v56, %v865_v51  ;;  %1132 = vst [vmem:[%s1504_s7 + $0x28] sm:$0xff] %v1102_v57   ;;  %1124 = vst [vmem:[%s1503_s6 + $0x20] sm:$0xff] %v1057_v60   ;;  %v784_v2 = vadd.f32 %v1193_v13, %v783_v61  ;;  %v866_v4 = vmul.f32 %v587_v58, %v587_v58 }
 0x10c   :  { %v820_v6 = vadd.f32 %v819_v62, %v805_v0  ;;  %1131 = vst [vmem:[%s1504_s7 + $0x20] sm:$0xff] %v1097_v1   ;;  %v845_v9 = vadd.f32 %v1225_v41, %v844_v3  ;;  %v807_v16 = vmul.f32 %v1194_v48, %v1194_v48  ;;  %v868_v17 = vmul.f32 %v1226_v53, %v1226_v53 }
 0x10d   :  { %v1197_v7 = vpop.f32.mrb[12].mxu0  ;;  %v881_v10 = vadd.f32 %v880_v63, %v866_v4  ;;  %v785_v15 = vadd.f32 %v1194_v48, %v784_v2 }
 0x10e   :  { %v1229_v11 = vpop.f32.mrb[12].mxu1  ;;  %v375_v12 = vpop.f32.mrb[13].mxu0  ;;  %v821_v18 = vadd.f32 %v820_v6, %v806_v5  ;;  %v846_v24 = vadd.f32 %v1226_v53, %v845_v9  ;;  %v810_v41 = vmul.f32 %v1197_v7, %v1197_v7 }
 0x10f   :  { %v808_v19 = vmul.f32 %v375_v12, %v375_v12  ;;  %v600_v20 = vpop.f32.mrb[13].mxu1  ;;  %v1198_v21 = vpop.f32.mrb[14].mxu0  ;;  %v882_v22 = vadd.f32 %v881_v10, %v867_v8  ;;  %v786_v23 = vadd.f32 %v785_v15, %v375_v12  ;;  %v871_v43 = vmul.f32 %v1229_v11, %v1229_v11 }
 0x110   :  { %v869_v25 = vmul.f32 %v600_v20, %v600_v20  ;;  %v1230_v26 = vpop.f32.mrb[14].mxu1  ;;  %v378_v27 = vpop.f32.mrb[15].mxu0  ;;  %v822_v28 = vadd.f32 %v821_v18, %v807_v16  ;;  %v1072_v29 = vpack.c.bf16 %v1198_v21, %v1197_v7  ;;  %v847_v32 = vadd.f32 %v846_v24, %v600_v20 }
 0x111   :  { %v1112_v30 = vpack.c.bf16 %v1230_v26, %v1229_v11  ;;  %v603_v31 = vpop.f32.mrb[15].mxu1  ;;  %v883_v33 = vadd.f32 %v882_v22, %v868_v17  ;;  %v1067_v34 = vpack.c.bf16 %v378_v27, %v375_v12  ;;  %v787_v36 = vadd.f32 %v786_v23, %v378_v27 }
 0x112   :  { %v823_v35 = vadd.f32 %v822_v28, %v808_v19  ;;  %1127 = vst [vmem:[%s1503_s6 + $0x38] sm:$0xff] %v1072_v29   ;;  %v809_v37 = vmul.f32 %v378_v27, %v378_v27  ;;  %v1107_v38 = vpack.c.bf16 %v603_v31, %v600_v20  ;;  %v848_v13 = vadd.f32 %v847_v32, %v603_v31 }
 0x113   :  { %1134 = vst [vmem:[%s1504_s7 + $0x38] sm:$0xff] %v1112_v30   ;;  %v884_v39 = vadd.f32 %v883_v33, %v869_v25  ;;  %1126 = vst [vmem:[%s1503_s6 + $0x30] sm:$0xff] %v1067_v34   ;;  %v870_v40 = vmul.f32 %v603_v31, %v603_v31  ;;  %v788_v14 = vadd.f32 %v1197_v7, %v787_v36 }
 0x114   :  { %v824_v42 = vadd.f32 %v823_v35, %v809_v37  ;;  %1133 = vst [vmem:[%s1504_s7 + $0x30] sm:$0xff] %v1107_v38   ;;  %v849_v44 = vadd.f32 %v1229_v11, %v848_v13  ;;  %v811_v46 = vmul.f32 %v1198_v21, %v1198_v21  ;;  %v872_v49 = vmul.f32 %v1230_v26, %v1230_v26 }
 0x115   :  { %v885_v45 = vadd.f32 %v884_v39, %v870_v40  ;;  %v789_v47 = vadd.f32 %v1198_v21, %v788_v14 }
 0x116   :  { %v825_v48 = vadd.f32 %v824_v42, %v810_v41  ;;  %v850_v50 = vadd.f32 %v1230_v26, %v849_v44 }
 0x117   :  { %v886_v51 = vadd.f32 %v885_v45, %v871_v43  ;;  %v790_v52 = vrot.slane %v789_v47, 4 }
 0x118   :  { %v826_v53 = vadd.f32 %v825_v48, %v811_v46  ;;  %v851_v54 = vrot.slane %v850_v50, 4 }
 0x119   :  { %v887_v55 = vadd.f32 %v886_v51, %v872_v49  ;;  %v791_v56 = vadd.f32 %v790_v52, %v789_v47 }
 0x11a   :  { %v827_v57 = vrot.slane %v826_v53, 4  ;;  %v852_v58 = vadd.f32 %v851_v54, %v850_v50 }
 0x11b   :  { %v888_v59 = vrot.slane %v887_v55, 4  ;;  %v792_v60 = vrot.slane %v791_v56, 2 }
 0x11c   :  { %v828_v61 = vadd.f32 %v827_v57, %v826_v53  ;;  %v853_v62 = vrot.slane %v852_v58, 2 }
 0x11d   :  { %v889_v63 = vadd.f32 %v888_v59, %v887_v55  ;;  %v793_v0 = vadd.f32 %v792_v60, %v791_v56 }
 0x11e   :  { %v829_v1 = vrot.slane %v828_v61, 2  ;;  %v854_v2 = vadd.f32 %v853_v62, %v852_v58 }
 0x11f   :  { %v890_v3 = vrot.slane %v889_v63, 2  ;;  %v794_v4 = vrot.slane %v793_v0, 1 }
 0x120   :  { %v830_v5 = vadd.f32 %v829_v1, %v828_v61  ;;  %v855_v6 = vrot.slane %v854_v2, 1 }
 0x121   :  { %v891_v7 = vadd.f32 %v890_v3, %v889_v63  ;;  %v795_v10 = vadd.f32 %v794_v4, %v793_v0 }
 0x122   :  { %v831_v8 = vrot.slane %v830_v5, 1  ;;  %v856_v12 = vadd.f32 %v855_v6, %v854_v2 }
 0x123   :  { %v892_v9 = vrot.slane %v891_v7, 1 }
 0x124   :  { %v832_v11 = vadd.f32 %v831_v8, %v830_v5 }
 0x125   :  { %v893_v15 = vadd.f32 %v892_v9, %v891_v7 }
 0x126   :  { %v834_v16 = vsel %vm833_vm0, %v795_v10, %v832_v11 }
 0x127   :  { %835 = vst [vmem:[%s1505_s8] sm:$0x3] %v834_v16  ;;  %v894_v17 = vsel %vm833_vm0, %v856_v12, %v893_v15 }
 0x128   :  { %895 = vst [vmem:[%s1506_s9] sm:$0x3] %v894_v17 }

// kernel: resnext_block_forward.9
= control target key start
LH: loop header
LB: loop body
LE: loop exit
PB: predicated region body
PF: predicated region fallthrough
CT: control target
= control target key end

     0   :  { %s535_s0 = inlined_call_operand.vmem [shape: bf16[128,128], index: 0, kind: input, shape index: {}]   ;;  %s536_s1 = inlined_call_operand.vmem [shape: f32[1,128], index: 1, kind: input, shape index: {}]   ;;  %s537_s2 = inlined_call_operand.vmem [shape: f32[1,128], index: 2, kind: input, shape index: {}]   ;;  %s538_s3 = inlined_call_operand.vmem [shape: bf16[128,128], index: 3, kind: input, shape index: {}]   ;;  %s539_s4 = inlined_call_operand.vmem [shape: f32[1,128], index: 4, kind: input, shape index: {}]   ;;  %s540_s5 = inlined_call_operand.vmem [shape: f32[1,128], index: 5, kind: input, shape index: {}]   ;;  %s541_s6 = inlined_call_operand.hbm [shape: f32[128,128], index: 6, kind: output, shape index: {}]  }
   0x1   :  { %v249_v0 = vld [vmem:[%s535_s0] sm:$0xff]   ;;  %v312_v9 = vld [vmem:[%s535_s0 + $0x8] sm:$0xff]   ;;  %v313_v15 = vld [vmem:[%s535_s0 + $0x10] sm:$0xff]  }
   0x2   :  { %v397_v1 = vld [vmem:[%s536_s1] ss:$0 sm:$0xff]  ;;  %v250_v2 = vunpack.c.l.bf16 %v249_v0  ;;  %v251_v5 = vunpack.c.h.bf16 %v249_v0  ;;  %v319_v10 = vld [vmem:[%s538_s3 + $0x8] sm:$0xff]   ;;  %v254_v13 = vunpack.c.l.bf16 %v312_v9  ;;  %v320_v16 = vld [vmem:[%s538_s3 + $0x10] sm:$0xff]   ;;  %v255_v19 = vunpack.c.h.bf16 %v312_v9 }
   0x3   :  { %v281_v3 = vld [vmem:[%s538_s3] sm:$0xff]   ;;  %v286_v14 = vunpack.c.l.bf16 %v319_v10  ;;  %v287_v20 = vunpack.c.h.bf16 %v319_v10  ;;  %v258_v28 = vunpack.c.l.bf16 %v313_v15  ;;  %v290_v29 = vunpack.c.l.bf16 %v320_v16 }
   0x4   :  { %v405_v4 = vld [vmem:[%s539_s4] ss:$0 sm:$0xff]  ;;  %v282_v7 = vunpack.c.l.bf16 %v281_v3  ;;  %v283_v8 = vunpack.c.h.bf16 %v281_v3  ;;  %v63_v11 = vmul.f32 %v250_v2, %v397_v1  ;;  %v64_v12 = vmul.f32 %v251_v5, %v397_v1 }
   0x5   :  { %v410_v6 = vld [vmem:[%s537_s2] ss:$0 sm:$0xff]  ;;  %v65_v23 = vmul.f32 %v254_v13, %v397_v1  ;;  %v143_v24 = vmul.f32 %v286_v14, %v405_v4  ;;  %v66_v26 = vmul.f32 %v255_v19, %v397_v1  ;;  %v144_v27 = vmul.f32 %v287_v20, %v405_v4 }
   0x6   :  { %v141_v17 = vmul.f32 %v282_v7, %v405_v4  ;;  %v142_v18 = vmul.f32 %v283_v8, %v405_v4  ;;  %v86_v21 = vadd.f32 %v410_v6, %v63_v11  ;;  %v87_v22 = vadd.f32 %v410_v6, %v64_v12  ;;  %v435_v25 = vld [vmem:[%s540_s5] ss:$0 sm:$0xff] }
   0x7   :  { %11 = vsyncpa [#allocation3], 0  ;;  %v88_v32 = vadd.f32 %v410_v6, %v65_v23  ;;  %v259_v33 = vunpack.c.h.bf16 %v313_v15  ;;  %v314_v34 = vld [vmem:[%s535_s0 + $0x18] sm:$0xff]   ;;  %v89_v35 = vadd.f32 %v410_v6, %v66_v26  ;;  %v67_v36 = vmul.f32 %v258_v28, %v397_v1  ;;  %v315_v56 = vld [vmem:[%s535_s0 + $0x20] sm:$0xff]  }
   0x8   :  { %v157_v30 = vadd.f32 %v141_v17, %v86_v21  ;;  %v158_v31 = vadd.f32 %v142_v18, %v87_v22  ;;  %v145_v37 = vmul.f32 %v290_v29, %v405_v4  ;;  %v291_v38 = vunpack.c.h.bf16 %v320_v16  ;;  %v321_v43 = vld [vmem:[%s538_s3 + $0x18] sm:$0xff]   ;;  %v322_v61 = vld [vmem:[%s538_s3 + $0x20] sm:$0xff]   ;;  %v316_v9 = vld [vmem:[%s535_s0 + $0x28] sm:$0xff]  }
   0x9   :  { %v159_v41 = vadd.f32 %v143_v24, %v88_v32  ;;  %v68_v42 = vmul.f32 %v259_v33, %v397_v1  ;;  %v160_v44 = vadd.f32 %v144_v27, %v89_v35  ;;  %v90_v45 = vadd.f32 %v410_v6, %v67_v36  ;;  %v323_v14 = vld [vmem:[%s538_s3 + $0x28] sm:$0xff]   ;;  %v317_v28 = vld [vmem:[%s535_s0 + $0x30] sm:$0xff]  }
   0xa   :  { %v180_v39 = vadd.f32 %v435_v25, %v157_v30  ;;  %v181_v40 = vadd.f32 %v435_v25, %v158_v31  ;;  %v146_v46 = vmul.f32 %v291_v38, %v405_v4  ;;  %v262_v47 = vunpack.c.l.bf16 %v314_v34  ;;  %v324_v33 = vld [vmem:[%s538_s3 + $0x30] sm:$0xff]  }
   0xb   :  { %v182_v50 = vadd.f32 %v435_v25, %v159_v41  ;;  %v91_v51 = vadd.f32 %v410_v6, %v68_v42  ;;  %v183_v52 = vadd.f32 %v435_v25, %v160_v44  ;;  %v161_v53 = vadd.f32 %v145_v37, %v90_v45 }
   0xc   :  { %v196_v48 = vmax.f32 %v180_v39, 0.0  ;;  %v197_v49 = vmax.f32 %v181_v40, 0.0  ;;  %v69_v54 = vmul.f32 %v262_v47, %v397_v1  ;;  %v294_v55 = vunpack.c.l.bf16 %v321_v43 }
   0xd   :  { %v198_v57 = vmax.f32 %v182_v50, 0.0  ;;  %v162_v58 = vadd.f32 %v146_v46, %v91_v51  ;;  %v263_v59 = vunpack.c.h.bf16 %v314_v34  ;;  %v295_v60 = vunpack.c.h.bf16 %v321_v43  ;;  %v318_v50 = vld [vmem:[%s535_s0 + $0x38] sm:$0xff]   ;;  %s353_s0 = smov [#allocation2]  }
   0xe   :  { %212 = vst [vmem:[#allocation2] sm:$0xff] %v196_v48  ;;  %213 = vst [vmem:[#allocation2 + $0x8] sm:$0xff] %v197_v49  ;;  %v199_v62 = vmax.f32 %v183_v52, 0.0  ;;  %v184_v63 = vadd.f32 %v435_v25, %v161_v53  ;;  %v92_v0 = vadd.f32 %v410_v6, %v69_v54  ;;  %v147_v2 = vmul.f32 %v294_v55, %v405_v4  ;;  %v325_v51 = vld [vmem:[%s538_s3 + $0x38] sm:$0xff]   ;;  %s233_s3 = sshll.u32 %s353_s0, 4  ;;  %s234_s3 = int_to_ptr.vmem [resolvable:$true] %s233_s3 }
   0xf   :  { %214 = vst [vmem:[#allocation2 + $0x10] sm:$0xff] %v198_v57  ;;  %v185_v3 = vadd.f32 %v435_v25, %v162_v58  ;;  %v70_v5 = vmul.f32 %v263_v59, %v397_v1  ;;  %v148_v7 = vmul.f32 %v295_v60, %v405_v4  ;;  %v266_v8 = vunpack.c.l.bf16 %v315_v56  ;;  %s329_s8 = scalar_lea.vmem %s234_s3, 2048  ;;  %p334_p1 = scmp.lt.s32.totalorder %s234_s3, %s234_s3 }
  0x10   :  { %215 = vst [vmem:[#allocation2 + $0x18] sm:$0xff] %v199_v62  ;;  %v200_v10 = vmax.f32 %v184_v63, 0.0  ;;  %v163_v11 = vadd.f32 %v147_v2, %v92_v0  ;;  %v298_v12 = vunpack.c.l.bf16 %v322_v61  ;;  %v267_v13 = vunpack.c.h.bf16 %v315_v56  ;;  %p330_p0 = scmp.ne.s32.totalorder %s234_s3, %s329_s8  ;;  %p335_p2 = scmp.lt.s32.totalorder %s329_s8, %s329_s8 }
  0x11   :  { %v201_v15 = vmax.f32 %v185_v3, 0.0  ;;  %v93_v16 = vadd.f32 %v410_v6, %v70_v5  ;;  %v71_v17 = vmul.f32 %v266_v8, %v397_v1  ;;  %v299_v18 = vunpack.c.h.bf16 %v322_v61 }
  0x12   :  { %216 = vst [vmem:[#allocation2 + $0x20] sm:$0xff] %v200_v10  ;;  %v186_v19 = vadd.f32 %v435_v25, %v163_v11  ;;  %v149_v20 = vmul.f32 %v298_v12, %v405_v4  ;;  %v72_v21 = vmul.f32 %v267_v13, %v397_v1  ;;  %v270_v22 = vunpack.c.l.bf16 %v316_v9  ;;  %p336_p3 = por %p335_p2, %p334_p1 }
  0x13   :  { %217 = vst [vmem:[#allocation2 + $0x28] sm:$0xff] %v201_v15  ;;  %v164_v23 = vadd.f32 %v148_v7, %v93_v16  ;;  %v94_v24 = vadd.f32 %v410_v6, %v71_v17  ;;  %v150_v26 = vmul.f32 %v299_v18, %v405_v4  ;;  %v302_v27 = vunpack.c.l.bf16 %v323_v14 }
  0x14   :  { %v202_v29 = vmax.f32 %v186_v19, 0.0  ;;  %v95_v30 = vadd.f32 %v410_v6, %v72_v21  ;;  %v73_v31 = vmul.f32 %v270_v22, %v397_v1  ;;  %v271_v32 = vunpack.c.h.bf16 %v316_v9  ;;  %p337_p4 = pnand %p336_p3, %p330_p0 }
  0x15   :  { %v187_v34 = vadd.f32 %v435_v25, %v164_v23  ;;  %v165_v35 = vadd.f32 %v149_v20, %v94_v24  ;;  %v151_v36 = vmul.f32 %v302_v27, %v405_v4  ;;  %v303_v37 = vunpack.c.h.bf16 %v323_v14 }
  0x16   :  { %218 = vst [vmem:[#allocation2 + $0x30] sm:$0xff] %v202_v29  ;;  %v166_v38 = vadd.f32 %v150_v26, %v95_v30  ;;  %v96_v39 = vadd.f32 %v410_v6, %v73_v31  ;;  %v74_v40 = vmul.f32 %v271_v32, %v397_v1  ;;  %v274_v41 = vunpack.c.l.bf16 %v317_v28 }
  0x17   :  { %v203_v42 = vmax.f32 %v187_v34, 0.0  ;;  %v188_v43 = vadd.f32 %v435_v25, %v165_v35  ;;  %v152_v44 = vmul.f32 %v303_v37, %v405_v4  ;;  %v306_v45 = vunpack.c.l.bf16 %v324_v33 }
  0x18   :  { %v189_v46 = vadd.f32 %v435_v25, %v166_v38  ;;  %v167_v47 = vadd.f32 %v151_v36, %v96_v39  ;;  %v97_v48 = vadd.f32 %v410_v6, %v74_v40  ;;  %v75_v49 = vmul.f32 %v274_v41, %v397_v1 }
  0x19   :  { %219 = vst [vmem:[#allocation2 + $0x38] sm:$0xff] %v203_v42  ;;  %v204_v52 = vmax.f32 %v188_v43, 0.0  ;;  %v153_v53 = vmul.f32 %v306_v45, %v405_v4  ;;  %v275_v54 = vunpack.c.h.bf16 %v317_v28  ;;  %v307_v55 = vunpack.c.h.bf16 %v324_v33 }
  0x1a   :  { %v205_v56 = vmax.f32 %v189_v46, 0.0  ;;  %v190_v57 = vadd.f32 %v435_v25, %v167_v47  ;;  %v168_v58 = vadd.f32 %v152_v44, %v97_v48  ;;  %v98_v59 = vadd.f32 %v410_v6, %v75_v49 }
  0x1b   :  { %220 = vst [vmem:[#allocation2 + $0x40] sm:$0xff] %v204_v52  ;;  %v76_v60 = vmul.f32 %v275_v54, %v397_v1  ;;  %v154_v61 = vmul.f32 %v307_v55, %v405_v4  ;;  %v278_v62 = vunpack.c.l.bf16 %v318_v50  ;;  %v310_v63 = vunpack.c.l.bf16 %v325_v51 }
  0x1c   :  { %221 = vst [vmem:[#allocation2 + $0x48] sm:$0xff] %v205_v56  ;;  %v206_v0 = vmax.f32 %v190_v57, 0.0  ;;  %v191_v2 = vadd.f32 %v435_v25, %v168_v58  ;;  %v169_v3 = vadd.f32 %v153_v53, %v98_v59  ;;  %v279_v5 = vunpack.c.h.bf16 %v318_v50 }
  0x1d   :  { %v99_v7 = vadd.f32 %v410_v6, %v76_v60  ;;  %v77_v8 = vmul.f32 %v278_v62, %v397_v1  ;;  %v155_v9 = vmul.f32 %v310_v63, %v405_v4  ;;  %v311_v10 = vunpack.c.h.bf16 %v325_v51 }
  0x1e   :  { %222 = vst [vmem:[#allocation2 + $0x50] sm:$0xff] %v206_v0  ;;  %v207_v11 = vmax.f32 %v191_v2, 0.0  ;;  %v192_v12 = vadd.f32 %v435_v25, %v169_v3  ;;  %v78_v13 = vmul.f32 %v279_v5, %v397_v1 }
  0x1f   :  { %v170_v14 = vadd.f32 %v154_v61, %v99_v7  ;;  %v100_v15 = vadd.f32 %v410_v6, %v77_v8  ;;  %v156_v16 = vmul.f32 %v311_v10, %v405_v4 }
  0x20   :  { %223 = vst [vmem:[#allocation2 + $0x58] sm:$0xff] %v207_v11  ;;  %v208_v17 = vmax.f32 %v192_v12, 0.0  ;;  %v101_v18 = vadd.f32 %v410_v6, %v78_v13 }
  0x21   :  { %v193_v19 = vadd.f32 %v435_v25, %v170_v14  ;;  %v171_v20 = vadd.f32 %v155_v9, %v100_v15 }
  0x22   :  { %224 = vst [vmem:[#allocation2 + $0x60] sm:$0xff] %v208_v17  ;;  %v172_v21 = vadd.f32 %v156_v16, %v101_v18 }
  0x23   :  { %v209_v22 = vmax.f32 %v193_v19, 0.0  ;;  %v194_v23 = vadd.f32 %v435_v25, %v171_v20 }
  0x24   :  { %v195_v1 = vadd.f32 %v435_v25, %v172_v21 }
  0x25   :  { %225 = vst [vmem:[#allocation2 + $0x68] sm:$0xff] %v209_v22  ;;  %v210_v24 = vmax.f32 %v194_v23, 0.0 }
  0x26   :  { %v211_v4 = vmax.f32 %v195_v1, 0.0 }
  0x27   :  { %226 = vst [vmem:[#allocation2 + $0x70] sm:$0xff] %v210_v24 }
  0x28   :  { %227 = vst [vmem:[#allocation2 + $0x78] sm:$0xff] %v211_v4 }
  0x29   :  { %340 = shalt.err (!%p337_p4)
}
  0x2a   :  { %s341_s10 = scalar_lea.hbm %s541_s6, 2048 }
  0x2b   :  { %p342_p5 = scmp.ne.s32.totalorder %s541_s6, %s341_s10  ;;  %p345_p6 = scmp.lt.u32.totalorder %s341_s10, %s541_s6 }
  0x2d   :  { %p347_p7 = pnand %p345_p6, %p342_p5 }
  0x2f   :  { %350 = shalt.err (!%p347_p7)
}
  0x30   :  { %s354_s14 = smov 128   ;;  %s355_s15 = smov 8  }
  0x31   :  { %239 = dma.vmem_to_hbm [thread:$0]  %s234_s3, 2048, %s541_s6, [#allocation3], %s354_s14, %s354_s14, %s355_s15  }
  0x32   :  { %351 = dma.done.wait [#allocation3], 2048  }
  0x33   :  { %352 = vsyncadd [#allocation3], 4294965248 }
  0x34   :  { %243 = vsyncpa [#allocation3], 1 }

</bundles_post_ra>
